<compile_context>
chip_gen: v7x
topology: tpu7x:2x2x1
jax: 0.10.0
libtpu: 0.0.40
codegen_flags: <defaults>
</compile_context>

<pallas_src>
import functools
import types

import numpy as np
import jax
import jax.numpy as jnp
from jax.experimental import pallas as pl
from jax.experimental.pallas import tpu as pltpu

DIMENSION = 3
EPS = 1e-4                       # scn BatchNorm default eps
ROW_TILE = 1024                  # row tile for conv / BN grids (review: 256 -> 1024)
VMEM_LIMIT = 32 * 1024 * 1024    # explicit scoped-VMEM budget (>= v5e 16MiB default, < v7x 64MiB phys)
OFFSETS3 = [(dx, dy, dz) for dx in (-1, 0, 1) for dy in (-1, 0, 1) for dz in (-1, 0, 1)]   # 27
OFFSETS2 = [(dx, dy, dz) for dx in (0, 1) for dy in (0, 1) for dz in (0, 1)]               # 8


def _round_up(n, m):
    return ((max(n, 1) + m - 1) // m) * m


def _row_plan(n):
    """Row padding & tile for one U-Net level.

    Guarantees: at least one zero padded row (gather sentinel), tile multiple of 8,
    and >= 2 grid steps whenever possible so both v7x TensorCores get work.
    """
    need = _round_up(n + 1, 8)
    if need <= 16:
        tn = need
    elif need <= 2 * ROW_TILE:
        tn = min(ROW_TILE, _round_up((need + 1) // 2, 8))
    else:
        tn = ROW_TILE
    return _round_up(need, tn), tn


# ----------------------------------------------------------------------------
# Pallas kernels
# ----------------------------------------------------------------------------

def _conv_kernel(g_ref, w_ref, o_ref):
    # One MXU matmul per row tile:
    #   (TN, Kp*Cin) bf16  @  (Kp*Cin, Cop) bf16  ->  f32 accumulate -> bf16 store.
    o_ref[...] = jnp.dot(g_ref[...], w_ref[...],
                         preferred_element_type=jnp.float32).astype(o_ref.dtype)


@functools.lru_cache(maxsize=None)
def _conv_call(Np, KCp, Cop, TN):
    bytes_accessed = Np * KCp * 2 + KCp * Cop * 2 + Np * Cop * 2
    return pl.pallas_call(
        _conv_kernel,
        out_shape=jax.ShapeDtypeStruct((Np, Cop), jnp.bfloat16),
        grid_spec=pltpu.PrefetchScalarGridSpec(
            num_scalar_prefetch=0,
            grid=(Np // TN,),
            in_specs=[pl.BlockSpec((TN, KCp), lambda i: (i, 0)),
                      pl.BlockSpec((KCp, Cop), lambda i: (0, 0))],
            out_specs=pl.BlockSpec((TN, Cop), lambda i: (i, 0))),
        compiler_params=pltpu.CompilerParams(
            dimension_semantics=("parallel",),
            vmem_limit_bytes=VMEM_LIMIT),
        cost_estimate=pl.CostEstimate(flops=2 * Np * KCp * Cop,
                                      transcendentals=0,
                                      bytes_accessed=bytes_accessed),
    )


def _bn_stats_kernel(x_ref, s_ref, s2_ref):
    # Row-tiled reduction: per-lane sum and sum-of-squares accumulated across the grid.
    @pl.when(pl.program_id(0) == 0)
    def _():
        s_ref[...] = jnp.zeros_like(s_ref)
        s2_ref[...] = jnp.zeros_like(s2_ref)
    x = x_ref[...].astype(jnp.float32)
    s_ref[...] += jnp.sum(x, axis=0, keepdims=True)
    s2_ref[...] += jnp.sum(x * x, axis=0, keepdims=True)


@functools.lru_cache(maxsize=None)
def _bn_stats_call(Np, Cp, TN):
    return pl.pallas_call(
        _bn_stats_kernel,
        out_shape=(jax.ShapeDtypeStruct((1, Cp), jnp.float32),
                   jax.ShapeDtypeStruct((1, Cp), jnp.float32)),
        grid_spec=pltpu.PrefetchScalarGridSpec(
            num_scalar_prefetch=0,
            grid=(Np // TN,),
            in_specs=[pl.BlockSpec((TN, Cp), lambda i: (i, 0))],
            out_specs=[pl.BlockSpec((1, Cp), lambda i: (0, 0)),
                       pl.BlockSpec((1, Cp), lambda i: (0, 0))]),
        compiler_params=pltpu.CompilerParams(
            dimension_semantics=("arbitrary",),      # reduction: output block revisited
            vmem_limit_bytes=VMEM_LIMIT),
    )


def _make_bn_apply_kernel(leakiness, n_valid, tile_rows):
    def kernel(x_ref, scale_ref, shift_ref, o_ref):
        x = x_ref[...].astype(jnp.float32)
        y = x * scale_ref[...] + shift_ref[...]
        y = jnp.where(y > 0, y, leakiness * y)
        # keep padded rows exactly zero so the next conv's sentinel row stays valid
        rows = pl.program_id(0) * tile_rows + jax.lax.broadcasted_iota(jnp.int32, y.shape, 0)
        y = jnp.where(rows < n_valid, y, 0.0)
        o_ref[...] = y.astype(o_ref.dtype)
    return kernel


@functools.lru_cache(maxsize=None)
def _bn_apply_call(Np, Cp, TN, n_valid, leakiness):
    return pl.pallas_call(
        _make_bn_apply_kernel(leakiness, n_valid, TN),
        out_shape=jax.ShapeDtypeStruct((Np, Cp), jnp.bfloat16),
        grid_spec=pltpu.PrefetchScalarGridSpec(
            num_scalar_prefetch=0,
            grid=(Np // TN,),
            in_specs=[pl.BlockSpec((TN, Cp), lambda i: (i, 0)),
                      pl.BlockSpec((1, Cp), lambda i: (0, 0)),
                      pl.BlockSpec((1, Cp), lambda i: (0, 0))],
            out_specs=pl.BlockSpec((TN, Cp), lambda i: (i, 0))),
        compiler_params=pltpu.CompilerParams(
            dimension_semantics=("parallel",),
            vmem_limit_bytes=VMEM_LIMIT),
    )


# ----------------------------------------------------------------------------
# Per-layer static packing (done once, outside the forward path)
# ----------------------------------------------------------------------------

def prepare_conv(rules, w, n_in, np_in, np_out, tn_out):
    """Pack one sparse-conv layer: tap-padded gather indices + padded bf16 weights."""
    rules = np.asarray(rules, np.int64)
    w = np.asarray(w, np.float32)
    K, n_out = rules.shape
    cin, cout = int(w.shape[1]), int(w.shape[2])
    assert np_in > n_in, "input activation needs a zero sentinel row"

    # pad the tap count so the gathered width Kp*cin is a multiple of 128 lanes
    gg = int(np.gcd(cin, 128))
    Kp = _round_up(K, 128 // gg)
    KCp = Kp * cin
    Cop = _round_up(cout, 128)

    sentinel = n_in                                   # guaranteed-zero padded row of the input
    gidx = np.full((np_out, Kp), sentinel, np.int32)
    gidx[:n_out, :K] = np.where(rules.T >= 0, rules.T, sentinel)

    wp = np.zeros((KCp, Cop), np.float32)
    wp[:K * cin, :cout] = w.reshape(K * cin, cout)    # row = k*cin + c (matches gather flatten)

    return dict(K=K, Kp=Kp, cin=cin, cout=cout, n_out=n_out,
                Np=np_out, TN=tn_out, KCp=KCp, Cop=Cop,
                gidx=jnp.asarray(gidx),
                w_packed=jnp.asarray(wp, jnp.bfloat16),
                rules=np.asarray(rules, np.int32), w_f32=w)


# ----------------------------------------------------------------------------
# Pallas-backed ops.  Activations are dicts {"x": (Np, Cp) bf16, "n", "c", "tn"}
# with rows >= n and lanes >= c exactly zero — padded end-to-end, never sliced.
# ----------------------------------------------------------------------------

def sparse_conv_pallas(act, plan):
    x = act["x"]                                            # (Np_in, Cp_in) bf16, zero-padded
    g = x[:, :plan["cin"]][plan["gidx"]]                    # (Np_out, Kp, cin) — XLA gather, see TODO
    g = g.reshape(plan["Np"], plan["KCp"])                  # lane-aligned: Kp*cin % 128 == 0
    out = _conv_call(plan["Np"], plan["KCp"], plan["Cop"], plan["TN"])(g, plan["w_packed"])
    return {"x": out, "n": plan["n_out"], "c": plan["cout"], "tn": plan["TN"]}


def bn_relu_pallas(act, gamma, beta, leakiness=0.0, eps=EPS):
    x, n, c, tn = act["x"], act["n"], act["c"], act["tn"]
    Np, Cp = x.shape
    gp = jnp.zeros((1, Cp), jnp.float32).at[0, :c].set(jnp.asarray(gamma, jnp.float32))
    bp = jnp.zeros((1, Cp), jnp.float32).at[0, :c].set(jnp.asarray(beta, jnp.float32))
    s, s2 = _bn_stats_call(Np, Cp, tn)(x)                   # padded rows/lanes are zero
    mean = s / n
    var = jnp.maximum(s2 / n - mean * mean, 0.0)
    scale = gp / jnp.sqrt(var + eps)                        # padded lanes: gamma=0 -> scale=0
    shift = bp - mean * scale                               # padded lanes: 0
    y = _bn_apply_call(Np, Cp, tn, int(n), float(leakiness))(x, scale, shift)
    return {"x": y, "n": n, "c": c, "tn": tn}


def concat_pallas(a, b):
    """scn.JoinTable on padded activations: repack real channels contiguously."""
    rows = a["x"].shape[0]
    c = a["c"] + b["c"]
    Cp = _round_up(c, 128)
    parts = [a["x"][:, :a["c"]], b["x"][:, :b["c"]]]
    if Cp > c:
        parts.append(jnp.zeros((rows, Cp - c), jnp.bfloat16))
    return {"x": jnp.concatenate(parts, axis=1), "n": a["n"], "c": c, "tn": a["tn"]}


# ----------------------------------------------------------------------------
# Pure numpy reference ops (correctness check only; mirrors the kernel's bf16 casts)
# ----------------------------------------------------------------------------

def _bf16(a):
    return np.asarray(jnp.asarray(np.asarray(a, np.float32), jnp.bfloat16).astype(jnp.float32))


def sparse_conv_ref(x, plan):
    xq = _bf16(x)
    wq = _bf16(plan["w_f32"])
    rules = plan["rules"]
    K, n_out = rules.shape
    out = np.zeros((n_out, plan["cout"]), np.float32)
    for k in range(K):
        valid = rules[k] >= 0
        if valid.any():
            out[valid] += xq[rules[k][valid]] @ wq[k]
    return _bf16(out)                                       # kernel stores bf16


def bn_relu_ref(x, gamma, beta, leakiness=0.0, eps=EPS):
    x = _bf16(x)
    gamma = np.asarray(gamma, np.float32)
    beta = np.asarray(beta, np.float32)
    n = x.shape[0]
    mean = x.sum(axis=0, keepdims=True) / n
    var = np.maximum((x * x).sum(axis=0, keepdims=True) / n - mean * mean, 0.0)
    scale = gamma / np.sqrt(var + eps)
    shift = beta - mean * scale
    y = x * scale + shift
    y = np.where(y > 0, y, leakiness * y)
    return _bf16(y)                                         # kernel stores bf16


# ----------------------------------------------------------------------------
# Host-side sparse "rulebook" construction (glue, numpy)
# ----------------------------------------------------------------------------

def coord_key(coords, spatial):
    c = np.asarray(coords).astype(np.int64)
    return ((c[:, 3] * spatial + c[:, 0]) * spatial + c[:, 1]) * spatial + c[:, 2]


def build_subm_rules(coords, spatial):
    """Submanifold 3x3x3 conv: output sites == input sites."""
    N = coords.shape[0]
    keys = coord_key(coords, spatial)
    lut = {int(k): i for i, k in enumerate(keys)}
    rules = np.full((27, N), -1, np.int32)
    for k, (dx, dy, dz) in enumerate(OFFSETS3):
        nb = coords.astype(np.int64).copy()
        nb[:, 0] += dx; nb[:, 1] += dy; nb[:, 2] += dz
        inb = (nb[:, :3] >= 0).all(axis=1) & (nb[:, :3] < spatial).all(axis=1)
        nbk = coord_key(nb, spatial)
        for j in range(N):
            if inb[j]:
                rules[k, j] = lut.get(int(nbk[j]), -1)
    return rules


def build_downsample(coords_fine, spatial_fine):
    """Convolution(filter=2, stride=2) and its transpose (Deconvolution) rulebooks."""
    spatial_coarse = spatial_fine // 2
    parent = coords_fine.copy()
    parent[:, :3] = coords_fine[:, :3] // 2
    pkeys = coord_key(parent, spatial_coarse)
    uniq, inverse = np.unique(pkeys, return_inverse=True)
    Nc = uniq.shape[0]
    coords_coarse = np.zeros((Nc, 4), np.int32)
    coords_coarse[inverse] = parent

    fine_keys = coord_key(coords_fine, spatial_fine)
    lut_fine = {int(k): i for i, k in enumerate(fine_keys)}
    down_rules = np.full((8, Nc), -1, np.int32)
    for k, (dx, dy, dz) in enumerate(OFFSETS2):
        child = coords_coarse.astype(np.int64).copy()
        child[:, 0] = child[:, 0] * 2 + dx
        child[:, 1] = child[:, 1] * 2 + dy
        child[:, 2] = child[:, 2] * 2 + dz
        ck = coord_key(child, spatial_fine)
        for j in range(Nc):
            down_rules[k, j] = lut_fine.get(int(ck[j]), -1)

    Nf = coords_fine.shape[0]
    up_rules = np.full((8, Nf), -1, np.int32)
    off = coords_fine[:, :3] - coords_coarse[inverse][:, :3] * 2
    for j in range(Nf):
        k = OFFSETS2.index(tuple(int(v) for v in off[j]))
        up_rules[k, j] = inverse[j]

    return coords_coarse, spatial_coarse, down_rules, up_rules


def build_levels(coords0, full_scale, num_planes):
    levels = []
    coords_l, spatial_l = coords0, full_scale
    for i in range(num_planes):
        lvl = {"n": coords_l.shape[0],
               "subm_rules": build_subm_rules(coords_l, spatial_l)}
        if i < num_planes - 1:
            coords_c, spatial_c, down_rules, up_rules = build_downsample(coords_l, spatial_l)
            lvl["down_rules"] = down_rules
            lvl["up_rules"] = up_rules
            coords_l, spatial_l = coords_c, spatial_c
        levels.append(lvl)
    return levels


# ----------------------------------------------------------------------------
# Parameters (deterministic synthetic init), network preparation, U-Net forward
# ----------------------------------------------------------------------------

def init_params(key, in_channels, m, num_planes):
    planes = [(n + 1) * m for n in range(num_planes)]
    counter = [0]

    def nxt():
        counter[0] += 1
        return jax.random.fold_in(key, counter[0])

    def w(shape, scale=0.1):
        return scale * jax.random.normal(nxt(), shape, jnp.float32)

    def bn(c):
        return (1.0 + 0.1 * jax.random.normal(nxt(), (c,), jnp.float32),
                0.1 * jax.random.normal(nxt(), (c,), jnp.float32))

    params = {"w_init": w((27, in_channels, m)), "levels": []}
    params["bn_final_g"], params["bn_final_b"] = bn(m)
    for i, p in enumerate(planes):
        lvl = {}
        lvl["bn1_g"], lvl["bn1_b"] = bn(p)
        lvl["w_block1"] = w((27, p, p))
        if i < num_planes - 1:
            q = planes[i + 1]
            lvl["bn_down_g"], lvl["bn_down_b"] = bn(p)
            lvl["w_down"] = w((8, p, q))
            lvl["bn_up_g"], lvl["bn_up_b"] = bn(q)
            lvl["w_up"] = w((8, q, p))
            lvl["bn2_g"], lvl["bn2_b"] = bn(2 * p)
            lvl["w_block2"] = w((27, 2 * p, p))
        params["levels"].append(lvl)
    return params, planes


def prepare_network(levels, params, num_planes, row_plans):
    """Pack all conv layers once (tap-padded gather indices + padded bf16 weights)."""
    n = [lvl["n"] for lvl in levels]
    rp = row_plans
    net = {"conv_init": prepare_conv(levels[0]["subm_rules"], params["w_init"],
                                     n[0], rp[0][0], rp[0][0], rp[0][1]),
           "bn_final": (params["bn_final_g"], params["bn_final_b"]),
           "levels": []}
    for i in range(num_planes):
        lvl, pr = levels[i], params["levels"][i]
        d = {"bn1": (pr["bn1_g"], pr["bn1_b"]),
             "conv_block1": prepare_conv(lvl["subm_rules"], pr["w_block1"],
                                         n[i], rp[i][0], rp[i][0], rp[i][1])}
        if i < num_planes - 1:
            d["bn_down"] = (pr["bn_down_g"], pr["bn_down_b"])
            d["conv_down"] = prepare_conv(lvl["down_rules"], pr["w_down"],
                                          n[i], rp[i][0], rp[i + 1][0], rp[i + 1][1])
            d["bn_up"] = (pr["bn_up_g"], pr["bn_up_b"])
            d["conv_up"] = prepare_conv(lvl["up_rules"], pr["w_up"],
                                        n[i + 1], rp[i + 1][0], rp[i][0], rp[i][1])
            d["bn2"] = (pr["bn2_g"], pr["bn2_b"])
            d["conv_block2"] = prepare_conv(lvl["subm_rules"], pr["w_block2"],
                                            n[i], rp[i][0], rp[i][0], rp[i][1])
        net["levels"].append(d)
    return net


def unet_forward(net, feats, ops, num_levels):
    """scn.SubmanifoldConvolution -> scn.UNet -> scn.BatchNormReLU (reps=1, VGG blocks)."""

    def level_fwd(i, x):
        lvl = net["levels"][i]
        # rep block: BatchNormLeakyReLU(p) + SubmanifoldConvolution(p, p, 3)
        x = ops.bn(x, *lvl["bn1"])
        x = ops.conv(x, lvl["conv_block1"])
        if i < num_levels - 1:
            ident = x
            y = ops.bn(x, *lvl["bn_down"])
            y = ops.conv(y, lvl["conv_down"])
            y = level_fwd(i + 1, y)
            y = ops.bn(y, *lvl["bn_up"])
            y = ops.conv(y, lvl["conv_up"])
            x = ops.concat(ident, y)                  # JoinTable
            x = ops.bn(x, *lvl["bn2"])
            x = ops.conv(x, lvl["conv_block2"])
        return x

    h = ops.conv(feats, net["conv_init"])             # in_channels -> m
    h = level_fwd(0, h)
    h = ops.bn(h, *net["bn_final"])                   # BatchNormReLU(m)
    return h


# ----------------------------------------------------------------------------
# main
# ----------------------------------------------------------------------------

if __name__ == "__main__":
    in_channels, m, num_planes, full_scale = 4, 8, 3, 16
    batch_size, n_points = 2, 64

    key = jax.random.PRNGKey(0)
    kc, kb, kf, kp = jax.random.split(key, 4)

    # x[0]: coords (N, 4) int32 [x, y, z, batch];  x[1]: feats (N, C) float32
    coords_xyz = np.asarray(jax.random.randint(kc, (n_points, 3), 0, full_scale), np.int32)
    batch_idx = np.asarray(jax.random.randint(kb, (n_points, 1), 0, batch_size), np.int32)
    coords = np.concatenate([coords_xyz, batch_idx], axis=1)
    feats = jax.random.normal(kf, (n_points, in_channels), jnp.float32)

    params, planes = init_params(kp, in_channels, m, num_planes)

    # scn.InputLayer(DIMENSION, full_scale, mode=4): dedup coords, mean-pool duplicates.
    keys = coord_key(coords, full_scale)
    uniq, inverse = np.unique(keys, return_inverse=True)
    n0 = uniq.shape[0]
    coords0 = np.zeros((n0, 4), np.int32)
    coords0[inverse] = coords
    counts = np.bincount(inverse, minlength=n0).astype(np.float32)
    feats0 = np.zeros((n0, in_channels), np.float32)
    np.add.at(feats0, inverse, np.asarray(feats))
    feats0 = feats0 / counts[:, None]

    levels = build_levels(coords0, full_scale, num_planes)
    row_plans = [_row_plan(lvl["n"]) for lvl in levels]
    net = prepare_network(levels, params, num_planes, row_plans)

    pallas_ops = types.SimpleNamespace(conv=sparse_conv_pallas, bn=bn_relu_pallas,
                                       concat=concat_pallas)
    ref_ops = types.SimpleNamespace(
        conv=sparse_conv_ref, bn=bn_relu_ref,
        concat=lambda a, b: np.concatenate([np.asarray(a), np.asarray(b)], axis=1))

    inverse_dev = jnp.asarray(inverse, jnp.int32)
    Np0, TN0 = row_plans[0]
    Cp0 = _round_up(in_channels, 128)

    # Whole forward pass (gather / concat glue + every pallas_call) in ONE jit.
    @jax.jit
    def forward(feats_in):
        x0 = jnp.zeros((Np0, Cp0), jnp.bfloat16)
        x0 = x0.at[:n0, :in_channels].set(feats_in.astype(jnp.bfloat16))
        act = {"x": x0, "n": n0, "c": in_channels, "tn": TN0}
        h = unet_forward(net, act, pallas_ops, num_planes)
        out = jnp.take(h["x"][:, :m], inverse_dev, axis=0)      # scn.OutputLayer
        return out.astype(jnp.float32)

    out = jax.block_until_ready(forward(jnp.asarray(feats0)))

    # numpy reference (mirrors the kernel path's bf16 casts at the same points)
    h_ref = unet_forward(net, feats0, ref_ops, num_planes)
    out_ref = np.asarray(h_ref)[inverse].astype(np.float32)

    assert out.shape == (n_points, m) and out.dtype == jnp.float32
    assert np.allclose(np.asarray(out), out_ref, rtol=2e-2, atol=2e-2), \
        "Pallas output mismatch vs numpy reference"
    print("KERNEL_OK")
</pallas_src>

<mosaic_0001>
module attributes {stable_mosaic.version = 11 : i64} {
  func.func @_conv_kernel(%arg0: i32, %arg1: memref<40x128xbf16, #tpu.memory_space<vmem>>, %arg2: memref<128x128xbf16, #tpu.memory_space<vmem>>, %arg3: memref<40x128xbf16, #tpu.memory_space<vmem>>) attributes {dimension_semantics = [#tpu.dimension_semantics<parallel>], iteration_bounds = array<i64: 2>, scalar_prefetch = 0 : i64, scratch_operands = 0 : i64, tpu.core_type = #tpu.core_type<tc>, window_params = [{transform_indices = @transform_0, window_bounds = array<i64: 40, 128>}, {pipeline_mode = #tpu.pipeline_mode<synchronous>, transform_indices = @transform_1, window_bounds = array<i64: 128, 128>}, {transform_indices = @transform_2, window_bounds = array<i64: 40, 128>}]} {
    %c0 = arith.constant 0 : index
    %c0_0 = arith.constant 0 : index
    %0 = vector.load %arg1[%c0, %c0_0] : memref<40x128xbf16, #tpu.memory_space<vmem>>, vector<40x128xbf16>
    %c0_1 = arith.constant 0 : index
    %c0_2 = arith.constant 0 : index
    %1 = vector.load %arg2[%c0_1, %c0_2] : memref<128x128xbf16, #tpu.memory_space<vmem>>, vector<128x128xbf16>
    %cst = arith.constant dense<0.000000e+00> : vector<40x128xf32>
    %2 = tpu.matmul %0, %1, %cst {dimension_numbers = #tpu.dot_dimension_numbers<[1], [0], [0], [1], [0, 0, 1, 1], [], []>} : vector<40x128xbf16>, vector<128x128xbf16>, vector<40x128xf32> -> vector<40x128xf32>
    %3 = arith.truncf %2 : vector<40x128xf32> to vector<40x128xbf16>
    %c0_3 = arith.constant 0 : index
    %c0_4 = arith.constant 0 : index
    %4 = vector.load %arg3[%c0_3, %c0_4] : memref<40x128xbf16, #tpu.memory_space<vmem>>, vector<40x128xbf16>
    tpu.vector_store %arg3[%c0_3, %c0_4], %3 {strides = array<i32>} : memref<40x128xbf16, #tpu.memory_space<vmem>>, vector<40x128xbf16>,
    return
  }
  func.func @transform_0(%arg0: i32) -> (i32, i32) {
    %c0_i32 = arith.constant 0 : i32
    %c0_i32_0 = arith.constant 0 : i32
    return %arg0, %c0_i32 : i32, i32
  }
  func.func @transform_1(%arg0: i32) -> (i32, i32) {
    %c0_i32 = arith.constant 0 : i32
    %c0_i32_0 = arith.constant 0 : i32
    %c0_i32_1 = arith.constant 0 : i32
    return %c0_i32, %c0_i32_0 : i32, i32
  }
  func.func @transform_2(%arg0: i32) -> (i32, i32) {
    %c0_i32 = arith.constant 0 : i32
    %c0_i32_0 = arith.constant 0 : i32
    return %arg0, %c0_i32 : i32, i32
  }
}

module attributes {stable_mosaic.version = 11 : i64} {
  func.func @_bn_stats_kernel(%arg0: i32, %arg1: memref<40x128xbf16, #tpu.memory_space<vmem>>, %arg2: memref<1x128xf32, #tpu.memory_space<vmem>>, %arg3: memref<1x128xf32, #tpu.memory_space<vmem>>) attributes {dimension_semantics = [#tpu.dimension_semantics<arbitrary>], iteration_bounds = array<i64: 2>, scalar_prefetch = 0 : i64, scratch_operands = 0 : i64, tpu.core_type = #tpu.core_type<tc>, window_params = [{transform_indices = @transform_0, window_bounds = array<i64: 40, 128>}, {pipeline_mode = #tpu.pipeline_mode<synchronous>, transform_indices = @transform_1, window_bounds = array<i64: 1, 128>}, {pipeline_mode = #tpu.pipeline_mode<synchronous>, transform_indices = @transform_2, window_bounds = array<i64: 1, 128>}]} {
    %c0_i32 = arith.constant 0 : i32
    %0 = arith.cmpi eq, %arg0, %c0_i32 : i32
    %1 = arith.extui %0 : i1 to i32
    %c0_i32_0 = arith.constant 0 : i32
    %2 = arith.cmpi ne, %1, %c0_i32_0 : i32
    scf.if %2 {
      %cst_11 = arith.constant 0.000000e+00 : f32
      %16 = vector.broadcast %cst_11 : f32 to vector<1x128xf32>
      %c0_12 = arith.constant 0 : index
      %c0_13 = arith.constant 0 : index
      %17 = vector.load %arg2[%c0_12, %c0_13] : memref<1x128xf32, #tpu.memory_space<vmem>>, vector<1x128xf32>
      tpu.vector_store %arg2[%c0_12, %c0_13], %16 {strides = array<i32>} : memref<1x128xf32, #tpu.memory_space<vmem>>, vector<1x128xf32>,
      %cst_14 = arith.constant 0.000000e+00 : f32
      %18 = vector.broadcast %cst_14 : f32 to vector<1x128xf32>
      %c0_15 = arith.constant 0 : index
      %c0_16 = arith.constant 0 : index
      %19 = vector.load %arg3[%c0_15, %c0_16] : memref<1x128xf32, #tpu.memory_space<vmem>>, vector<1x128xf32>
      tpu.vector_store %arg3[%c0_15, %c0_16], %18 {strides = array<i32>} : memref<1x128xf32, #tpu.memory_space<vmem>>, vector<1x128xf32>,
    } else {
    }
    %c0 = arith.constant 0 : index
    %c0_1 = arith.constant 0 : index
    %3 = vector.load %arg1[%c0, %c0_1] : memref<40x128xbf16, #tpu.memory_space<vmem>>, vector<40x128xbf16>
    %4 = arith.extf %3 : vector<40x128xbf16> to vector<40x128xf32>
    %c0_2 = arith.constant 0 : index
    %c0_3 = arith.constant 0 : index
    %5 = vector.load %arg2[%c0_2, %c0_3] : memref<1x128xf32, #tpu.memory_space<vmem>>, vector<1x128xf32>
    %cst = arith.constant dense<0.000000e+00> : vector<128xf32>
    %6 = vector.multi_reduction <add>, %4, %cst [0] : vector<40x128xf32> to vector<128xf32>
    %7 = vector.shape_cast %6 : vector<128xf32> to vector<1x128xf32>
    %8 = arith.addf %5, %7 : vector<1x128xf32>
    %c0_4 = arith.constant 0 : index
    %c0_5 = arith.constant 0 : index
    %9 = vector.load %arg2[%c0_4, %c0_5] : memref<1x128xf32, #tpu.memory_space<vmem>>, vector<1x128xf32>
    tpu.vector_store %arg2[%c0_4, %c0_5], %8 {strides = array<i32>} : memref<1x128xf32, #tpu.memory_space<vmem>>, vector<1x128xf32>,
    %c0_6 = arith.constant 0 : index
    %c0_7 = arith.constant 0 : index
    %10 = vector.load %arg3[%c0_6, %c0_7] : memref<1x128xf32, #tpu.memory_space<vmem>>, vector<1x128xf32>
    %11 = arith.mulf %4, %4 : vector<40x128xf32>
    %cst_8 = arith.constant dense<0.000000e+00> : vector<128xf32>
    %12 = vector.multi_reduction <add>, %11, %cst_8 [0] : vector<40x128xf32> to vector<128xf32>
    %13 = vector.shape_cast %12 : vector<128xf32> to vector<1x128xf32>
    %14 = arith.addf %10, %13 : vector<1x128xf32>
    %c0_9 = arith.constant 0 : index
    %c0_10 = arith.constant 0 : index
    %15 = vector.load %arg3[%c0_9, %c0_10] : memref<1x128xf32, #tpu.memory_space<vmem>>, vector<1x128xf32>
    tpu.vector_store %arg3[%c0_9, %c0_10], %14 {strides = array<i32>} : memref<1x128xf32, #tpu.memory_space<vmem>>, vector<1x128xf32>,
    return
  }
  func.func @transform_0(%arg0: i32) -> (i32, i32) {
    %c0_i32 = arith.constant 0 : i32
    %c0_i32_0 = arith.constant 0 : i32
    return %arg0, %c0_i32 : i32, i32
  }
  func.func @transform_1(%arg0: i32) -> (i32, i32) {
    %c0_i32 = arith.constant 0 : i32
    %c0_i32_0 = arith.constant 0 : i32
    %c0_i32_1 = arith.constant 0 : i32
    return %c0_i32, %c0_i32_0 : i32, i32
  }
  func.func @transform_2(%arg0: i32) -> (i32, i32) {
    %c0_i32 = arith.constant 0 : i32
    %c0_i32_0 = arith.constant 0 : i32
    %c0_i32_1 = arith.constant 0 : i32
    return %c0_i32, %c0_i32_0 : i32, i32
  }
}

module attributes {stable_mosaic.version = 11 : i64} {
  func.func @kernel(%arg0: i32, %arg1: memref<40x128xbf16, #tpu.memory_space<vmem>>, %arg2: memref<1x128xf32, #tpu.memory_space<vmem>>, %arg3: memref<1x128xf32, #tpu.memory_space<vmem>>, %arg4: memref<40x128xbf16, #tpu.memory_space<vmem>>) attributes {dimension_semantics = [#tpu.dimension_semantics<parallel>], iteration_bounds = array<i64: 2>, scalar_prefetch = 0 : i64, scratch_operands = 0 : i64, tpu.core_type = #tpu.core_type<tc>, window_params = [{transform_indices = @transform_0, window_bounds = array<i64: 40, 128>}, {pipeline_mode = #tpu.pipeline_mode<synchronous>, transform_indices = @transform_1, window_bounds = array<i64: 1, 128>}, {pipeline_mode = #tpu.pipeline_mode<synchronous>, transform_indices = @transform_2, window_bounds = array<i64: 1, 128>}, {transform_indices = @transform_3, window_bounds = array<i64: 40, 128>}]} {
    %c0 = arith.constant 0 : index
    %c0_0 = arith.constant 0 : index
    %0 = vector.load %arg1[%c0, %c0_0] : memref<40x128xbf16, #tpu.memory_space<vmem>>, vector<40x128xbf16>
    %1 = arith.extf %0 : vector<40x128xbf16> to vector<40x128xf32>
    %c0_1 = arith.constant 0 : index
    %c0_2 = arith.constant 0 : index
    %2 = vector.load %arg2[%c0_1, %c0_2] : memref<1x128xf32, #tpu.memory_space<vmem>>, vector<1x128xf32>
    %3 = vector.broadcast %2 : vector<1x128xf32> to vector<40x128xf32>
    %4 = arith.mulf %1, %3 : vector<40x128xf32>
    %c0_3 = arith.constant 0 : index
    %c0_4 = arith.constant 0 : index
    %5 = vector.load %arg3[%c0_3, %c0_4] : memref<1x128xf32, #tpu.memory_space<vmem>>, vector<1x128xf32>
    %6 = vector.broadcast %5 : vector<1x128xf32> to vector<40x128xf32>
    %7 = arith.addf %4, %6 : vector<40x128xf32>
    %cst = arith.constant 0.000000e+00 : f32
    %8 = vector.broadcast %cst : f32 to vector<40x128xf32>
    %9 = arith.cmpf ogt, %7, %8 : vector<40x128xf32>
    %cst_5 = arith.constant 0.000000e+00 : f32
    %10 = vector.broadcast %cst_5 : f32 to vector<40x128xf32>
    %11 = arith.mulf %10, %7 : vector<40x128xf32>
    %12 = arith.select %9, %7, %11 : vector<40x128xi1>, vector<40x128xf32>
    %c40_i32 = arith.constant 40 : i32
    %13 = arith.muli %arg0, %c40_i32 : i32
    %14 = tpu.iota {dimensions = array<i32: 0>} : vector<40x128xi32>
    %15 = vector.broadcast %13 : i32 to vector<40x128xi32>
    %16 = arith.addi %15, %14 : vector<40x128xi32>
    %c64_i32 = arith.constant 64 : i32
    %17 = vector.broadcast %c64_i32 : i32 to vector<40x128xi32>
    %18 = arith.cmpi slt, %16, %17 : vector<40x128xi32>
    %cst_6 = arith.constant 0.000000e+00 : f32
    %19 = vector.broadcast %cst_6 : f32 to vector<40x128xf32>
    %20 = arith.select %18, %12, %19 : vector<40x128xi1>, vector<40x128xf32>
    %21 = arith.truncf %20 : vector<40x128xf32> to vector<40x128xbf16>
    %c0_7 = arith.constant 0 : index
    %c0_8 = arith.constant 0 : index
    %22 = vector.load %arg4[%c0_7, %c0_8] : memref<40x128xbf16, #tpu.memory_space<vmem>>, vector<40x128xbf16>
    tpu.vector_store %arg4[%c0_7, %c0_8], %21 {strides = array<i32>} : memref<40x128xbf16, #tpu.memory_space<vmem>>, vector<40x128xbf16>,
    return
  }
  func.func @transform_0(%arg0: i32) -> (i32, i32) {
    %c0_i32 = arith.constant 0 : i32
    %c0_i32_0 = arith.constant 0 : i32
    return %arg0, %c0_i32 : i32, i32
  }
  func.func @transform_1(%arg0: i32) -> (i32, i32) {
    %c0_i32 = arith.constant 0 : i32
    %c0_i32_0 = arith.constant 0 : i32
    %c0_i32_1 = arith.constant 0 : i32
    return %c0_i32, %c0_i32_0 : i32, i32
  }
  func.func @transform_2(%arg0: i32) -> (i32, i32) {
    %c0_i32 = arith.constant 0 : i32
    %c0_i32_0 = arith.constant 0 : i32
    %c0_i32_1 = arith.constant 0 : i32
    return %c0_i32, %c0_i32_0 : i32, i32
  }
  func.func @transform_3(%arg0: i32) -> (i32, i32) {
    %c0_i32 = arith.constant 0 : i32
    %c0_i32_0 = arith.constant 0 : i32
    return %arg0, %c0_i32 : i32, i32
  }
}

module attributes {stable_mosaic.version = 11 : i64} {
  func.func @_conv_kernel(%arg0: i32, %arg1: memref<40x256xbf16, #tpu.memory_space<vmem>>, %arg2: memref<256x128xbf16, #tpu.memory_space<vmem>>, %arg3: memref<40x128xbf16, #tpu.memory_space<vmem>>) attributes {dimension_semantics = [#tpu.dimension_semantics<parallel>], iteration_bounds = array<i64: 2>, scalar_prefetch = 0 : i64, scratch_operands = 0 : i64, tpu.core_type = #tpu.core_type<tc>, window_params = [{transform_indices = @transform_0, window_bounds = array<i64: 40, 256>}, {pipeline_mode = #tpu.pipeline_mode<synchronous>, transform_indices = @transform_1, window_bounds = array<i64: 256, 128>}, {transform_indices = @transform_2, window_bounds = array<i64: 40, 128>}]} {
    %c0 = arith.constant 0 : index
    %c0_0 = arith.constant 0 : index
    %0 = vector.load %arg1[%c0, %c0_0] : memref<40x256xbf16, #tpu.memory_space<vmem>>, vector<40x256xbf16>
    %c0_1 = arith.constant 0 : index
    %c0_2 = arith.constant 0 : index
    %1 = vector.load %arg2[%c0_1, %c0_2] : memref<256x128xbf16, #tpu.memory_space<vmem>>, vector<256x128xbf16>
    %cst = arith.constant dense<0.000000e+00> : vector<40x128xf32>
    %2 = tpu.matmul %0, %1, %cst {dimension_numbers = #tpu.dot_dimension_numbers<[1], [0], [0], [1], [0, 0, 1, 1], [], []>} : vector<40x256xbf16>, vector<256x128xbf16>, vector<40x128xf32> -> vector<40x128xf32>
    %3 = arith.truncf %2 : vector<40x128xf32> to vector<40x128xbf16>
    %c0_3 = arith.constant 0 : index
    %c0_4 = arith.constant 0 : index
    %4 = vector.load %arg3[%c0_3, %c0_4] : memref<40x128xbf16, #tpu.memory_space<vmem>>, vector<40x128xbf16>
    tpu.vector_store %arg3[%c0_3, %c0_4], %3 {strides = array<i32>} : memref<40x128xbf16, #tpu.memory_space<vmem>>, vector<40x128xbf16>,
    return
  }
  func.func @transform_0(%arg0: i32) -> (i32, i32) {
    %c0_i32 = arith.constant 0 : i32
    %c0_i32_0 = arith.constant 0 : i32
    return %arg0, %c0_i32 : i32, i32
  }
  func.func @transform_1(%arg0: i32) -> (i32, i32) {
    %c0_i32 = arith.constant 0 : i32
    %c0_i32_0 = arith.constant 0 : i32
    %c0_i32_1 = arith.constant 0 : i32
    return %c0_i32, %c0_i32_0 : i32, i32
  }
  func.func @transform_2(%arg0: i32) -> (i32, i32) {
    %c0_i32 = arith.constant 0 : i32
    %c0_i32_0 = arith.constant 0 : i32
    return %arg0, %c0_i32 : i32, i32
  }
}

module attributes {stable_mosaic.version = 11 : i64} {
  func.func @_conv_kernel(%arg0: i32, %arg1: memref<32x128xbf16, #tpu.memory_space<vmem>>, %arg2: memref<128x128xbf16, #tpu.memory_space<vmem>>, %arg3: memref<32x128xbf16, #tpu.memory_space<vmem>>) attributes {dimension_semantics = [#tpu.dimension_semantics<parallel>], iteration_bounds = array<i64: 2>, scalar_prefetch = 0 : i64, scratch_operands = 0 : i64, tpu.core_type = #tpu.core_type<tc>, window_params = [{transform_indices = @transform_0, window_bounds = array<i64: 32, 128>}, {pipeline_mode = #tpu.pipeline_mode<synchronous>, transform_indices = @transform_1, window_bounds = array<i64: 128, 128>}, {transform_indices = @transform_2, window_bounds = array<i64: 32, 128>}]} {
    %c0 = arith.constant 0 : index
    %c0_0 = arith.constant 0 : index
    %0 = vector.load %arg1[%c0, %c0_0] : memref<32x128xbf16, #tpu.memory_space<vmem>>, vector<32x128xbf16>
    %c0_1 = arith.constant 0 : index
    %c0_2 = arith.constant 0 : index
    %1 = vector.load %arg2[%c0_1, %c0_2] : memref<128x128xbf16, #tpu.memory_space<vmem>>, vector<128x128xbf16>
    %cst = arith.constant dense<0.000000e+00> : vector<32x128xf32>
    %2 = tpu.matmul %0, %1, %cst {dimension_numbers = #tpu.dot_dimension_numbers<[1], [0], [0], [1], [0, 0, 1, 1], [], []>} : vector<32x128xbf16>, vector<128x128xbf16>, vector<32x128xf32> -> vector<32x128xf32>
    %3 = arith.truncf %2 : vector<32x128xf32> to vector<32x128xbf16>
    %c0_3 = arith.constant 0 : index
    %c0_4 = arith.constant 0 : index
    %4 = vector.load %arg3[%c0_3, %c0_4] : memref<32x128xbf16, #tpu.memory_space<vmem>>, vector<32x128xbf16>
    tpu.vector_store %arg3[%c0_3, %c0_4], %3 {strides = array<i32>} : memref<32x128xbf16, #tpu.memory_space<vmem>>, vector<32x128xbf16>,
    return
  }
  func.func @transform_0(%arg0: i32) -> (i32, i32) {
    %c0_i32 = arith.constant 0 : i32
    %c0_i32_0 = arith.constant 0 : i32
    return %arg0, %c0_i32 : i32, i32
  }
  func.func @transform_1(%arg0: i32) -> (i32, i32) {
    %c0_i32 = arith.constant 0 : i32
    %c0_i32_0 = arith.constant 0 : i32
    %c0_i32_1 = arith.constant 0 : i32
    return %c0_i32, %c0_i32_0 : i32, i32
  }
  func.func @transform_2(%arg0: i32) -> (i32, i32) {
    %c0_i32 = arith.constant 0 : i32
    %c0_i32_0 = arith.constant 0 : i32
    return %arg0, %c0_i32 : i32, i32
  }
}

module attributes {stable_mosaic.version = 11 : i64} {
  func.func @_bn_stats_kernel(%arg0: i32, %arg1: memref<32x128xbf16, #tpu.memory_space<vmem>>, %arg2: memref<1x128xf32, #tpu.memory_space<vmem>>, %arg3: memref<1x128xf32, #tpu.memory_space<vmem>>) attributes {dimension_semantics = [#tpu.dimension_semantics<arbitrary>], iteration_bounds = array<i64: 2>, scalar_prefetch = 0 : i64, scratch_operands = 0 : i64, tpu.core_type = #tpu.core_type<tc>, window_params = [{transform_indices = @transform_0, window_bounds = array<i64: 32, 128>}, {pipeline_mode = #tpu.pipeline_mode<synchronous>, transform_indices = @transform_1, window_bounds = array<i64: 1, 128>}, {pipeline_mode = #tpu.pipeline_mode<synchronous>, transform_indices = @transform_2, window_bounds = array<i64: 1, 128>}]} {
    %c0_i32 = arith.constant 0 : i32
    %0 = arith.cmpi eq, %arg0, %c0_i32 : i32
    %1 = arith.extui %0 : i1 to i32
    %c0_i32_0 = arith.constant 0 : i32
    %2 = arith.cmpi ne, %1, %c0_i32_0 : i32
    scf.if %2 {
      %cst_11 = arith.constant 0.000000e+00 : f32
      %16 = vector.broadcast %cst_11 : f32 to vector<1x128xf32>
      %c0_12 = arith.constant 0 : index
      %c0_13 = arith.constant 0 : index
      %17 = vector.load %arg2[%c0_12, %c0_13] : memref<1x128xf32, #tpu.memory_space<vmem>>, vector<1x128xf32>
      tpu.vector_store %arg2[%c0_12, %c0_13], %16 {strides = array<i32>} : memref<1x128xf32, #tpu.memory_space<vmem>>, vector<1x128xf32>,
      %cst_14 = arith.constant 0.000000e+00 : f32
      %18 = vector.broadcast %cst_14 : f32 to vector<1x128xf32>
      %c0_15 = arith.constant 0 : index
      %c0_16 = arith.constant 0 : index
      %19 = vector.load %arg3[%c0_15, %c0_16] : memref<1x128xf32, #tpu.memory_space<vmem>>, vector<1x128xf32>
      tpu.vector_store %arg3[%c0_15, %c0_16], %18 {strides = array<i32>} : memref<1x128xf32, #tpu.memory_space<vmem>>, vector<1x128xf32>,
    } else {
    }
    %c0 = arith.constant 0 : index
    %c0_1 = arith.constant 0 : index
    %3 = vector.load %arg1[%c0, %c0_1] : memref<32x128xbf16, #tpu.memory_space<vmem>>, vector<32x128xbf16>
    %4 = arith.extf %3 : vector<32x128xbf16> to vector<32x128xf32>
    %c0_2 = arith.constant 0 : index
    %c0_3 = arith.constant 0 : index
    %5 = vector.load %arg2[%c0_2, %c0_3] : memref<1x128xf32, #tpu.memory_space<vmem>>, vector<1x128xf32>
    %cst = arith.constant dense<0.000000e+00> : vector<128xf32>
    %6 = vector.multi_reduction <add>, %4, %cst [0] : vector<32x128xf32> to vector<128xf32>
    %7 = vector.shape_cast %6 : vector<128xf32> to vector<1x128xf32>
    %8 = arith.addf %5, %7 : vector<1x128xf32>
    %c0_4 = arith.constant 0 : index
    %c0_5 = arith.constant 0 : index
    %9 = vector.load %arg2[%c0_4, %c0_5] : memref<1x128xf32, #tpu.memory_space<vmem>>, vector<1x128xf32>
    tpu.vector_store %arg2[%c0_4, %c0_5], %8 {strides = array<i32>} : memref<1x128xf32, #tpu.memory_space<vmem>>, vector<1x128xf32>,
    %c0_6 = arith.constant 0 : index
    %c0_7 = arith.constant 0 : index
    %10 = vector.load %arg3[%c0_6, %c0_7] : memref<1x128xf32, #tpu.memory_space<vmem>>, vector<1x128xf32>
    %11 = arith.mulf %4, %4 : vector<32x128xf32>
    %cst_8 = arith.constant dense<0.000000e+00> : vector<128xf32>
    %12 = vector.multi_reduction <add>, %11, %cst_8 [0] : vector<32x128xf32> to vector<128xf32>
    %13 = vector.shape_cast %12 : vector<128xf32> to vector<1x128xf32>
    %14 = arith.addf %10, %13 : vector<1x128xf32>
    %c0_9 = arith.constant 0 : index
    %c0_10 = arith.constant 0 : index
    %15 = vector.load %arg3[%c0_9, %c0_10] : memref<1x128xf32, #tpu.memory_space<vmem>>, vector<1x128xf32>
    tpu.vector_store %arg3[%c0_9, %c0_10], %14 {strides = array<i32>} : memref<1x128xf32, #tpu.memory_space<vmem>>, vector<1x128xf32>,
    return
  }
  func.func @transform_0(%arg0: i32) -> (i32, i32) {
    %c0_i32 = arith.constant 0 : i32
    %c0_i32_0 = arith.constant 0 : i32
    return %arg0, %c0_i32 : i32, i32
  }
  func.func @transform_1(%arg0: i32) -> (i32, i32) {
    %c0_i32 = arith.constant 0 : i32
    %c0_i32_0 = arith.constant 0 : i32
    %c0_i32_1 = arith.constant 0 : i32
    return %c0_i32, %c0_i32_0 : i32, i32
  }
  func.func @transform_2(%arg0: i32) -> (i32, i32) {
    %c0_i32 = arith.constant 0 : i32
    %c0_i32_0 = arith.constant 0 : i32
    %c0_i32_1 = arith.constant 0 : i32
    return %c0_i32, %c0_i32_0 : i32, i32
  }
}

module attributes {stable_mosaic.version = 11 : i64} {
  func.func @kernel(%arg0: i32, %arg1: memref<32x128xbf16, #tpu.memory_space<vmem>>, %arg2: memref<1x128xf32, #tpu.memory_space<vmem>>, %arg3: memref<1x128xf32, #tpu.memory_space<vmem>>, %arg4: memref<32x128xbf16, #tpu.memory_space<vmem>>) attributes {dimension_semantics = [#tpu.dimension_semantics<parallel>], iteration_bounds = array<i64: 2>, scalar_prefetch = 0 : i64, scratch_operands = 0 : i64, tpu.core_type = #tpu.core_type<tc>, window_params = [{transform_indices = @transform_0, window_bounds = array<i64: 32, 128>}, {pipeline_mode = #tpu.pipeline_mode<synchronous>, transform_indices = @transform_1, window_bounds = array<i64: 1, 128>}, {pipeline_mode = #tpu.pipeline_mode<synchronous>, transform_indices = @transform_2, window_bounds = array<i64: 1, 128>}, {transform_indices = @transform_3, window_bounds = array<i64: 32, 128>}]} {
    %c0 = arith.constant 0 : index
    %c0_0 = arith.constant 0 : index
    %0 = vector.load %arg1[%c0, %c0_0] : memref<32x128xbf16, #tpu.memory_space<vmem>>, vector<32x128xbf16>
    %1 = arith.extf %0 : vector<32x128xbf16> to vector<32x128xf32>
    %c0_1 = arith.constant 0 : index
    %c0_2 = arith.constant 0 : index
    %2 = vector.load %arg2[%c0_1, %c0_2] : memref<1x128xf32, #tpu.memory_space<vmem>>, vector<1x128xf32>
    %3 = vector.broadcast %2 : vector<1x128xf32> to vector<32x128xf32>
    %4 = arith.mulf %1, %3 : vector<32x128xf32>
    %c0_3 = arith.constant 0 : index
    %c0_4 = arith.constant 0 : index
    %5 = vector.load %arg3[%c0_3, %c0_4] : memref<1x128xf32, #tpu.memory_space<vmem>>, vector<1x128xf32>
    %6 = vector.broadcast %5 : vector<1x128xf32> to vector<32x128xf32>
    %7 = arith.addf %4, %6 : vector<32x128xf32>
    %cst = arith.constant 0.000000e+00 : f32
    %8 = vector.broadcast %cst : f32 to vector<32x128xf32>
    %9 = arith.cmpf ogt, %7, %8 : vector<32x128xf32>
    %cst_5 = arith.constant 0.000000e+00 : f32
    %10 = vector.broadcast %cst_5 : f32 to vector<32x128xf32>
    %11 = arith.mulf %10, %7 : vector<32x128xf32>
    %12 = arith.select %9, %7, %11 : vector<32x128xi1>, vector<32x128xf32>
    %c32_i32 = arith.constant 32 : i32
    %13 = arith.muli %arg0, %c32_i32 : i32
    %14 = tpu.iota {dimensions = array<i32: 0>} : vector<32x128xi32>
    %15 = vector.broadcast %13 : i32 to vector<32x128xi32>
    %16 = arith.addi %15, %14 : vector<32x128xi32>
    %c63_i32 = arith.constant 63 : i32
    %17 = vector.broadcast %c63_i32 : i32 to vector<32x128xi32>
    %18 = arith.cmpi slt, %16, %17 : vector<32x128xi32>
    %cst_6 = arith.constant 0.000000e+00 : f32
    %19 = vector.broadcast %cst_6 : f32 to vector<32x128xf32>
    %20 = arith.select %18, %12, %19 : vector<32x128xi1>, vector<32x128xf32>
    %21 = arith.truncf %20 : vector<32x128xf32> to vector<32x128xbf16>
    %c0_7 = arith.constant 0 : index
    %c0_8 = arith.constant 0 : index
    %22 = vector.load %arg4[%c0_7, %c0_8] : memref<32x128xbf16, #tpu.memory_space<vmem>>, vector<32x128xbf16>
    tpu.vector_store %arg4[%c0_7, %c0_8], %21 {strides = array<i32>} : memref<32x128xbf16, #tpu.memory_space<vmem>>, vector<32x128xbf16>,
    return
  }
  func.func @transform_0(%arg0: i32) -> (i32, i32) {
    %c0_i32 = arith.constant 0 : i32
    %c0_i32_0 = arith.constant 0 : i32
    return %arg0, %c0_i32 : i32, i32
  }
  func.func @transform_1(%arg0: i32) -> (i32, i32) {
    %c0_i32 = arith.constant 0 : i32
    %c0_i32_0 = arith.constant 0 : i32
    %c0_i32_1 = arith.constant 0 : i32
    return %c0_i32, %c0_i32_0 : i32, i32
  }
  func.func @transform_2(%arg0: i32) -> (i32, i32) {
    %c0_i32 = arith.constant 0 : i32
    %c0_i32_0 = arith.constant 0 : i32
    %c0_i32_1 = arith.constant 0 : i32
    return %c0_i32, %c0_i32_0 : i32, i32
  }
  func.func @transform_3(%arg0: i32) -> (i32, i32) {
    %c0_i32 = arith.constant 0 : i32
    %c0_i32_0 = arith.constant 0 : i32
    return %arg0, %c0_i32 : i32, i32
  }
}

module attributes {stable_mosaic.version = 11 : i64} {
  func.func @_conv_kernel(%arg0: i32, %arg1: memref<32x512xbf16, #tpu.memory_space<vmem>>, %arg2: memref<512x128xbf16, #tpu.memory_space<vmem>>, %arg3: memref<32x128xbf16, #tpu.memory_space<vmem>>) attributes {dimension_semantics = [#tpu.dimension_semantics<parallel>], iteration_bounds = array<i64: 2>, scalar_prefetch = 0 : i64, scratch_operands = 0 : i64, tpu.core_type = #tpu.core_type<tc>, window_params = [{transform_indices = @transform_0, window_bounds = array<i64: 32, 512>}, {pipeline_mode = #tpu.pipeline_mode<synchronous>, transform_indices = @transform_1, window_bounds = array<i64: 512, 128>}, {transform_indices = @transform_2, window_bounds = array<i64: 32, 128>}]} {
    %c0 = arith.constant 0 : index
    %c0_0 = arith.constant 0 : index
    %0 = vector.load %arg1[%c0, %c0_0] : memref<32x512xbf16, #tpu.memory_space<vmem>>, vector<32x512xbf16>
    %c0_1 = arith.constant 0 : index
    %c0_2 = arith.constant 0 : index
    %1 = vector.load %arg2[%c0_1, %c0_2] : memref<512x128xbf16, #tpu.memory_space<vmem>>, vector<512x128xbf16>
    %cst = arith.constant dense<0.000000e+00> : vector<32x128xf32>
    %2 = tpu.matmul %0, %1, %cst {dimension_numbers = #tpu.dot_dimension_numbers<[1], [0], [0], [1], [0, 0, 1, 1], [], []>} : vector<32x512xbf16>, vector<512x128xbf16>, vector<32x128xf32> -> vector<32x128xf32>
    %3 = arith.truncf %2 : vector<32x128xf32> to vector<32x128xbf16>
    %c0_3 = arith.constant 0 : index
    %c0_4 = arith.constant 0 : index
    %4 = vector.load %arg3[%c0_3, %c0_4] : memref<32x128xbf16, #tpu.memory_space<vmem>>, vector<32x128xbf16>
    tpu.vector_store %arg3[%c0_3, %c0_4], %3 {strides = array<i32>} : memref<32x128xbf16, #tpu.memory_space<vmem>>, vector<32x128xbf16>,
    return
  }
  func.func @transform_0(%arg0: i32) -> (i32, i32) {
    %c0_i32 = arith.constant 0 : i32
    %c0_i32_0 = arith.constant 0 : i32
    return %arg0, %c0_i32 : i32, i32
  }
  func.func @transform_1(%arg0: i32) -> (i32, i32) {
    %c0_i32 = arith.constant 0 : i32
    %c0_i32_0 = arith.constant 0 : i32
    %c0_i32_1 = arith.constant 0 : i32
    return %c0_i32, %c0_i32_0 : i32, i32
  }
  func.func @transform_2(%arg0: i32) -> (i32, i32) {
    %c0_i32 = arith.constant 0 : i32
    %c0_i32_0 = arith.constant 0 : i32
    return %arg0, %c0_i32 : i32, i32
  }
}

module attributes {stable_mosaic.version = 11 : i64} {
  func.func @kernel(%arg0: i32, %arg1: memref<32x128xbf16, #tpu.memory_space<vmem>>, %arg2: memref<1x128xf32, #tpu.memory_space<vmem>>, %arg3: memref<1x128xf32, #tpu.memory_space<vmem>>, %arg4: memref<32x128xbf16, #tpu.memory_space<vmem>>) attributes {dimension_semantics = [#tpu.dimension_semantics<parallel>], iteration_bounds = array<i64: 2>, scalar_prefetch = 0 : i64, scratch_operands = 0 : i64, tpu.core_type = #tpu.core_type<tc>, window_params = [{transform_indices = @transform_0, window_bounds = array<i64: 32, 128>}, {pipeline_mode = #tpu.pipeline_mode<synchronous>, transform_indices = @transform_1, window_bounds = array<i64: 1, 128>}, {pipeline_mode = #tpu.pipeline_mode<synchronous>, transform_indices = @transform_2, window_bounds = array<i64: 1, 128>}, {transform_indices = @transform_3, window_bounds = array<i64: 32, 128>}]} {
    %c0 = arith.constant 0 : index
    %c0_0 = arith.constant 0 : index
    %0 = vector.load %arg1[%c0, %c0_0] : memref<32x128xbf16, #tpu.memory_space<vmem>>, vector<32x128xbf16>
    %1 = arith.extf %0 : vector<32x128xbf16> to vector<32x128xf32>
    %c0_1 = arith.constant 0 : index
    %c0_2 = arith.constant 0 : index
    %2 = vector.load %arg2[%c0_1, %c0_2] : memref<1x128xf32, #tpu.memory_space<vmem>>, vector<1x128xf32>
    %3 = vector.broadcast %2 : vector<1x128xf32> to vector<32x128xf32>
    %4 = arith.mulf %1, %3 : vector<32x128xf32>
    %c0_3 = arith.constant 0 : index
    %c0_4 = arith.constant 0 : index
    %5 = vector.load %arg3[%c0_3, %c0_4] : memref<1x128xf32, #tpu.memory_space<vmem>>, vector<1x128xf32>
    %6 = vector.broadcast %5 : vector<1x128xf32> to vector<32x128xf32>
    %7 = arith.addf %4, %6 : vector<32x128xf32>
    %cst = arith.constant 0.000000e+00 : f32
    %8 = vector.broadcast %cst : f32 to vector<32x128xf32>
    %9 = arith.cmpf ogt, %7, %8 : vector<32x128xf32>
    %cst_5 = arith.constant 0.000000e+00 : f32
    %10 = vector.broadcast %cst_5 : f32 to vector<32x128xf32>
    %11 = arith.mulf %10, %7 : vector<32x128xf32>
    %12 = arith.select %9, %7, %11 : vector<32x128xi1>, vector<32x128xf32>
    %c32_i32 = arith.constant 32 : i32
    %13 = arith.muli %arg0, %c32_i32 : i32
    %14 = tpu.iota {dimensions = array<i32: 0>} : vector<32x128xi32>
    %15 = vector.broadcast %13 : i32 to vector<32x128xi32>
    %16 = arith.addi %15, %14 : vector<32x128xi32>
    %c48_i32 = arith.constant 48 : i32
    %17 = vector.broadcast %c48_i32 : i32 to vector<32x128xi32>
    %18 = arith.cmpi slt, %16, %17 : vector<32x128xi32>
    %cst_6 = arith.constant 0.000000e+00 : f32
    %19 = vector.broadcast %cst_6 : f32 to vector<32x128xf32>
    %20 = arith.select %18, %12, %19 : vector<32x128xi1>, vector<32x128xf32>
    %21 = arith.truncf %20 : vector<32x128xf32> to vector<32x128xbf16>
    %c0_7 = arith.constant 0 : index
    %c0_8 = arith.constant 0 : index
    %22 = vector.load %arg4[%c0_7, %c0_8] : memref<32x128xbf16, #tpu.memory_space<vmem>>, vector<32x128xbf16>
    tpu.vector_store %arg4[%c0_7, %c0_8], %21 {strides = array<i32>} : memref<32x128xbf16, #tpu.memory_space<vmem>>, vector<32x128xbf16>,
    return
  }
  func.func @transform_0(%arg0: i32) -> (i32, i32) {
    %c0_i32 = arith.constant 0 : i32
    %c0_i32_0 = arith.constant 0 : i32
    return %arg0, %c0_i32 : i32, i32
  }
  func.func @transform_1(%arg0: i32) -> (i32, i32) {
    %c0_i32 = arith.constant 0 : i32
    %c0_i32_0 = arith.constant 0 : i32
    %c0_i32_1 = arith.constant 0 : i32
    return %c0_i32, %c0_i32_0 : i32, i32
  }
  func.func @transform_2(%arg0: i32) -> (i32, i32) {
    %c0_i32 = arith.constant 0 : i32
    %c0_i32_0 = arith.constant 0 : i32
    %c0_i32_1 = arith.constant 0 : i32
    return %c0_i32, %c0_i32_0 : i32, i32
  }
  func.func @transform_3(%arg0: i32) -> (i32, i32) {
    %c0_i32 = arith.constant 0 : i32
    %c0_i32_0 = arith.constant 0 : i32
    return %arg0, %c0_i32 : i32, i32
  }
}

module attributes {stable_mosaic.version = 11 : i64} {
  func.func @_conv_kernel(%arg0: i32, %arg1: memref<32x768xbf16, #tpu.memory_space<vmem>>, %arg2: memref<768x128xbf16, #tpu.memory_space<vmem>>, %arg3: memref<32x128xbf16, #tpu.memory_space<vmem>>) attributes {dimension_semantics = [#tpu.dimension_semantics<parallel>], iteration_bounds = array<i64: 2>, scalar_prefetch = 0 : i64, scratch_operands = 0 : i64, tpu.core_type = #tpu.core_type<tc>, window_params = [{transform_indices = @transform_0, window_bounds = array<i64: 32, 768>}, {pipeline_mode = #tpu.pipeline_mode<synchronous>, transform_indices = @transform_1, window_bounds = array<i64: 768, 128>}, {transform_indices = @transform_2, window_bounds = array<i64: 32, 128>}]} {
    %c0 = arith.constant 0 : index
    %c0_0 = arith.constant 0 : index
    %0 = vector.load %arg1[%c0, %c0_0] : memref<32x768xbf16, #tpu.memory_space<vmem>>, vector<32x768xbf16>
    %c0_1 = arith.constant 0 : index
    %c0_2 = arith.constant 0 : index
    %1 = vector.load %arg2[%c0_1, %c0_2] : memref<768x128xbf16, #tpu.memory_space<vmem>>, vector<768x128xbf16>
    %cst = arith.constant dense<0.000000e+00> : vector<32x128xf32>
    %2 = tpu.matmul %0, %1, %cst {dimension_numbers = #tpu.dot_dimension_numbers<[1], [0], [0], [1], [0, 0, 1, 1], [], []>} : vector<32x768xbf16>, vector<768x128xbf16>, vector<32x128xf32> -> vector<32x128xf32>
    %3 = arith.truncf %2 : vector<32x128xf32> to vector<32x128xbf16>
    %c0_3 = arith.constant 0 : index
    %c0_4 = arith.constant 0 : index
    %4 = vector.load %arg3[%c0_3, %c0_4] : memref<32x128xbf16, #tpu.memory_space<vmem>>, vector<32x128xbf16>
    tpu.vector_store %arg3[%c0_3, %c0_4], %3 {strides = array<i32>} : memref<32x128xbf16, #tpu.memory_space<vmem>>, vector<32x128xbf16>,
    return
  }
  func.func @transform_0(%arg0: i32) -> (i32, i32) {
    %c0_i32 = arith.constant 0 : i32
    %c0_i32_0 = arith.constant 0 : i32
    return %arg0, %c0_i32 : i32, i32
  }
  func.func @transform_1(%arg0: i32) -> (i32, i32) {
    %c0_i32 = arith.constant 0 : i32
    %c0_i32_0 = arith.constant 0 : i32
    %c0_i32_1 = arith.constant 0 : i32
    return %c0_i32, %c0_i32_0 : i32, i32
  }
  func.func @transform_2(%arg0: i32) -> (i32, i32) {
    %c0_i32 = arith.constant 0 : i32
    %c0_i32_0 = arith.constant 0 : i32
    return %arg0, %c0_i32 : i32, i32
  }
}

module attributes {stable_mosaic.version = 11 : i64} {
  func.func @_conv_kernel(%arg0: i32, %arg1: memref<32x384xbf16, #tpu.memory_space<vmem>>, %arg2: memref<384x128xbf16, #tpu.memory_space<vmem>>, %arg3: memref<32x128xbf16, #tpu.memory_space<vmem>>) attributes {dimension_semantics = [#tpu.dimension_semantics<parallel>], iteration_bounds = array<i64: 2>, scalar_prefetch = 0 : i64, scratch_operands = 0 : i64, tpu.core_type = #tpu.core_type<tc>, window_params = [{transform_indices = @transform_0, window_bounds = array<i64: 32, 384>}, {pipeline_mode = #tpu.pipeline_mode<synchronous>, transform_indices = @transform_1, window_bounds = array<i64: 384, 128>}, {transform_indices = @transform_2, window_bounds = array<i64: 32, 128>}]} {
    %c0 = arith.constant 0 : index
    %c0_0 = arith.constant 0 : index
    %0 = vector.load %arg1[%c0, %c0_0] : memref<32x384xbf16, #tpu.memory_space<vmem>>, vector<32x384xbf16>
    %c0_1 = arith.constant 0 : index
    %c0_2 = arith.constant 0 : index
    %1 = vector.load %arg2[%c0_1, %c0_2] : memref<384x128xbf16, #tpu.memory_space<vmem>>, vector<384x128xbf16>
    %cst = arith.constant dense<0.000000e+00> : vector<32x128xf32>
    %2 = tpu.matmul %0, %1, %cst {dimension_numbers = #tpu.dot_dimension_numbers<[1], [0], [0], [1], [0, 0, 1, 1], [], []>} : vector<32x384xbf16>, vector<384x128xbf16>, vector<32x128xf32> -> vector<32x128xf32>
    %3 = arith.truncf %2 : vector<32x128xf32> to vector<32x128xbf16>
    %c0_3 = arith.constant 0 : index
    %c0_4 = arith.constant 0 : index
    %4 = vector.load %arg3[%c0_3, %c0_4] : memref<32x128xbf16, #tpu.memory_space<vmem>>, vector<32x128xbf16>
    tpu.vector_store %arg3[%c0_3, %c0_4], %3 {strides = array<i32>} : memref<32x128xbf16, #tpu.memory_space<vmem>>, vector<32x128xbf16>,
    return
  }
  func.func @transform_0(%arg0: i32) -> (i32, i32) {
    %c0_i32 = arith.constant 0 : i32
    %c0_i32_0 = arith.constant 0 : i32
    return %arg0, %c0_i32 : i32, i32
  }
  func.func @transform_1(%arg0: i32) -> (i32, i32) {
    %c0_i32 = arith.constant 0 : i32
    %c0_i32_0 = arith.constant 0 : i32
    %c0_i32_1 = arith.constant 0 : i32
    return %c0_i32, %c0_i32_0 : i32, i32
  }
  func.func @transform_2(%arg0: i32) -> (i32, i32) {
    %c0_i32 = arith.constant 0 : i32
    %c0_i32_0 = arith.constant 0 : i32
    return %arg0, %c0_i32 : i32, i32
  }
}

module attributes {stable_mosaic.version = 11 : i64} {
  func.func @_conv_kernel(%arg0: i32, %arg1: memref<32x896xbf16, #tpu.memory_space<vmem>>, %arg2: memref<896x128xbf16, #tpu.memory_space<vmem>>, %arg3: memref<32x128xbf16, #tpu.memory_space<vmem>>) attributes {dimension_semantics = [#tpu.dimension_semantics<parallel>], iteration_bounds = array<i64: 2>, scalar_prefetch = 0 : i64, scratch_operands = 0 : i64, tpu.core_type = #tpu.core_type<tc>, window_params = [{transform_indices = @transform_0, window_bounds = array<i64: 32, 896>}, {pipeline_mode = #tpu.pipeline_mode<synchronous>, transform_indices = @transform_1, window_bounds = array<i64: 896, 128>}, {transform_indices = @transform_2, window_bounds = array<i64: 32, 128>}]} {
    %c0 = arith.constant 0 : index
    %c0_0 = arith.constant 0 : index
    %0 = vector.load %arg1[%c0, %c0_0] : memref<32x896xbf16, #tpu.memory_space<vmem>>, vector<32x896xbf16>
    %c0_1 = arith.constant 0 : index
    %c0_2 = arith.constant 0 : index
    %1 = vector.load %arg2[%c0_1, %c0_2] : memref<896x128xbf16, #tpu.memory_space<vmem>>, vector<896x128xbf16>
    %cst = arith.constant dense<0.000000e+00> : vector<32x128xf32>
    %2 = tpu.matmul %0, %1, %cst {dimension_numbers = #tpu.dot_dimension_numbers<[1], [0], [0], [1], [0, 0, 1, 1], [], []>} : vector<32x896xbf16>, vector<896x128xbf16>, vector<32x128xf32> -> vector<32x128xf32>
    %3 = arith.truncf %2 : vector<32x128xf32> to vector<32x128xbf16>
    %c0_3 = arith.constant 0 : index
    %c0_4 = arith.constant 0 : index
    %4 = vector.load %arg3[%c0_3, %c0_4] : memref<32x128xbf16, #tpu.memory_space<vmem>>, vector<32x128xbf16>
    tpu.vector_store %arg3[%c0_3, %c0_4], %3 {strides = array<i32>} : memref<32x128xbf16, #tpu.memory_space<vmem>>, vector<32x128xbf16>,
    return
  }
  func.func @transform_0(%arg0: i32) -> (i32, i32) {
    %c0_i32 = arith.constant 0 : i32
    %c0_i32_0 = arith.constant 0 : i32
    return %arg0, %c0_i32 : i32, i32
  }
  func.func @transform_1(%arg0: i32) -> (i32, i32) {
    %c0_i32 = arith.constant 0 : i32
    %c0_i32_0 = arith.constant 0 : i32
    %c0_i32_1 = arith.constant 0 : i32
    return %c0_i32, %c0_i32_0 : i32, i32
  }
  func.func @transform_2(%arg0: i32) -> (i32, i32) {
    %c0_i32 = arith.constant 0 : i32
    %c0_i32_0 = arith.constant 0 : i32
    return %arg0, %c0_i32 : i32, i32
  }
}

module attributes {stable_mosaic.version = 11 : i64} {
  func.func @_conv_kernel(%arg0: i32, %arg1: memref<40x512xbf16, #tpu.memory_space<vmem>>, %arg2: memref<512x128xbf16, #tpu.memory_space<vmem>>, %arg3: memref<40x128xbf16, #tpu.memory_space<vmem>>) attributes {dimension_semantics = [#tpu.dimension_semantics<parallel>], iteration_bounds = array<i64: 2>, scalar_prefetch = 0 : i64, scratch_operands = 0 : i64, tpu.core_type = #tpu.core_type<tc>, window_params = [{transform_indices = @transform_0, window_bounds = array<i64: 40, 512>}, {pipeline_mode = #tpu.pipeline_mode<synchronous>, transform_indices = @transform_1, window_bounds = array<i64: 512, 128>}, {transform_indices = @transform_2, window_bounds = array<i64: 40, 128>}]} {
    %c0 = arith.constant 0 : index
    %c0_0 = arith.constant 0 : index
    %0 = vector.load %arg1[%c0, %c0_0] : memref<40x512xbf16, #tpu.memory_space<vmem>>, vector<40x512xbf16>
    %c0_1 = arith.constant 0 : index
    %c0_2 = arith.constant 0 : index
    %1 = vector.load %arg2[%c0_1, %c0_2] : memref<512x128xbf16, #tpu.memory_space<vmem>>, vector<512x128xbf16>
    %cst = arith.constant dense<0.000000e+00> : vector<40x128xf32>
    %2 = tpu.matmul %0, %1, %cst {dimension_numbers = #tpu.dot_dimension_numbers<[1], [0], [0], [1], [0, 0, 1, 1], [], []>} : vector<40x512xbf16>, vector<512x128xbf16>, vector<40x128xf32> -> vector<40x128xf32>
    %3 = arith.truncf %2 : vector<40x128xf32> to vector<40x128xbf16>
    %c0_3 = arith.constant 0 : index
    %c0_4 = arith.constant 0 : index
    %4 = vector.load %arg3[%c0_3, %c0_4] : memref<40x128xbf16, #tpu.memory_space<vmem>>, vector<40x128xbf16>
    tpu.vector_store %arg3[%c0_3, %c0_4], %3 {strides = array<i32>} : memref<40x128xbf16, #tpu.memory_space<vmem>>, vector<40x128xbf16>,
    return
  }
  func.func @transform_0(%arg0: i32) -> (i32, i32) {
    %c0_i32 = arith.constant 0 : i32
    %c0_i32_0 = arith.constant 0 : i32
    return %arg0, %c0_i32 : i32, i32
  }
  func.func @transform_1(%arg0: i32) -> (i32, i32) {
    %c0_i32 = arith.constant 0 : i32
    %c0_i32_0 = arith.constant 0 : i32
    %c0_i32_1 = arith.constant 0 : i32
    return %c0_i32, %c0_i32_0 : i32, i32
  }
  func.func @transform_2(%arg0: i32) -> (i32, i32) {
    %c0_i32 = arith.constant 0 : i32
    %c0_i32_0 = arith.constant 0 : i32
    return %arg0, %c0_i32 : i32, i32
  }
}

</mosaic_0001>

<bundles_post_ra>
// kernel: forward.31
= control target key start
LH: loop header
LB: loop body
LE: loop exit
PB: predicated region body
PF: predicated region fallthrough
CT: control target
= control target key end

     0   :  { %s260_s9 = smov 0   ;;  %s292_s0 = inlined_call_operand.vmem [shape: bf16[80,128], index: 0, kind: input, shape index: {}]   ;;  %s293_s1 = inlined_call_operand.vmem [shape: f32[1,128], index: 1, kind: output, shape index: {0}]   ;;  %s294_s2 = inlined_call_operand.vmem [shape: f32[1,128], index: 2, kind: output, shape index: {1}]  }
   0x1 LB: > { %s210_s10 = sadd.s32 4294967295, %s242_s9   ;;  %p213_p0 = scmp.ge.s32.totalorder %s242_s9, 1  ;;  %s242_s9 = sphi %s260_s9, %s13_s9  }
   0x2   : > { %p106_p1 = scmp.lt.s32.totalorder %s242_s9, 3 }
   0x4   : > { %p107_p2 = pnand %p213_p0, %p106_p1 }
   0x5   : > { %s123_s11 = smul.u32 (!%p107_p2), 5, %s210_s10  ;;  %p215_p4 = scmp.ne.s32.totalorder (!%p107_p2), %s210_s10, 0 }
   0x6   : > { %110 = sbr.rel (%p107_p2) target bundleno = 48 (0x30), region = 24 }
   0x7   : > { %p124_p3 = scmp.lt.s32.totalorder (!%p107_p2), %s123_s11, 9 }
   0xd   : > { %s296_s11 = smov (!%p124_p3, %s123_s11), 9  ;;  %132 = sbr.rel (%p215_p4) target bundleno = 20 (0x14), region = 28 }
   0xe   : > { %s214_s12 = sshll.u32 %s296_s11, 2  ;;  %v244_v0 = vmov (!%p215_p4), 0.0  }
   0xf   : > { %s127_s15 = scalar_lea.vmem %s292_s0, %s214_s12  ;;  %133 = vst [vmem:[%s293_s1] sm:$0x1] (!%p215_p4), %v244_v0  ;;  %134 = vst [vmem:[%s294_s2] sm:$0x1] (!%p215_p4), %v244_v0 }
  0x14 PF: > { %v219_v1 = vld [vmem:[%s127_s15] sm:$0xff]   ;;  %v226_v2 = vld [vmem:[%s127_s15 + $0x8] sm:$0xff]   ;;  %v139_v3 = vld [vmem:[%s127_s15 + $0x10] sm:$0xf] }
  0x15   : > { %v220_v4 = vunpack.c.l.bf16 %v219_v1  ;;  %v221_v5 = vunpack.c.h.bf16 %v219_v1  ;;  %v224_v6 = vunpack.c.l.bf16 %v226_v2  ;;  %v225_v7 = vunpack.c.h.bf16 %v226_v2 }
  0x16   : > { %v144_v8 = vunpack.c.l.bf16 %v139_v3  ;;  %v145_v31 = vld [vmem:[%s293_s1] sm:$0x1] }
  0x17   : > { %v146_v9 = vadd.f32 %v221_v5, %v220_v4  ;;  %v159_v10 = vmul.f32 %v220_v4, %v220_v4  ;;  %v160_v11 = vmul.f32 %v221_v5, %v221_v5  ;;  %v161_v12 = vmul.f32 %v224_v6, %v224_v6  ;;  %v158_v34 = vld [vmem:[%s294_s2] sm:$0x1] }
  0x18   : > { %v162_v14 = vmul.f32 %v225_v7, %v225_v7  ;;  %v163_v17 = vmul.f32 %v144_v8, %v144_v8 }
  0x19   : > { %v147_v13 = vadd.f32 %v224_v6, %v146_v9  ;;  %v164_v15 = vadd.f32 %v160_v11, %v159_v10 }
  0x1b   : > { %v148_v16 = vadd.f32 %v225_v7, %v147_v13  ;;  %v165_v18 = vadd.f32 %v164_v15, %v161_v12 }
  0x1d   : > { %v149_v19 = vadd.f32 %v148_v16, %v144_v8  ;;  %v166_v20 = vadd.f32 %v165_v18, %v162_v14 }
  0x1f   : > { %v150_v21 = vrot.slane %v149_v19, 4  ;;  %v167_v22 = vadd.f32 %v166_v20, %v163_v17 }
  0x21   : > { %v151_v23 = vadd.f32 %v150_v21, %v149_v19  ;;  %v168_v24 = vrot.slane %v167_v22, 4 }
  0x23   : > { %v152_v25 = vrot.slane %v151_v23, 2  ;;  %v169_v26 = vadd.f32 %v168_v24, %v167_v22 }
  0x25   : > { %v153_v27 = vadd.f32 %v152_v25, %v151_v23  ;;  %v170_v28 = vrot.slane %v169_v26, 2 }
  0x27   : > { %v154_v29 = vrot.slane %v153_v27, 1  ;;  %v171_v30 = vadd.f32 %v170_v28, %v169_v26 }
  0x29   : > { %v155_v32 = vadd.f32 %v154_v29, %v153_v27  ;;  %v172_v33 = vrot.slane %v171_v30, 1 }
  0x2b   : > { %v156_v35 = vadd.f32 %v155_v32, %v145_v31  ;;  %v173_v36 = vadd.f32 %v172_v33, %v171_v30 }
  0x2d   : > { %157 = vst [vmem:[%s293_s1] sm:$0x1] %v156_v35  ;;  %v174_v37 = vadd.f32 %v173_v36, %v158_v34 }
  0x2f   : > { %175 = vst [vmem:[%s294_s2] sm:$0x1] %v174_v37 }
  0x30 PF: > { %s13_s9 = sadd.s32 1, %s242_s9  }
  0x31   : > { %p10_p5 = scmp.ge.s32.totalorder %s13_s9, 4  }
  0x33   :  { %12 = sbr.rel (!%p10_p5) target bundleno = 1 (0x1), region = 62 }

// kernel: forward.30
= control target key start
LH: loop header
LB: loop body
LE: loop exit
PB: predicated region body
PF: predicated region fallthrough
CT: control target
= control target key end

     0   :  { %s513_s9 = smov 0   ;;  %s569_s0 = inlined_call_operand.vmem [shape: bf16[80,128], index: 0, kind: input, shape index: {}]   ;;  %s570_s1 = inlined_call_operand.vmem [shape: bf16[128,128], index: 1, kind: input, shape index: {}]   ;;  %s571_s2 = inlined_call_operand.vmem [shape: bf16[80,128], index: 2, kind: output, shape index: {}]  }
   0x1 LB: > { %s371_s10 = sadd.s32 4294967295, %s494_s9   ;;  %p375_p0 = scmp.ge.s32.totalorder %s494_s9, 1  ;;  %s494_s9 = sphi %s513_s9, %s12_s9  }
   0x2   : > { %p113_p1 = scmp.lt.s32.totalorder %s494_s9, 3 }
   0x4   : > { %p114_p2 = pnand %p375_p0, %p113_p1 }
   0x5   : > { %v477_v0 = vld [vmem:[%s570_s1] sm:$0xff] (!%p114_p2)   ;;  %v496_v1 = vmov (!%p114_p2), 0.0   ;;  %v478_v2 = vld [vmem:[%s570_s1 + $0x8] sm:$0xff] (!%p114_p2)   ;;  %s135_s15 = smul.u32 (!%p114_p2), 5, %s371_s10  ;;  %vm497_vm0 = vmmov (!%p114_p2), 0   ;;  %v479_v3 = vld [vmem:[%s570_s1 + $0x10] sm:$0xff] (!%p114_p2)  }
   0x6   : > { %117 = sbr.rel (%p114_p2) target bundleno = 261 (0x105), region = 28  ;;  %451 = vmatprep.subr.bf16.mxu1 (!%p114_p2), %v496_v1  ;;  %423 = vmatprep.subr.bf16.mxu0 (!%p114_p2), %v496_v1  ;;  %v480_v4 = vld [vmem:[%s570_s1 + $0x18] sm:$0xff] (!%p114_p2)   ;;  %v481_v5 = vld [vmem:[%s570_s1 + $0x20] sm:$0xff] (!%p114_p2)   ;;  %v482_v6 = vld [vmem:[%s570_s1 + $0x28] sm:$0xff] (!%p114_p2)  }
   0x7   : > { %459 = vmatpush3.bf16.msra.mxu1 (!%p114_p2), %v477_v0  ;;  %424 = vmatpush3.bf16.msra.mxu0 (!%p114_p2), %v477_v0  ;;  %p136_p3 = scmp.lt.s32.totalorder (!%p114_p2), %s135_s15, 9  ;;  %v483_v7 = vld [vmem:[%s570_s1 + $0x30] sm:$0xff] (!%p114_p2)   ;;  %v484_v8 = vld [vmem:[%s570_s1 + $0x38] sm:$0xff] (!%p114_p2)  }
   0x8   : > { %452 = vmatprep.subr.bf16.mxu1 (!%p114_p2), %v496_v1  ;;  %425 = vmatprep.subr.bf16.mxu0 (!%p114_p2), %v496_v1 }
   0x9   : > { %443 = vmatprep.mubr.msk.bf16.mxu1 (!%p114_p2), %vm497_vm0, %v496_v1  ;;  %439 = vmatprep.mubr.msk.bf16.mxu0 (!%p114_p2), %vm497_vm0, %v496_v1 }
   0xb   : > { %460 = vmatpush3.bf16.msra.mxu1 (!%p114_p2), %v478_v2  ;;  %426 = vmatpush3.bf16.msra.mxu0 (!%p114_p2), %v478_v2 }
   0xc   : > { %453 = vmatprep.subr.bf16.mxu1 (!%p114_p2), %v496_v1  ;;  %427 = vmatprep.subr.bf16.mxu0 (!%p114_p2), %v496_v1 }
   0xd   : > { %s573_s15 = smov (!%p136_p3, %s135_s15), 9 }
   0xe   : > { %s376_s18 = sshll.u32 %s573_s15, 2 }
   0xf   : > { %s540_s21 = scalar_lea.vmem %s569_s0, %s376_s18  ;;  %461 = vmatpush3.bf16.msra.mxu1 %v479_v3  ;;  %428 = vmatpush3.bf16.msra.mxu0 %v479_v3  ;;  %s145_s6 = scalar_lea.vmem %s571_s2, %s376_s18 }
  0x10   : > { %454 = vmatprep.subr.bf16.mxu1 %v496_v1  ;;  %429 = vmatprep.subr.bf16.mxu0 %v496_v1  ;;  %v485_v9 = vld [vmem:[%s540_s21 + $0x8] sm:$0xff]   ;;  %v486_v10 = vld [vmem:[%s540_s21] sm:$0xff]   ;;  %v487_v11 = vld [vmem:[%s540_s21 + $0x10] ss:$0 sps:$4 sm:$0xff]  }
  0x13   : > { %462 = vmatpush3.bf16.msra.mxu1 %v480_v4  ;;  %430 = vmatpush3.bf16.msra.mxu0 %v480_v4 }
  0x14   : > { %455 = vmatprep.subr.bf16.mxu1 %v496_v1  ;;  %431 = vmatprep.subr.bf16.mxu0 %v496_v1 }
  0x17   : > { %463 = vmatpush3.bf16.msra.mxu1 %v481_v5  ;;  %432 = vmatpush3.bf16.msra.mxu0 %v481_v5 }
  0x18   : > { %456 = vmatprep.subr.bf16.mxu1 %v496_v1  ;;  %433 = vmatprep.subr.bf16.mxu0 %v496_v1 }
  0x1b   : > { %464 = vmatpush3.bf16.msra.mxu1 %v482_v6  ;;  %434 = vmatpush3.bf16.msra.mxu0 %v482_v6 }
  0x1c   : > { %457 = vmatprep.subr.bf16.mxu1 %v496_v1  ;;  %435 = vmatprep.subr.bf16.mxu0 %v496_v1 }
  0x1f   : > { %465 = vmatpush3.bf16.msra.mxu1 %v483_v7  ;;  %436 = vmatpush3.bf16.msra.mxu0 %v483_v7 }
  0x20   : > { %458 = vmatprep.subr.bf16.mxu1 %v496_v1  ;;  %437 = vmatprep.subr.bf16.mxu0 %v496_v1 }
  0x23   : > { %466 = vmatpush3.bf16.msra.mxu1 %v484_v8  ;;  %438 = vmatpush3.bf16.msra.mxu0 %v484_v8 }
  0x26   : > { %444 = vmatmul.mubr.bf16.vlgmr.msra.gmra.mrb[0].mxu1 %v485_v9  ;;  %440 = vmatmul.mubr.bf16.vlgmr.msra.gmra.mrb[0].mxu0 %v486_v10 }
  0x27   : > { %447 = vmatprep.mubr.msk.bf16.mxu1 %vm497_vm0, %v496_v1 }
  0x2e   : > { %448 = vmatmul.mubr.bf16.gmra.mrb[4].mxu1 %v487_v11 }
  0xf9   : > { %v275_v12 = vpop.f32.mrb[0].mxu1  ;;  %v267_v13 = vpop.f32.mrb[0].mxu0 }
  0xfa   : > { %v445_v14 = vpop.f32.mrb[1].mxu1  ;;  %v441_v15 = vpop.f32.mrb[1].mxu0 }
  0xfb   : > { %v278_v16 = vpop.f32.mrb[2].mxu1  ;;  %v270_v17 = vpop.f32.mrb[2].mxu0 }
  0xfc   : > { %v409_v18 = vpack.c.bf16 %v278_v16, %v275_v12  ;;  %v446_v19 = vpop.f32.mrb[3].mxu1  ;;  %v404_v20 = vpack.c.bf16 %v270_v17, %v267_v13  ;;  %v442_v21 = vpop.f32.mrb[3].mxu0 }
  0xfe   : > { %411 = vst [vmem:[%s145_s6 + $0x8] sm:$0xff] %v409_v18   ;;  %405 = vst [vmem:[%s145_s6] sm:$0xff] %v404_v20  }
 0x101   : > { %v283_v22 = vpop.f32.mrb[4].mxu1 }
 0x102   : > { %v400_v23 = vpack.c.bf16 %v283_v22, %v283_v22  ;;  %v449_v24 = vpop.f32.mrb[5].mxu1 }
 0x103   : > { %v286_v25 = vpop.f32.mrb[6].mxu1 }
 0x104   : > { %314 = vst [vmem:[%s145_s6 + $0x10] sm:$0xf] %v400_v23  ;;  %v450_v26 = vpop.f32.mrb[7].mxu1 }
 0x105 PF: > { %s12_s9 = sadd.s32 1, %s494_s9  }
 0x106   : > { %p9_p4 = scmp.ge.s32.totalorder %s12_s9, 4  }
 0x108   :  { %11 = sbr.rel (!%p9_p4) target bundleno = 1 (0x1), region = 58 }

// kernel: forward.32
= control target key start
LH: loop header
LB: loop body
LE: loop exit
PB: predicated region body
PF: predicated region fallthrough
CT: control target
= control target key end

     0   :  { %s405_s12 = smov 0   ;;  %s440_s0 = inlined_call_operand.vmem [shape: bf16[80,128], index: 0, kind: input, shape index: {}]   ;;  %s441_s1 = inlined_call_operand.vmem [shape: f32[1,128], index: 1, kind: input, shape index: {}]   ;;  %s442_s2 = inlined_call_operand.vmem [shape: f32[1,128], index: 2, kind: input, shape index: {}]   ;;  %s443_s3 = inlined_call_operand.vmem [shape: bf16[80,128], index: 3, kind: output, shape index: {}]  }
   0x1 LB: > { %s328_s13 = sadd.s32 4294967295, %s383_s12   ;;  %p332_p0 = scmp.ge.s32.totalorder %s383_s12, 1  ;;  %s383_s12 = sphi %s405_s12, %s13_s12  }
   0x2   : > { %p138_p1 = scmp.lt.s32.totalorder %s383_s12, 3 }
   0x4   : > { %p139_p2 = pnand %p332_p0, %p138_p1 }
   0x5   : > { %s162_s14 = smul.u32 (!%p139_p2), 5, %s328_s13  ;;  %v224_v0 = vlaneseq (!%p139_p2)  ;;  %v335_v7 = vld [vmem:[%s441_s1] ss:$0 sm:$0xff] (!%p139_p2) }
   0x6   : > { %142 = sbr.rel (%p139_p2) target bundleno = 32 (0x20), region = 32  ;;  %v336_v18 = vld [vmem:[%s442_s2] ss:$0 sm:$0xff] (!%p139_p2) }
   0x7   : > { %s223_s15 = smul.u32 (!%p139_p2), 40, %s328_s13  ;;  %p163_p3 = scmp.lt.s32.totalorder (!%p139_p2), %s162_s14, 9  ;;  %v225_v1 = vshrl.u32 (!%p139_p2), %v224_v0, 7 }
   0x9   : > { %v226_v2 = vadd.s32 (!%p139_p2), 8, %v225_v1  ;;  %v230_v3 = vstv (!%p139_p2), %s223_s15  ;;  %v227_v4 = vadd.s32 (!%p139_p2), 16, %v225_v1  ;;  %v228_v5 = vadd.s32 (!%p139_p2), 24, %v225_v1 }
   0xa   : > { %v229_v6 = vadd.s32 (!%p139_p2), 32, %v225_v1  ;;  %v231_v11 = vadd.s32 (!%p139_p2), %v230_v3, %v225_v1 }
   0xb   : > { %v232_v12 = vadd.s32 (!%p139_p2), %v230_v3, %v226_v2  ;;  %v233_v19 = vadd.s32 (!%p139_p2), %v230_v3, %v227_v4  ;;  %v234_v20 = vadd.s32 (!%p139_p2), %v230_v3, %v228_v5 }
   0xc   : > { %v235_v21 = vadd.s32 (!%p139_p2), %v230_v3, %v229_v6  ;;  %vm236_vm0 = vcmp.lt.s32.totalorder (!%p139_p2), %v231_v11, 64 }
   0xd   : > { %s445_s14 = smov (!%p163_p3, %s162_s14), 9  ;;  %vm237_vm1 = vcmp.lt.s32.totalorder %v232_v12, 64  ;;  %vm238_vm2 = vcmp.lt.s32.totalorder %v233_v19, 64  ;;  %vm239_vm3 = vcmp.lt.s32.totalorder %v234_v20, 64 }
   0xe   : > { %s333_s16 = sshll.u32 %s445_s14, 2  ;;  %vm240_vm4 = vcmp.lt.s32.totalorder %v235_v21, 64 }
   0xf   : > { %s166_s19 = scalar_lea.vmem %s440_s0, %s333_s16  ;;  %s172_s26 = scalar_lea.vmem %s443_s3, %s333_s16 }
  0x10   : > { %v350_v8 = vld [vmem:[%s166_s19] sm:$0xff]   ;;  %v367_v9 = vld [vmem:[%s166_s19 + $0x8] sm:$0xff]   ;;  %v178_v10 = vld [vmem:[%s166_s19 + $0x10] sm:$0xf] }
  0x11   : > { %v351_v13 = vunpack.c.l.bf16 %v350_v8  ;;  %v352_v14 = vunpack.c.h.bf16 %v350_v8  ;;  %v355_v15 = vunpack.c.l.bf16 %v367_v9  ;;  %v356_v16 = vunpack.c.h.bf16 %v367_v9 }
  0x12   : > { %v183_v17 = vunpack.c.l.bf16 %v178_v10 }
  0x13   : > { %v191_v22 = vmul.f32 %v351_v13, %v335_v7  ;;  %v192_v23 = vmul.f32 %v352_v14, %v335_v7  ;;  %v193_v24 = vmul.f32 %v355_v15, %v335_v7  ;;  %v194_v25 = vmul.f32 %v356_v16, %v335_v7 }
  0x14   : > { %v195_v26 = vmul.f32 %v335_v7, %v183_v17 }
  0x15   : > { %v203_v27 = vadd.f32 %v336_v18, %v191_v22  ;;  %v204_v28 = vadd.f32 %v336_v18, %v192_v23  ;;  %v205_v29 = vadd.f32 %v336_v18, %v193_v24  ;;  %v206_v30 = vadd.f32 %v336_v18, %v194_v25 }
  0x16   : > { %v207_v31 = vadd.f32 %v336_v18, %v195_v26 }
  0x17   : > { %vm208_vm5 = vcmp.gt.f32.partialorder %v203_v27, 0.0  ;;  %vm209_vm6 = vcmp.gt.f32.partialorder %v204_v28, 0.0  ;;  %v213_v32 = vmul.f32 0.0, %v203_v27  ;;  %v214_v33 = vmul.f32 0.0, %v204_v28 }
  0x18   : > { %vm210_vm7 = vcmp.gt.f32.partialorder %v205_v29, 0.0  ;;  %vm211_vm8 = vcmp.gt.f32.partialorder %v206_v30, 0.0  ;;  %v215_v34 = vmul.f32 0.0, %v205_v29  ;;  %v216_v35 = vmul.f32 0.0, %v206_v30 }
  0x19   : > { %v218_v36 = vsel %vm208_vm5, %v203_v27, %v213_v32  ;;  %v219_v37 = vsel %vm209_vm6, %v204_v28, %v214_v33  ;;  %vm212_vm9 = vcmp.gt.f32.partialorder %v207_v31, 0.0  ;;  %v217_v38 = vmul.f32 0.0, %v207_v31 }
  0x1a   : > { %v241_v39 = vsel %vm236_vm0, %v218_v36, 0.0  ;;  %v242_v40 = vsel %vm237_vm1, %v219_v37, 0.0  ;;  %v220_v41 = vsel %vm210_vm7, %v205_v29, %v215_v34  ;;  %v221_v42 = vsel %vm211_vm8, %v206_v30, %v216_v35 }
  0x1b   : > { %v360_v43 = vpack.c.bf16 %v242_v40, %v241_v39  ;;  %v243_v44 = vsel %vm238_vm2, %v220_v41, 0.0  ;;  %v244_v45 = vsel %vm239_vm3, %v221_v42, 0.0  ;;  %v222_v46 = vsel %vm212_vm9, %v207_v31, %v217_v38 }
  0x1c   : > { %v365_v47 = vpack.c.bf16 %v244_v45, %v243_v44  ;;  %v245_v48 = vsel %vm240_vm4, %v222_v46, 0.0 }
  0x1d   : > { %361 = vst [vmem:[%s172_s26] sm:$0xff] %v360_v43   ;;  %v348_v49 = vpack.c.bf16 %v245_v48, %v245_v48 }
  0x1e   : > { %368 = vst [vmem:[%s172_s26 + $0x8] sm:$0xff] %v365_v47  }
  0x1f   : > { %271 = vst [vmem:[%s172_s26 + $0x10] sm:$0xf] %v348_v49 }
  0x20 PF: > { %s13_s12 = sadd.s32 1, %s383_s12  }
  0x21   : > { %p10_p4 = scmp.ge.s32.totalorder %s13_s12, 4  }
  0x23   :  { %12 = sbr.rel (!%p10_p4) target bundleno = 1 (0x1), region = 62 }

// kernel: forward.33
= control target key start
LH: loop header
LB: loop body
LE: loop exit
PB: predicated region body
PF: predicated region fallthrough
CT: control target
= control target key end

     0   :  { %s608_s9 = smov 0   ;;  %s677_s0 = inlined_call_operand.vmem [shape: bf16[80,256], index: 0, kind: input, shape index: {}]   ;;  %s678_s1 = inlined_call_operand.vmem [shape: bf16[256,128], index: 1, kind: input, shape index: {}]   ;;  %s679_s2 = inlined_call_operand.vmem [shape: bf16[80,128], index: 2, kind: output, shape index: {}]  }
   0x1 LB: > { %s449_s10 = sadd.s32 4294967295, %s591_s9   ;;  %p453_p0 = scmp.ge.s32.totalorder %s591_s9, 1  ;;  %s591_s9 = sphi %s608_s9, %s12_s9  }
   0x2   : > { %p114_p1 = scmp.lt.s32.totalorder %s591_s9, 3 }
   0x4   : > { %p115_p2 = pnand %p453_p0, %p114_p1 }
   0x5   : > { %v561_v0 = vld [vmem:[%s678_s1 + $0x40] sm:$0xff] (!%p115_p2)   ;;  %s137_s13 = smul.u32 (!%p115_p2), 5, %s449_s10  ;;  %v563_v2 = vld [vmem:[%s678_s1 + $0x48] sm:$0xff] (!%p115_p2)   ;;  %v565_v4 = vld [vmem:[%s678_s1 + $0x50] sm:$0xff] (!%p115_p2)  }
   0x6   : > { %118 = sbr.rel (%p115_p2) target bundleno = 264 (0x108), region = 28  ;;  %v562_v1 = vld [vmem:[%s678_s1] sm:$0xff] (!%p115_p2)   ;;  %537 = vmatprep.subr.bf16.mxu1 (!%p115_p2), %v561_v0  ;;  %503 = vmatprep.subr.bf16.mxu0 (!%p115_p2), %v561_v0  ;;  %v564_v3 = vld [vmem:[%s678_s1 + $0x8] sm:$0xff] (!%p115_p2)   ;;  %v566_v5 = vld [vmem:[%s678_s1 + $0x10] sm:$0xff] (!%p115_p2)  }
   0x7   : > { %545 = vmatpush3.bf16.msra.mxu1 (!%p115_p2), %v562_v1  ;;  %504 = vmatpush3.bf16.msra.mxu0 (!%p115_p2), %v562_v1  ;;  %p138_p3 = scmp.lt.s32.totalorder (!%p115_p2), %s137_s13, 9  ;;  %v567_v6 = vld [vmem:[%s678_s1 + $0x58] sm:$0xff] (!%p115_p2)   ;;  %v569_v8 = vld [vmem:[%s678_s1 + $0x60] sm:$0xff] (!%p115_p2)   ;;  %v571_v10 = vld [vmem:[%s678_s1 + $0x68] sm:$0xff] (!%p115_p2)  }
   0x8   : > { %538 = vmatprep.subr.bf16.mxu1 (!%p115_p2), %v563_v2  ;;  %505 = vmatprep.subr.bf16.mxu0 (!%p115_p2), %v563_v2  ;;  %v568_v7 = vld [vmem:[%s678_s1 + $0x18] sm:$0xff] (!%p115_p2)   ;;  %v570_v9 = vld [vmem:[%s678_s1 + $0x20] sm:$0xff] (!%p115_p2)   ;;  %v572_v13 = vld [vmem:[%s678_s1 + $0x28] sm:$0xff] (!%p115_p2)  }
   0x9   : > { %v573_v14 = vld [vmem:[%s678_s1 + $0x70] sm:$0xff] (!%p115_p2)   ;;  %v575_v16 = vld [vmem:[%s678_s1 + $0x78] sm:$0xff] (!%p115_p2)  }
   0xa   : > { %v574_v15 = vld [vmem:[%s678_s1 + $0x30] sm:$0xff] (!%p115_p2)   ;;  %v576_v17 = vld [vmem:[%s678_s1 + $0x38] sm:$0xff] (!%p115_p2)  }
   0xb   : > { %546 = vmatpush3.bf16.msra.mxu1 (!%p115_p2), %v564_v3  ;;  %506 = vmatpush3.bf16.msra.mxu0 (!%p115_p2), %v564_v3 }
   0xc   : > { %539 = vmatprep.subr.bf16.mxu1 (!%p115_p2), %v565_v4  ;;  %507 = vmatprep.subr.bf16.mxu0 (!%p115_p2), %v565_v4 }
   0xd   : > { %s681_s13 = smov (!%p138_p3, %s137_s13), 9 }
   0xe   : > { %s486_s28 = sshll.u32 %s681_s13, 3  ;;  %s456_s22 = sshll.u32 %s681_s13, 2 }
   0xf   : > { %547 = vmatpush3.bf16.msra.mxu1 %v566_v5  ;;  %508 = vmatpush3.bf16.msra.mxu0 %v566_v5  ;;  %s142_s5 = scalar_lea.vmem %s677_s0, %s486_s28  ;;  %s148_s25 = scalar_lea.vmem %s679_s2, %s456_s22 }
  0x10   : > { %540 = vmatprep.subr.bf16.mxu1 %v567_v6  ;;  %509 = vmatprep.subr.bf16.mxu0 %v567_v6  ;;  %v579_v11 = vld [vmem:[%s142_s5 + $0x14] ss:$8 sps:$4 sm:$0xff]   ;;  %v582_v12 = vld [vmem:[%s142_s5 + $0x4] ss:$8 sps:$4 sm:$0xff]   ;;  %v577_v19 = vld [vmem:[%s142_s5 + $0x10] ss:$8 sps:$4 sm:$0xff]  }
  0x11   : > { %351 = vmatprep.mubr.bf16.mxu1 %v579_v11  ;;  %343 = vmatprep.mubr.bf16.mxu0 %v582_v12  ;;  %v155_v18 = vld [vmem:[%s142_s5 + $0x20] sm:$0xff] }
  0x12   : > { %v580_v20 = vld [vmem:[%s142_s5] ss:$8 sps:$4 sm:$0xff]   ;;  %v462_v21 = vcombine.high %v155_v18, %v155_v18  ;;  %v461_v22 = vcombine.low %v155_v18, %v155_v18 }
  0x13   : > { %548 = vmatpush3.bf16.msra.mxu1 %v568_v7  ;;  %510 = vmatpush3.bf16.msra.mxu0 %v568_v7 }
  0x14   : > { %541 = vmatprep.subr.bf16.mxu1 %v569_v8  ;;  %511 = vmatprep.subr.bf16.mxu0 %v569_v8 }
  0x17   : > { %549 = vmatpush3.bf16.msra.mxu1 %v570_v9  ;;  %512 = vmatpush3.bf16.msra.mxu0 %v570_v9 }
  0x18   : > { %542 = vmatprep.subr.bf16.mxu1 %v571_v10  ;;  %513 = vmatprep.subr.bf16.mxu0 %v571_v10 }
  0x1b   : > { %550 = vmatpush3.bf16.msra.mxu1 %v572_v13  ;;  %514 = vmatpush3.bf16.msra.mxu0 %v572_v13 }
  0x1c   : > { %543 = vmatprep.subr.bf16.mxu1 %v573_v14  ;;  %515 = vmatprep.subr.bf16.mxu0 %v573_v14 }
  0x1f   : > { %551 = vmatpush3.bf16.msra.mxu1 %v574_v15  ;;  %516 = vmatpush3.bf16.msra.mxu0 %v574_v15 }
  0x20   : > { %544 = vmatprep.subr.bf16.mxu1 %v575_v16  ;;  %517 = vmatprep.subr.bf16.mxu0 %v575_v16 }
  0x23   : > { %552 = vmatpush3.bf16.msra.mxu1 %v576_v17  ;;  %518 = vmatpush3.bf16.msra.mxu0 %v576_v17 }
  0x26   : > { %352 = vmatmul.mubr.bf16.vlgmr.msra.gmra.mrb[0].mxu1 %v577_v19  ;;  %344 = vmatmul.mubr.bf16.vlgmr.msra.gmra.mrb[0].mxu0 %v580_v20 }
  0x27   : > { %359 = vmatprep.mubr.bf16.mxu1 %v462_v21 }
  0x2e   : > { %360 = vmatmul.mubr.bf16.gmra.mrb[4].mxu1 %v461_v22 }
  0xf9   : > { %v525_v23 = vpop.f32.mrb[0].mxu1  ;;  %v519_v24 = vpop.f32.mrb[0].mxu0 }
  0xfa   : > { %v526_v25 = vpop.f32.mrb[1].mxu1  ;;  %v520_v26 = vpop.f32.mrb[1].mxu0 }
  0xfb   : > { %v527_v27 = vadd.f32 %v526_v25, %v525_v23  ;;  %v528_v28 = vpop.f32.mrb[2].mxu1  ;;  %v521_v29 = vadd.f32 %v520_v26, %v519_v24  ;;  %v522_v30 = vpop.f32.mrb[2].mxu0 }
  0xfc   : > { %v529_v31 = vpop.f32.mrb[3].mxu1  ;;  %v523_v32 = vpop.f32.mrb[3].mxu0 }
  0xfd   : > { %v530_v33 = vadd.f32 %v529_v31, %v528_v28  ;;  %v524_v34 = vadd.f32 %v523_v32, %v522_v30 }
  0xff   : > { %v500_v35 = vpack.c.bf16 %v530_v33, %v527_v27  ;;  %v495_v36 = vpack.c.bf16 %v524_v34, %v521_v29 }
 0x101   : > { %502 = vst [vmem:[%s148_s25 + $0x8] sm:$0xff] %v500_v35   ;;  %496 = vst [vmem:[%s148_s25] sm:$0xff] %v495_v36   ;;  %v531_v37 = vpop.f32.mrb[4].mxu1 }
 0x102   : > { %v532_v38 = vpop.f32.mrb[5].mxu1 }
 0x103   : > { %v533_v39 = vadd.f32 %v532_v38, %v531_v37  ;;  %v534_v40 = vpop.f32.mrb[6].mxu1 }
 0x104   : > { %v535_v41 = vpop.f32.mrb[7].mxu1 }
 0x105   : > { %v491_v42 = vpack.c.bf16 %v533_v39, %v533_v39 }
 0x107   : > { %392 = vst [vmem:[%s148_s25 + $0x10] sm:$0xf] %v491_v42 }
 0x108 PF: > { %s12_s9 = sadd.s32 1, %s591_s9  }
 0x109   : > { %p9_p4 = scmp.ge.s32.totalorder %s12_s9, 4  }
 0x10b   :  { %11 = sbr.rel (!%p9_p4) target bundleno = 1 (0x1), region = 58 }

// kernel: forward.36
= control target key start
LH: loop header
LB: loop body
LE: loop exit
PB: predicated region body
PF: predicated region fallthrough
CT: control target
= control target key end

     0   :  { %s464_s9 = smov 0   ;;  %s508_s0 = inlined_call_operand.vmem [shape: bf16[64,128], index: 0, kind: input, shape index: {}]   ;;  %s509_s1 = inlined_call_operand.vmem [shape: bf16[128,128], index: 1, kind: input, shape index: {}]   ;;  %s510_s2 = inlined_call_operand.vmem [shape: bf16[64,128], index: 2, kind: output, shape index: {}]  }
   0x1 LB: > { %s353_s10 = sadd.s32 4294967295, %s447_s9   ;;  %p357_p0 = scmp.ge.s32.totalorder %s447_s9, 1  ;;  %s447_s9 = sphi %s464_s9, %s12_s9  }
   0x2   : > { %p113_p1 = scmp.lt.s32.totalorder %s447_s9, 3 }
   0x4   : > { %p114_p2 = pnand %p357_p0, %p113_p1 }
   0x5   : > { %v431_v0 = vld [vmem:[%s509_s1] sm:$0xff] (!%p114_p2)   ;;  %s358_s13 = sshll.u32 (!%p114_p2), %s353_s10, 2  ;;  %v432_v1 = vld [vmem:[%s509_s1 + $0x8] sm:$0xff] (!%p114_p2)   ;;  %v433_v2 = vld [vmem:[%s509_s1 + $0x10] sm:$0xff] (!%p114_p2)  }
   0x6   : > { %117 = sbr.rel (%p114_p2) target bundleno = 256 (0x100), region = 28  ;;  %p136_p3 = scmp.lt.s32.totalorder (!%p114_p2), %s358_s13, 7  ;;  %403 = vmatprep.subr.bf16.mxu0 (!%p114_p2), %v431_v0  ;;  %v434_v3 = vld [vmem:[%s509_s1 + $0x18] sm:$0xff] (!%p114_p2)   ;;  %v435_v5 = vld [vmem:[%s509_s1 + $0x20] sm:$0xff] (!%p114_p2)   ;;  %v436_v6 = vld [vmem:[%s509_s1 + $0x28] sm:$0xff] (!%p114_p2)  }
   0x7   : > { %404 = vmatpush3.bf16.msra.mxu0 (!%p114_p2), %v431_v0  ;;  %v437_v7 = vld [vmem:[%s509_s1 + $0x30] sm:$0xff] (!%p114_p2)   ;;  %v438_v8 = vld [vmem:[%s509_s1 + $0x38] sm:$0xff] (!%p114_p2)  }
   0x8   : > { %405 = vmatprep.subr.bf16.mxu0 (!%p114_p2), %v432_v1 }
   0xb   : > { %406 = vmatpush3.bf16.msra.mxu0 (!%p114_p2), %v432_v1 }
   0xc   : > { %407 = vmatprep.subr.bf16.mxu0 (!%p114_p2), %v433_v2 }
   0xd   : > { %s512_s13 = smov (!%p136_p3, %s358_s13), 7 }
   0xe   : > { %s359_s18 = sshll.u32 %s512_s13, 2 }
   0xf   : > { %s139_s21 = scalar_lea.vmem %s508_s0, %s359_s18  ;;  %408 = vmatpush3.bf16.msra.mxu0 %v433_v2  ;;  %s145_s6 = scalar_lea.vmem %s510_s2, %s359_s18 }
  0x10   : > { %v439_v4 = vld [vmem:[%s139_s21] sm:$0xff]   ;;  %409 = vmatprep.subr.bf16.mxu0 %v434_v3  ;;  %v440_v9 = vld [vmem:[%s139_s21 + $0x8] sm:$0xff]  }
  0x11   : > { %419 = vmatprep.mubr.bf16.mxu0 %v439_v4 }
  0x13   : > { %410 = vmatpush3.bf16.msra.mxu0 %v434_v3 }
  0x14   : > { %411 = vmatprep.subr.bf16.mxu0 %v435_v5 }
  0x17   : > { %412 = vmatpush3.bf16.msra.mxu0 %v435_v5 }
  0x18   : > { %413 = vmatprep.subr.bf16.mxu0 %v436_v6 }
  0x1b   : > { %414 = vmatpush3.bf16.msra.mxu0 %v436_v6 }
  0x1c   : > { %415 = vmatprep.subr.bf16.mxu0 %v437_v7 }
  0x1f   : > { %416 = vmatpush3.bf16.msra.mxu0 %v437_v7 }
  0x20   : > { %417 = vmatprep.subr.bf16.mxu0 %v438_v8 }
  0x23   : > { %418 = vmatpush3.bf16.msra.mxu0 %v438_v8 }
  0x26   : > { %420 = vmatmul.mubr.bf16.vlgmr.msra.gmra.mrb[0].mxu0 %v440_v9 }
  0xf9   : > { %v421_v10 = vpop.f32.mrb[0].mxu0 }
  0xfa   : > { %v262_v11 = vpop.f32.mrb[1].mxu0 }
  0xfb   : > { %v422_v12 = vpop.f32.mrb[2].mxu0 }
  0xfc   : > { %v390_v13 = vpack.c.bf16 %v422_v12, %v421_v10  ;;  %v265_v14 = vpop.f32.mrb[3].mxu0 }
  0xfd   : > { %v385_v15 = vpack.c.bf16 %v265_v14, %v262_v11 }
  0xfe   : > { %392 = vst [vmem:[%s145_s6 + $0x8] sm:$0xff] %v390_v13  }
  0xff   : > { %386 = vst [vmem:[%s145_s6] sm:$0xff] %v385_v15  }
 0x100 PF: > { %s12_s9 = sadd.s32 1, %s447_s9  }
 0x101   : > { %p9_p4 = scmp.ge.s32.totalorder %s12_s9, 4  }
 0x103   :  { %11 = sbr.rel (!%p9_p4) target bundleno = 1 (0x1), region = 58 }

// kernel: forward.37
= control target key start
LH: loop header
LB: loop body
LE: loop exit
PB: predicated region body
PF: predicated region fallthrough
CT: control target
= control target key end

     0   :  { %s256_s9 = smov 0   ;;  %s288_s0 = inlined_call_operand.vmem [shape: bf16[64,128], index: 0, kind: input, shape index: {}]   ;;  %s289_s1 = inlined_call_operand.vmem [shape: f32[1,128], index: 1, kind: output, shape index: {0}]   ;;  %s290_s2 = inlined_call_operand.vmem [shape: f32[1,128], index: 2, kind: output, shape index: {1}]  }
   0x1 LB: > { %s205_s10 = sadd.s32 4294967295, %s238_s9   ;;  %p208_p0 = scmp.ge.s32.totalorder %s238_s9, 1  ;;  %s238_s9 = sphi %s256_s9, %s13_s9  }
   0x2   : > { %p106_p1 = scmp.lt.s32.totalorder %s238_s9, 3 }
   0x4   : > { %p107_p2 = pnand %p208_p0, %p106_p1 }
   0x5   : > { %s209_s11 = sshll.u32 (!%p107_p2), %s205_s10, 2  ;;  %p211_p4 = scmp.ne.s32.totalorder (!%p107_p2), %s205_s10, 0 }
   0x6   : > { %110 = sbr.rel (%p107_p2) target bundleno = 46 (0x2e), region = 24  ;;  %p124_p3 = scmp.lt.s32.totalorder (!%p107_p2), %s209_s11, 7 }
   0xd   : > { %s292_s11 = smov (!%p124_p3, %s209_s11), 7  ;;  %132 = sbr.rel (%p211_p4) target bundleno = 20 (0x14), region = 28 }
   0xe   : > { %s210_s12 = sshll.u32 %s292_s11, 2  ;;  %v240_v0 = vmov (!%p211_p4), 0.0  }
   0xf   : > { %s127_s15 = scalar_lea.vmem %s288_s0, %s210_s12  ;;  %133 = vst [vmem:[%s289_s1] sm:$0x1] (!%p211_p4), %v240_v0  ;;  %134 = vst [vmem:[%s290_s2] sm:$0x1] (!%p211_p4), %v240_v0 }
  0x14 PF: > { %v215_v1 = vld [vmem:[%s127_s15] sm:$0xff]   ;;  %v222_v2 = vld [vmem:[%s127_s15 + $0x8] sm:$0xff]  }
  0x15   : > { %v216_v3 = vunpack.c.l.bf16 %v215_v1  ;;  %v217_v4 = vunpack.c.h.bf16 %v215_v1  ;;  %v220_v5 = vunpack.c.l.bf16 %v222_v2  ;;  %v221_v6 = vunpack.c.h.bf16 %v222_v2 }
  0x16   : > { %v143_v26 = vld [vmem:[%s289_s1] sm:$0x1] }
  0x17   : > { %v144_v7 = vadd.f32 %v217_v4, %v216_v3  ;;  %v156_v8 = vmul.f32 %v216_v3, %v216_v3  ;;  %v157_v9 = vmul.f32 %v217_v4, %v217_v4  ;;  %v158_v10 = vmul.f32 %v220_v5, %v220_v5  ;;  %v155_v29 = vld [vmem:[%s290_s2] sm:$0x1] }
  0x18   : > { %v159_v12 = vmul.f32 %v221_v6, %v221_v6 }
  0x19   : > { %v145_v11 = vadd.f32 %v220_v5, %v144_v7  ;;  %v160_v13 = vadd.f32 %v157_v9, %v156_v8 }
  0x1b   : > { %v146_v14 = vadd.f32 %v221_v6, %v145_v11  ;;  %v161_v15 = vadd.f32 %v160_v13, %v158_v10 }
  0x1d   : > { %v147_v16 = vrot.slane %v146_v14, 4  ;;  %v162_v17 = vadd.f32 %v161_v15, %v159_v12 }
  0x1f   : > { %v148_v18 = vadd.f32 %v147_v16, %v146_v14  ;;  %v163_v19 = vrot.slane %v162_v17, 4 }
  0x21   : > { %v149_v20 = vrot.slane %v148_v18, 2  ;;  %v164_v21 = vadd.f32 %v163_v19, %v162_v17 }
  0x23   : > { %v150_v22 = vadd.f32 %v149_v20, %v148_v18  ;;  %v165_v23 = vrot.slane %v164_v21, 2 }
  0x25   : > { %v151_v24 = vrot.slane %v150_v22, 1  ;;  %v166_v25 = vadd.f32 %v165_v23, %v164_v21 }
  0x27   : > { %v152_v27 = vadd.f32 %v151_v24, %v150_v22  ;;  %v167_v28 = vrot.slane %v166_v25, 1 }
  0x29   : > { %v153_v30 = vadd.f32 %v152_v27, %v143_v26  ;;  %v168_v31 = vadd.f32 %v167_v28, %v166_v25 }
  0x2b   : > { %154 = vst [vmem:[%s289_s1] sm:$0x1] %v153_v30  ;;  %v169_v32 = vadd.f32 %v168_v31, %v155_v29 }
  0x2d   : > { %170 = vst [vmem:[%s290_s2] sm:$0x1] %v169_v32 }
  0x2e PF: > { %s13_s9 = sadd.s32 1, %s238_s9  }
  0x2f   : > { %p10_p5 = scmp.ge.s32.totalorder %s13_s9, 4  }
  0x31   :  { %12 = sbr.rel (!%p10_p5) target bundleno = 1 (0x1), region = 62 }

// kernel: forward.38
= control target key start
LH: loop header
LB: loop body
LE: loop exit
PB: predicated region body
PF: predicated region fallthrough
CT: control target
= control target key end

     0   :  { %s389_s12 = smov 0   ;;  %s421_s0 = inlined_call_operand.vmem [shape: bf16[64,128], index: 0, kind: input, shape index: {}]   ;;  %s422_s1 = inlined_call_operand.vmem [shape: f32[1,128], index: 1, kind: input, shape index: {}]   ;;  %s423_s2 = inlined_call_operand.vmem [shape: f32[1,128], index: 2, kind: input, shape index: {}]   ;;  %s424_s3 = inlined_call_operand.vmem [shape: bf16[64,128], index: 3, kind: output, shape index: {}]  }
   0x1 LB: > { %s311_s13 = sadd.s32 4294967295, %s367_s12   ;;  %p315_p0 = scmp.ge.s32.totalorder %s367_s12, 1  ;;  %s367_s12 = sphi %s389_s12, %s13_s12  }
   0x2   : > { %p138_p1 = scmp.lt.s32.totalorder %s367_s12, 3 }
   0x4   : > { %p139_p2 = pnand %p315_p0, %p138_p1 }
   0x5   : > { %s316_s14 = sshll.u32 (!%p139_p2), %s311_s13, 2  ;;  %v217_v0 = vlaneseq (!%p139_p2)  ;;  %s322_s15 = sshll.u32 (!%p139_p2), %s311_s13, 5  ;;  %v320_v8 = vld [vmem:[%s422_s1] ss:$0 sm:$0xff] (!%p139_p2) }
   0x6   : > { %142 = sbr.rel (%p139_p2) target bundleno = 31 (0x1f), region = 32  ;;  %p163_p3 = scmp.lt.s32.totalorder (!%p139_p2), %s316_s14, 7  ;;  %v222_v5 = vstv (!%p139_p2), %s322_s15  ;;  %v321_v13 = vld [vmem:[%s423_s2] ss:$0 sm:$0xff] (!%p139_p2) }
   0x7   : > { %v218_v1 = vshrl.u32 (!%p139_p2), %v217_v0, 7 }
   0x9   : > { %v219_v2 = vadd.s32 (!%p139_p2), 8, %v218_v1  ;;  %v220_v3 = vadd.s32 (!%p139_p2), 16, %v218_v1  ;;  %v221_v4 = vadd.s32 (!%p139_p2), 24, %v218_v1  ;;  %v223_v14 = vadd.s32 (!%p139_p2), %v222_v5, %v218_v1 }
   0xb   : > { %v224_v15 = vadd.s32 (!%p139_p2), %v222_v5, %v219_v2  ;;  %v225_v16 = vadd.s32 (!%p139_p2), %v222_v5, %v220_v3  ;;  %v226_v17 = vadd.s32 (!%p139_p2), %v222_v5, %v221_v4  ;;  %vm227_vm0 = vcmp.lt.s32.totalorder (!%p139_p2), %v223_v14, 63 }
   0xd   : > { %s426_s14 = smov (!%p163_p3, %s316_s14), 7  ;;  %vm228_vm1 = vcmp.lt.s32.totalorder %v224_v15, 63  ;;  %vm229_vm2 = vcmp.lt.s32.totalorder %v225_v16, 63  ;;  %vm230_vm3 = vcmp.lt.s32.totalorder %v226_v17, 63 }
   0xe   : > { %s317_s16 = sshll.u32 %s426_s14, 2 }
   0xf   : > { %s166_s19 = scalar_lea.vmem %s421_s0, %s317_s16  ;;  %s172_s26 = scalar_lea.vmem %s424_s3, %s317_s16 }
  0x10   : > { %v334_v6 = vld [vmem:[%s166_s19] sm:$0xff]   ;;  %v351_v7 = vld [vmem:[%s166_s19 + $0x8] sm:$0xff]  }
  0x11   : > { %v335_v9 = vunpack.c.l.bf16 %v334_v6  ;;  %v336_v10 = vunpack.c.h.bf16 %v334_v6  ;;  %v339_v11 = vunpack.c.l.bf16 %v351_v7  ;;  %v340_v12 = vunpack.c.h.bf16 %v351_v7 }
  0x13   : > { %v189_v18 = vmul.f32 %v335_v9, %v320_v8  ;;  %v190_v19 = vmul.f32 %v336_v10, %v320_v8  ;;  %v191_v20 = vmul.f32 %v339_v11, %v320_v8  ;;  %v192_v21 = vmul.f32 %v340_v12, %v320_v8 }
  0x15   : > { %v200_v22 = vadd.f32 %v321_v13, %v189_v18  ;;  %v201_v23 = vadd.f32 %v321_v13, %v190_v19  ;;  %v202_v24 = vadd.f32 %v321_v13, %v191_v20  ;;  %v203_v25 = vadd.f32 %v321_v13, %v192_v21 }
  0x17   : > { %vm204_vm4 = vcmp.gt.f32.partialorder %v200_v22, 0.0  ;;  %vm205_vm5 = vcmp.gt.f32.partialorder %v201_v23, 0.0  ;;  %v208_v26 = vmul.f32 0.0, %v200_v22  ;;  %v209_v27 = vmul.f32 0.0, %v201_v23 }
  0x18   : > { %vm206_vm6 = vcmp.gt.f32.partialorder %v202_v24, 0.0  ;;  %vm207_vm7 = vcmp.gt.f32.partialorder %v203_v25, 0.0  ;;  %v210_v28 = vmul.f32 0.0, %v202_v24  ;;  %v211_v29 = vmul.f32 0.0, %v203_v25 }
  0x19   : > { %v212_v30 = vsel %vm204_vm4, %v200_v22, %v208_v26  ;;  %v213_v31 = vsel %vm205_vm5, %v201_v23, %v209_v27 }
  0x1a   : > { %v231_v32 = vsel %vm227_vm0, %v212_v30, 0.0  ;;  %v232_v33 = vsel %vm228_vm1, %v213_v31, 0.0  ;;  %v214_v34 = vsel %vm206_vm6, %v202_v24, %v210_v28  ;;  %v215_v35 = vsel %vm207_vm7, %v203_v25, %v211_v29 }
  0x1b   : > { %v344_v36 = vpack.c.bf16 %v232_v33, %v231_v32  ;;  %v233_v37 = vsel %vm229_vm2, %v214_v34, 0.0  ;;  %v234_v38 = vsel %vm230_vm3, %v215_v35, 0.0 }
  0x1c   : > { %v349_v39 = vpack.c.bf16 %v234_v38, %v233_v37 }
  0x1d   : > { %345 = vst [vmem:[%s172_s26] sm:$0xff] %v344_v36  }
  0x1e   : > { %352 = vst [vmem:[%s172_s26 + $0x8] sm:$0xff] %v349_v39  }
  0x1f PF: > { %s13_s12 = sadd.s32 1, %s367_s12  }
  0x20   : > { %p10_p4 = scmp.ge.s32.totalorder %s13_s12, 4  }
  0x22   :  { %12 = sbr.rel (!%p10_p4) target bundleno = 1 (0x1), region = 62 }

// kernel: forward.39
= control target key start
LH: loop header
LB: loop body
LE: loop exit
PB: predicated region body
PF: predicated region fallthrough
CT: control target
= control target key end

     0   :  { %s832_s9 = smov 0   ;;  %s951_s0 = inlined_call_operand.vmem [shape: bf16[64,512], index: 0, kind: input, shape index: {}]   ;;  %s952_s1 = inlined_call_operand.vmem [shape: bf16[512,128], index: 1, kind: input, shape index: {}]   ;;  %s953_s2 = inlined_call_operand.vmem [shape: bf16[64,128], index: 2, kind: output, shape index: {}]  }
   0x1 LB: > { %s629_s10 = sadd.s32 4294967295, %s815_s9   ;;  %p633_p0 = scmp.ge.s32.totalorder %s815_s9, 1  ;;  %s815_s9 = sphi %s832_s9, %s12_s9  }
   0x2   : > { %p114_p1 = scmp.lt.s32.totalorder %s815_s9, 3 }
   0x4   : > { %p115_p2 = pnand %p633_p0, %p114_p1 }
   0x5   : > { %v765_v0 = vld [vmem:[%s952_s1 + $0x40] sm:$0xff] (!%p115_p2)   ;;  %v769_v4 = vld [vmem:[%s952_s1 + $0x48] sm:$0xff] (!%p115_p2)   ;;  %v773_v8 = vld [vmem:[%s952_s1 + $0x50] sm:$0xff] (!%p115_p2)   ;;  %s634_s17 = sshll.u32 (!%p115_p2), %s629_s10, 2 }
   0x6   : > { %118 = sbr.rel (%p115_p2) target bundleno = 270 (0x10e), region = 28  ;;  %v766_v1 = vld [vmem:[%s952_s1 + $0xc0] sm:$0xff] (!%p115_p2)   ;;  %701 = vmatprep.subr.bf16.mxu0 (!%p115_p2), %v765_v0  ;;  %v770_v5 = vld [vmem:[%s952_s1 + $0xc8] sm:$0xff] (!%p115_p2)   ;;  %v774_v9 = vld [vmem:[%s952_s1 + $0xd0] sm:$0xff] (!%p115_p2)   ;;  %p138_p3 = scmp.lt.s32.totalorder (!%p115_p2), %s634_s17, 7 }
   0x7   : > { %v767_v2 = vld [vmem:[%s952_s1] sm:$0xff] (!%p115_p2)   ;;  %729 = vmatprep.subr.bf16.mxu1 (!%p115_p2), %v766_v1  ;;  %v771_v6 = vld [vmem:[%s952_s1 + $0x8] sm:$0xff] (!%p115_p2)   ;;  %v775_v10 = vld [vmem:[%s952_s1 + $0x10] sm:$0xff] (!%p115_p2)  }
   0x8   : > { %v768_v3 = vld [vmem:[%s952_s1 + $0x80] sm:$0xff] (!%p115_p2)   ;;  %702 = vmatpush3.bf16.msra.mxu0 (!%p115_p2), %v767_v2  ;;  %v772_v7 = vld [vmem:[%s952_s1 + $0x88] sm:$0xff] (!%p115_p2)   ;;  %v776_v11 = vld [vmem:[%s952_s1 + $0x90] sm:$0xff] (!%p115_p2)  }
   0x9   : > { %730 = vmatpush3.bf16.msra.mxu1 (!%p115_p2), %v768_v3  ;;  %703 = vmatprep.subr.bf16.mxu0 (!%p115_p2), %v769_v4  ;;  %v777_v12 = vld [vmem:[%s952_s1 + $0x58] sm:$0xff] (!%p115_p2)   ;;  %v781_v16 = vld [vmem:[%s952_s1 + $0x60] sm:$0xff] (!%p115_p2)   ;;  %v785_v20 = vld [vmem:[%s952_s1 + $0x68] sm:$0xff] (!%p115_p2)  }
   0xa   : > { %731 = vmatprep.subr.bf16.mxu1 (!%p115_p2), %v770_v5  ;;  %v778_v13 = vld [vmem:[%s952_s1 + $0xd8] sm:$0xff] (!%p115_p2)   ;;  %v782_v17 = vld [vmem:[%s952_s1 + $0xe0] sm:$0xff] (!%p115_p2)   ;;  %v786_v21 = vld [vmem:[%s952_s1 + $0xe8] sm:$0xff] (!%p115_p2)  }
   0xb   : > { %v779_v14 = vld [vmem:[%s952_s1 + $0x18] sm:$0xff] (!%p115_p2)   ;;  %v783_v18 = vld [vmem:[%s952_s1 + $0x20] sm:$0xff] (!%p115_p2)   ;;  %v787_v22 = vld [vmem:[%s952_s1 + $0x28] sm:$0xff] (!%p115_p2)  }
   0xc   : > { %704 = vmatpush3.bf16.msra.mxu0 (!%p115_p2), %v771_v6  ;;  %v780_v15 = vld [vmem:[%s952_s1 + $0x98] sm:$0xff] (!%p115_p2)   ;;  %v784_v19 = vld [vmem:[%s952_s1 + $0xa0] sm:$0xff] (!%p115_p2)   ;;  %v788_v23 = vld [vmem:[%s952_s1 + $0xa8] sm:$0xff] (!%p115_p2)  }
   0xd   : > { %732 = vmatpush3.bf16.msra.mxu1 %v772_v7  ;;  %705 = vmatprep.subr.bf16.mxu0 %v773_v8  ;;  %s955_s17 = smov (!%p138_p3, %s634_s17), 7  ;;  %v789_v24 = vld [vmem:[%s952_s1 + $0x70] sm:$0xff]   ;;  %v793_v28 = vld [vmem:[%s952_s1 + $0x78] sm:$0xff]  }
   0xe   : > { %733 = vmatprep.subr.bf16.mxu1 %v774_v9  ;;  %v790_v25 = vld [vmem:[%s952_s1 + $0xf0] sm:$0xff]   ;;  %s685_s13 = sshll.u32 %s955_s17, 4  ;;  %v794_v29 = vld [vmem:[%s952_s1 + $0xf8] sm:$0xff]   ;;  %s638_s27 = sshll.u32 %s955_s17, 2 }
   0xf   : > { %v791_v26 = vld [vmem:[%s952_s1 + $0x30] sm:$0xff]   ;;  %s142_s23 = scalar_lea.vmem %s951_s0, %s685_s13  ;;  %v795_v30 = vld [vmem:[%s952_s1 + $0x38] sm:$0xff]   ;;  %s148_s30 = scalar_lea.vmem %s953_s2, %s638_s27 }
  0x10   : > { %706 = vmatpush3.bf16.msra.mxu0 %v775_v10  ;;  %v792_v27 = vld [vmem:[%s952_s1 + $0xb0] sm:$0xff]   ;;  %v796_v31 = vld [vmem:[%s952_s1 + $0xb8] sm:$0xff]  }
  0x11   : > { %734 = vmatpush3.bf16.msra.mxu1 %v776_v11  ;;  %707 = vmatprep.subr.bf16.mxu0 %v777_v12  ;;  %v797_v32 = vld [vmem:[%s142_s23] ss:$16 sps:$4 sm:$0xff]   ;;  %v799_v33 = vld [vmem:[%s142_s23 + $0x4] ss:$16 sps:$4 sm:$0xff]   ;;  %v800_v34 = vld [vmem:[%s142_s23 + $0x8] ss:$16 sps:$4 sm:$0xff]  }
  0x12   : > { %735 = vmatprep.subr.bf16.mxu1 %v778_v13  ;;  %v802_v35 = vld [vmem:[%s142_s23 + $0xc] ss:$16 sps:$4 sm:$0xff]   ;;  %487 = vmatprep.mubr.bf16.mxu0 %v799_v33  ;;  %v803_v36 = vld [vmem:[%s142_s23 + $0x24] ss:$16 sps:$4 sm:$0xff]   ;;  %v807_v38 = vld [vmem:[%s142_s23 + $0x20] ss:$16 sps:$4 sm:$0xff]  }
  0x13   : > { %536 = vmatprep.mubr.bf16.mxu1 %v802_v35  ;;  %v805_v37 = vld [vmem:[%s142_s23 + $0x2c] ss:$16 sps:$4 sm:$0xff]   ;;  %v808_v39 = vld [vmem:[%s142_s23 + $0x28] ss:$16 sps:$4 sm:$0xff]  }
  0x14   : > { %708 = vmatpush3.bf16.msra.mxu0 %v779_v14 }
  0x15   : > { %736 = vmatpush3.bf16.msra.mxu1 %v780_v15  ;;  %709 = vmatprep.subr.bf16.mxu0 %v781_v16 }
  0x16   : > { %737 = vmatprep.subr.bf16.mxu1 %v782_v17 }
  0x18   : > { %710 = vmatpush3.bf16.msra.mxu0 %v783_v18 }
  0x19   : > { %738 = vmatpush3.bf16.msra.mxu1 %v784_v19  ;;  %711 = vmatprep.subr.bf16.mxu0 %v785_v20 }
  0x1a   : > { %739 = vmatprep.subr.bf16.mxu1 %v786_v21 }
  0x1c   : > { %712 = vmatpush3.bf16.msra.mxu0 %v787_v22 }
  0x1d   : > { %740 = vmatpush3.bf16.msra.mxu1 %v788_v23  ;;  %713 = vmatprep.subr.bf16.mxu0 %v789_v24 }
  0x1e   : > { %741 = vmatprep.subr.bf16.mxu1 %v790_v25 }
  0x20   : > { %714 = vmatpush3.bf16.msra.mxu0 %v791_v26 }
  0x21   : > { %742 = vmatpush3.bf16.msra.mxu1 %v792_v27  ;;  %715 = vmatprep.subr.bf16.mxu0 %v793_v28 }
  0x22   : > { %743 = vmatprep.subr.bf16.mxu1 %v794_v29 }
  0x24   : > { %716 = vmatpush3.bf16.msra.mxu0 %v795_v30 }
  0x25   : > { %744 = vmatpush3.bf16.msra.mxu1 %v796_v31 }
  0x27   : > { %488 = vmatmul.mubr.bf16.vlgmr.msra.gmra.mrb[0].mxu0 %v797_v32 }
  0x28   : > { %537 = vmatmul.mubr.bf16.vlgmr.msra.gmra.mrb[0].mxu1 %v800_v34  ;;  %495 = vmatprep.mubr.bf16.mxu0 %v803_v36 }
  0x29   : > { %544 = vmatprep.mubr.bf16.mxu1 %v805_v37 }
  0x2f   : > { %496 = vmatmul.mubr.bf16.gmra.mrb[4].mxu0 %v807_v38 }
  0x30   : > { %545 = vmatmul.mubr.bf16.gmra.mrb[4].mxu1 %v808_v39 }
  0xfa   : > { %v717_v40 = vpop.f32.mrb[0].mxu0 }
  0xfb   : > { %v745_v41 = vpop.f32.mrb[0].mxu1  ;;  %v718_v42 = vpop.f32.mrb[1].mxu0 }
  0xfc   : > { %v719_v43 = vadd.f32 %v718_v42, %v717_v40  ;;  %v746_v44 = vpop.f32.mrb[1].mxu1  ;;  %v720_v45 = vpop.f32.mrb[2].mxu0 }
  0xfd   : > { %v747_v46 = vadd.f32 %v746_v44, %v745_v41  ;;  %v748_v47 = vpop.f32.mrb[2].mxu1  ;;  %v721_v48 = vpop.f32.mrb[3].mxu0 }
  0xfe   : > { %v722_v49 = vadd.f32 %v721_v48, %v720_v45  ;;  %v749_v50 = vpop.f32.mrb[3].mxu1 }
  0xff   : > { %v539_v51 = vadd.f32 %v747_v46, %v719_v43  ;;  %v750_v52 = vadd.f32 %v749_v50, %v748_v47 }
 0x101   : > { %v542_v53 = vadd.f32 %v750_v52, %v722_v49 }
 0x102   : > { %v723_v54 = vpop.f32.mrb[4].mxu0 }
 0x103   : > { %v693_v55 = vpack.c.bf16 %v542_v53, %v539_v51  ;;  %v751_v56 = vpop.f32.mrb[4].mxu1  ;;  %v724_v57 = vpop.f32.mrb[5].mxu0 }
 0x104   : > { %v725_v58 = vadd.f32 %v724_v57, %v723_v54  ;;  %v752_v59 = vpop.f32.mrb[5].mxu1  ;;  %v726_v60 = vpop.f32.mrb[6].mxu0 }
 0x105   : > { %694 = vst [vmem:[%s148_s30] sm:$0xff] %v693_v55   ;;  %v753_v61 = vadd.f32 %v752_v59, %v751_v56  ;;  %v754_v62 = vpop.f32.mrb[6].mxu1  ;;  %v727_v63 = vpop.f32.mrb[7].mxu0 }
 0x106   : > { %v728_v0 = vadd.f32 %v727_v63, %v726_v60  ;;  %v755_v1 = vpop.f32.mrb[7].mxu1 }
 0x107   : > { %v547_v2 = vadd.f32 %v753_v61, %v725_v58  ;;  %v756_v3 = vadd.f32 %v755_v1, %v754_v62 }
 0x109   : > { %v550_v4 = vadd.f32 %v756_v3, %v728_v0 }
 0x10b   : > { %v698_v5 = vpack.c.bf16 %v550_v4, %v547_v2 }
 0x10d   : > { %700 = vst [vmem:[%s148_s30 + $0x8] sm:$0xff] %v698_v5  }
 0x10e PF: > { %s12_s9 = sadd.s32 1, %s815_s9  }
 0x10f   : > { %p9_p4 = scmp.ge.s32.totalorder %s12_s9, 4  }
 0x111   :  { %11 = sbr.rel (!%p9_p4) target bundleno = 1 (0x1), region = 58 }

// kernel: forward.44
= control target key start
LH: loop header
LB: loop body
LE: loop exit
PB: predicated region body
PF: predicated region fallthrough
CT: control target
= control target key end

     0   :  { %s389_s12 = smov 0   ;;  %s421_s0 = inlined_call_operand.vmem [shape: bf16[64,128], index: 0, kind: input, shape index: {}]   ;;  %s422_s1 = inlined_call_operand.vmem [shape: f32[1,128], index: 1, kind: input, shape index: {}]   ;;  %s423_s2 = inlined_call_operand.vmem [shape: f32[1,128], index: 2, kind: input, shape index: {}]   ;;  %s424_s3 = inlined_call_operand.vmem [shape: bf16[64,128], index: 3, kind: output, shape index: {}]  }
   0x1 LB: > { %s311_s13 = sadd.s32 4294967295, %s367_s12   ;;  %p315_p0 = scmp.ge.s32.totalorder %s367_s12, 1  ;;  %s367_s12 = sphi %s389_s12, %s13_s12  }
   0x2   : > { %p138_p1 = scmp.lt.s32.totalorder %s367_s12, 3 }
   0x4   : > { %p139_p2 = pnand %p315_p0, %p138_p1 }
   0x5   : > { %s316_s14 = sshll.u32 (!%p139_p2), %s311_s13, 2  ;;  %v217_v0 = vlaneseq (!%p139_p2)  ;;  %s322_s15 = sshll.u32 (!%p139_p2), %s311_s13, 5  ;;  %v320_v8 = vld [vmem:[%s422_s1] ss:$0 sm:$0xff] (!%p139_p2) }
   0x6   : > { %142 = sbr.rel (%p139_p2) target bundleno = 31 (0x1f), region = 32  ;;  %p163_p3 = scmp.lt.s32.totalorder (!%p139_p2), %s316_s14, 7  ;;  %v222_v5 = vstv (!%p139_p2), %s322_s15  ;;  %v321_v13 = vld [vmem:[%s423_s2] ss:$0 sm:$0xff] (!%p139_p2) }
   0x7   : > { %v218_v1 = vshrl.u32 (!%p139_p2), %v217_v0, 7 }
   0x9   : > { %v219_v2 = vadd.s32 (!%p139_p2), 8, %v218_v1  ;;  %v220_v3 = vadd.s32 (!%p139_p2), 16, %v218_v1  ;;  %v221_v4 = vadd.s32 (!%p139_p2), 24, %v218_v1  ;;  %v223_v14 = vadd.s32 (!%p139_p2), %v222_v5, %v218_v1 }
   0xb   : > { %v224_v15 = vadd.s32 (!%p139_p2), %v222_v5, %v219_v2  ;;  %v225_v16 = vadd.s32 (!%p139_p2), %v222_v5, %v220_v3  ;;  %v226_v17 = vadd.s32 (!%p139_p2), %v222_v5, %v221_v4  ;;  %vm227_vm0 = vcmp.lt.s32.totalorder (!%p139_p2), %v223_v14, 48 }
   0xd   : > { %s426_s14 = smov (!%p163_p3, %s316_s14), 7  ;;  %vm228_vm1 = vcmp.lt.s32.totalorder %v224_v15, 48  ;;  %vm229_vm2 = vcmp.lt.s32.totalorder %v225_v16, 48  ;;  %vm230_vm3 = vcmp.lt.s32.totalorder %v226_v17, 48 }
   0xe   : > { %s317_s16 = sshll.u32 %s426_s14, 2 }
   0xf   : > { %s166_s19 = scalar_lea.vmem %s421_s0, %s317_s16  ;;  %s172_s26 = scalar_lea.vmem %s424_s3, %s317_s16 }
  0x10   : > { %v334_v6 = vld [vmem:[%s166_s19] sm:$0xff]   ;;  %v351_v7 = vld [vmem:[%s166_s19 + $0x8] sm:$0xff]  }
  0x11   : > { %v335_v9 = vunpack.c.l.bf16 %v334_v6  ;;  %v336_v10 = vunpack.c.h.bf16 %v334_v6  ;;  %v339_v11 = vunpack.c.l.bf16 %v351_v7  ;;  %v340_v12 = vunpack.c.h.bf16 %v351_v7 }
  0x13   : > { %v189_v18 = vmul.f32 %v335_v9, %v320_v8  ;;  %v190_v19 = vmul.f32 %v336_v10, %v320_v8  ;;  %v191_v20 = vmul.f32 %v339_v11, %v320_v8  ;;  %v192_v21 = vmul.f32 %v340_v12, %v320_v8 }
  0x15   : > { %v200_v22 = vadd.f32 %v321_v13, %v189_v18  ;;  %v201_v23 = vadd.f32 %v321_v13, %v190_v19  ;;  %v202_v24 = vadd.f32 %v321_v13, %v191_v20  ;;  %v203_v25 = vadd.f32 %v321_v13, %v192_v21 }
  0x17   : > { %vm204_vm4 = vcmp.gt.f32.partialorder %v200_v22, 0.0  ;;  %vm205_vm5 = vcmp.gt.f32.partialorder %v201_v23, 0.0  ;;  %v208_v26 = vmul.f32 0.0, %v200_v22  ;;  %v209_v27 = vmul.f32 0.0, %v201_v23 }
  0x18   : > { %vm206_vm6 = vcmp.gt.f32.partialorder %v202_v24, 0.0  ;;  %vm207_vm7 = vcmp.gt.f32.partialorder %v203_v25, 0.0  ;;  %v210_v28 = vmul.f32 0.0, %v202_v24  ;;  %v211_v29 = vmul.f32 0.0, %v203_v25 }
  0x19   : > { %v212_v30 = vsel %vm204_vm4, %v200_v22, %v208_v26  ;;  %v213_v31 = vsel %vm205_vm5, %v201_v23, %v209_v27 }
  0x1a   : > { %v231_v32 = vsel %vm227_vm0, %v212_v30, 0.0  ;;  %v232_v33 = vsel %vm228_vm1, %v213_v31, 0.0  ;;  %v214_v34 = vsel %vm206_vm6, %v202_v24, %v210_v28  ;;  %v215_v35 = vsel %vm207_vm7, %v203_v25, %v211_v29 }
  0x1b   : > { %v344_v36 = vpack.c.bf16 %v232_v33, %v231_v32  ;;  %v233_v37 = vsel %vm229_vm2, %v214_v34, 0.0  ;;  %v234_v38 = vsel %vm230_vm3, %v215_v35, 0.0 }
  0x1c   : > { %v349_v39 = vpack.c.bf16 %v234_v38, %v233_v37 }
  0x1d   : > { %345 = vst [vmem:[%s172_s26] sm:$0xff] %v344_v36  }
  0x1e   : > { %352 = vst [vmem:[%s172_s26 + $0x8] sm:$0xff] %v349_v39  }
  0x1f PF: > { %s13_s12 = sadd.s32 1, %s367_s12  }
  0x20   : > { %p10_p4 = scmp.ge.s32.totalorder %s13_s12, 4  }
  0x22   :  { %12 = sbr.rel (!%p10_p4) target bundleno = 1 (0x1), region = 62 }

// kernel: forward.45
= control target key start
LH: loop header
LB: loop body
LE: loop exit
PB: predicated region body
PF: predicated region fallthrough
CT: control target
= control target key end

     0   :  { %s1118_s9 = smov 0   ;;  %s1299_s0 = inlined_call_operand.vmem [shape: bf16[64,768], index: 0, kind: input, shape index: {}]   ;;  %s1300_s1 = inlined_call_operand.vmem [shape: bf16[768,128], index: 1, kind: input, shape index: {}]   ;;  %s1301_s2 = inlined_call_operand.vmem [shape: bf16[64,128], index: 2, kind: output, shape index: {}]  }
   0x1 LB: > { %s830_s10 = sadd.s32 4294967295, %s1101_s9   ;;  %p834_p0 = scmp.ge.s32.totalorder %s1101_s9, 1  ;;  %s1101_s9 = sphi %s1118_s9, %s12_s9  }
   0x2   : > { %p114_p1 = scmp.lt.s32.totalorder %s1101_s9, 3 }
   0x4   : > { %p115_p2 = pnand %p834_p0, %p114_p1 }
   0x5   : > { %v1029_v0 = vld [vmem:[%s1300_s1 + $0x40] sm:$0xff] (!%p115_p2)   ;;  %v1033_v4 = vld [vmem:[%s1300_s1 + $0x48] sm:$0xff] (!%p115_p2)   ;;  %v1037_v8 = vld [vmem:[%s1300_s1 + $0x50] sm:$0xff] (!%p115_p2)   ;;  %s835_s15 = sshll.u32 (!%p115_p2), %s830_s10, 2 }
   0x6   : > { %118 = sbr.rel (%p115_p2) target bundleno = 294 (0x126), region = 28  ;;  %v1030_v1 = vld [vmem:[%s1300_s1 + $0xc0] sm:$0xff] (!%p115_p2)   ;;  %920 = vmatprep.subr.bf16.mxu0 (!%p115_p2), %v1029_v0  ;;  %v1034_v5 = vld [vmem:[%s1300_s1 + $0xc8] sm:$0xff] (!%p115_p2)   ;;  %v1038_v9 = vld [vmem:[%s1300_s1 + $0xd0] sm:$0xff] (!%p115_p2)   ;;  %p138_p3 = scmp.lt.s32.totalorder (!%p115_p2), %s835_s15, 7 }
   0x7   : > { %v1031_v2 = vld [vmem:[%s1300_s1] sm:$0xff] (!%p115_p2)   ;;  %948 = vmatprep.subr.bf16.mxu1 (!%p115_p2), %v1030_v1  ;;  %v1035_v6 = vld [vmem:[%s1300_s1 + $0x8] sm:$0xff] (!%p115_p2)   ;;  %v1039_v10 = vld [vmem:[%s1300_s1 + $0x10] sm:$0xff] (!%p115_p2)  }
   0x8   : > { %v1032_v3 = vld [vmem:[%s1300_s1 + $0x80] sm:$0xff] (!%p115_p2)   ;;  %921 = vmatpush3.bf16.msra.mxu0 (!%p115_p2), %v1031_v2  ;;  %v1036_v7 = vld [vmem:[%s1300_s1 + $0x88] sm:$0xff] (!%p115_p2)   ;;  %v1040_v11 = vld [vmem:[%s1300_s1 + $0x90] sm:$0xff] (!%p115_p2)  }
   0x9   : > { %949 = vmatpush3.bf16.msra.mxu1 (!%p115_p2), %v1032_v3  ;;  %922 = vmatprep.subr.bf16.mxu0 (!%p115_p2), %v1033_v4  ;;  %v1041_v12 = vld [vmem:[%s1300_s1 + $0x58] sm:$0xff] (!%p115_p2)   ;;  %v1045_v16 = vld [vmem:[%s1300_s1 + $0x60] sm:$0xff] (!%p115_p2)   ;;  %v1049_v20 = vld [vmem:[%s1300_s1 + $0x68] sm:$0xff] (!%p115_p2)  }
   0xa   : > { %950 = vmatprep.subr.bf16.mxu1 (!%p115_p2), %v1034_v5  ;;  %v1042_v13 = vld [vmem:[%s1300_s1 + $0xd8] sm:$0xff] (!%p115_p2)   ;;  %v1046_v17 = vld [vmem:[%s1300_s1 + $0xe0] sm:$0xff] (!%p115_p2)   ;;  %v1050_v21 = vld [vmem:[%s1300_s1 + $0xe8] sm:$0xff] (!%p115_p2)  }
   0xb   : > { %v1043_v14 = vld [vmem:[%s1300_s1 + $0x18] sm:$0xff] (!%p115_p2)   ;;  %v1047_v18 = vld [vmem:[%s1300_s1 + $0x20] sm:$0xff] (!%p115_p2)   ;;  %v1051_v22 = vld [vmem:[%s1300_s1 + $0x28] sm:$0xff] (!%p115_p2)  }
   0xc   : > { %923 = vmatpush3.bf16.msra.mxu0 (!%p115_p2), %v1035_v6  ;;  %v1044_v15 = vld [vmem:[%s1300_s1 + $0x98] sm:$0xff] (!%p115_p2)   ;;  %v1048_v19 = vld [vmem:[%s1300_s1 + $0xa0] sm:$0xff] (!%p115_p2)   ;;  %v1052_v23 = vld [vmem:[%s1300_s1 + $0xa8] sm:$0xff] (!%p115_p2)  }
   0xd   : > { %951 = vmatpush3.bf16.msra.mxu1 %v1036_v7  ;;  %924 = vmatprep.subr.bf16.mxu0 %v1037_v8  ;;  %s1303_s15 = smov (!%p138_p3, %s835_s15), 7  ;;  %v1053_v24 = vld [vmem:[%s1300_s1 + $0x70] sm:$0xff]   ;;  %v1057_v28 = vld [vmem:[%s1300_s1 + $0x78] sm:$0xff]   ;;  %v1067_v36 = vld [vmem:[%s1300_s1 + $0x140] sm:$0xff]  }
   0xe   : > { %952 = vmatprep.subr.bf16.mxu1 %v1038_v9  ;;  %v1054_v25 = vld [vmem:[%s1300_s1 + $0xf0] sm:$0xff]   ;;  %s1020_s11 = smul.u32 24, %s1303_s15  ;;  %v1058_v29 = vld [vmem:[%s1300_s1 + $0xf8] sm:$0xff]   ;;  %v1068_v37 = vld [vmem:[%s1300_s1 + $0x100] sm:$0xff]  }
   0xf   : > { %v1055_v26 = vld [vmem:[%s1300_s1 + $0x30] sm:$0xff]   ;;  %v1059_v30 = vld [vmem:[%s1300_s1 + $0x38] sm:$0xff]   ;;  %v1069_v38 = vld [vmem:[%s1300_s1 + $0x148] sm:$0xff]  }
  0x10   : > { %925 = vmatpush3.bf16.msra.mxu0 %v1039_v10  ;;  %v1056_v27 = vld [vmem:[%s1300_s1 + $0xb0] sm:$0xff]   ;;  %s1224_s23 = scalar_lea.vmem %s1299_s0, %s1020_s11  ;;  %v1060_v31 = vld [vmem:[%s1300_s1 + $0xb8] sm:$0xff]   ;;  %v1070_v39 = vld [vmem:[%s1300_s1 + $0x108] sm:$0xff]  }
  0x11   : > { %953 = vmatpush3.bf16.msra.mxu1 %v1040_v11  ;;  %926 = vmatprep.subr.bf16.mxu0 %v1041_v12  ;;  %v1061_v32 = vld [vmem:[%s1224_s23] ss:$24 sps:$4 sm:$0xff]   ;;  %v1063_v33 = vld [vmem:[%s1224_s23 + $0x4] ss:$24 sps:$4 sm:$0xff]   ;;  %v1071_v40 = vld [vmem:[%s1300_s1 + $0x150] sm:$0xff]  }
  0x12   : > { %954 = vmatprep.subr.bf16.mxu1 %v1042_v13  ;;  %v1064_v34 = vld [vmem:[%s1224_s23 + $0x8] ss:$24 sps:$4 sm:$0xff]   ;;  %v1066_v35 = vld [vmem:[%s1224_s23 + $0xc] ss:$24 sps:$4 sm:$0xff]   ;;  %639 = vmatprep.mubr.bf16.mxu0 %v1063_v33  ;;  %v1072_v41 = vld [vmem:[%s1300_s1 + $0x110] sm:$0xff]  }
  0x13   : > { %688 = vmatprep.mubr.bf16.mxu1 %v1066_v35  ;;  %v1073_v42 = vld [vmem:[%s1300_s1 + $0x158] sm:$0xff]   ;;  %v1077_v44 = vld [vmem:[%s1224_s23 + $0x34] ss:$24 sps:$4 sm:$0xff]   ;;  %v1075_v46 = vld [vmem:[%s1300_s1 + $0x160] sm:$0xff]  }
  0x14   : > { %927 = vmatpush3.bf16.msra.mxu0 %v1043_v14  ;;  %v1074_v43 = vld [vmem:[%s1300_s1 + $0x118] sm:$0xff]   ;;  %v1082_v47 = vld [vmem:[%s1224_s23 + $0x30] ss:$24 sps:$4 sm:$0xff]   ;;  %v1076_v49 = vld [vmem:[%s1300_s1 + $0x120] sm:$0xff]  }
  0x15   : > { %955 = vmatpush3.bf16.msra.mxu1 %v1044_v15  ;;  %928 = vmatprep.subr.bf16.mxu0 %v1045_v16  ;;  %v1079_v45 = vld [vmem:[%s1224_s23 + $0x3c] ss:$24 sps:$4 sm:$0xff]   ;;  %v1083_v48 = vld [vmem:[%s1224_s23 + $0x38] ss:$24 sps:$4 sm:$0xff]   ;;  %v1081_v50 = vld [vmem:[%s1300_s1 + $0x168] sm:$0xff]  }
  0x16   : > { %956 = vmatprep.subr.bf16.mxu1 %v1046_v17  ;;  %v1084_v51 = vld [vmem:[%s1300_s1 + $0x128] sm:$0xff]   ;;  %v1085_v53 = vld [vmem:[%s1300_s1 + $0x170] sm:$0xff]   ;;  %v1094_v54 = vld [vmem:[%s1224_s23 + $0x44] ss:$24 sps:$4 sm:$0xff]  }
  0x17   : > { %v1091_v52 = vld [vmem:[%s1224_s23 + $0x14] ss:$24 sps:$4 sm:$0xff]   ;;  %v1087_v56 = vld [vmem:[%s1300_s1 + $0x178] sm:$0xff]   ;;  %v1089_v58 = vld [vmem:[%s1224_s23 + $0x10] ss:$24 sps:$4 sm:$0xff]  }
  0x18   : > { %929 = vmatpush3.bf16.msra.mxu0 %v1047_v18  ;;  %v1086_v55 = vld [vmem:[%s1300_s1 + $0x130] sm:$0xff]   ;;  %v1088_v57 = vld [vmem:[%s1300_s1 + $0x138] sm:$0xff]  }
  0x19   : > { %957 = vmatpush3.bf16.msra.mxu1 %v1048_v19  ;;  %930 = vmatprep.subr.bf16.mxu0 %v1049_v20  ;;  %v1092_v59 = vld [vmem:[%s1224_s23 + $0x40] ss:$24 sps:$4 sm:$0xff]   ;;  %s838_s23 = sshll.u32 %s1303_s15, 2 }
  0x1a   : > { %958 = vmatprep.subr.bf16.mxu1 %v1050_v21  ;;  %s148_s8 = scalar_lea.vmem %s1301_s2, %s838_s23 }
  0x1c   : > { %931 = vmatpush3.bf16.msra.mxu0 %v1051_v22 }
  0x1d   : > { %959 = vmatpush3.bf16.msra.mxu1 %v1052_v23  ;;  %932 = vmatprep.subr.bf16.mxu0 %v1053_v24 }
  0x1e   : > { %960 = vmatprep.subr.bf16.mxu1 %v1054_v25 }
  0x20   : > { %933 = vmatpush3.bf16.msra.mxu0 %v1055_v26 }
  0x21   : > { %961 = vmatpush3.bf16.msra.mxu1 %v1056_v27  ;;  %934 = vmatprep.subr.bf16.mxu0 %v1057_v28 }
  0x22   : > { %962 = vmatprep.subr.bf16.mxu1 %v1058_v29 }
  0x24   : > { %935 = vmatpush3.bf16.msra.mxu0 %v1059_v30 }
  0x25   : > { %963 = vmatpush3.bf16.msra.mxu1 %v1060_v31  ;;  %976 = vmatprep.subr.bf16.mxu0 %v1067_v36 }
  0x26   : > { %1004 = vmatprep.subr.bf16.mxu1 %v1067_v36 }
  0x27   : > { %640 = vmatmul.mubr.bf16.vlgmr.msra.gmra.mrb[0].mxu0 %v1061_v32 }
  0x28   : > { %689 = vmatmul.mubr.bf16.vlgmr.msra.gmra.mrb[0].mxu1 %v1064_v34  ;;  %977 = vmatpush3.bf16.msra.mxu0 %v1068_v37 }
  0x29   : > { %1012 = vmatpush3.bf16.msra.mxu1 %v1068_v37  ;;  %978 = vmatprep.subr.bf16.mxu0 %v1069_v38 }
  0x2a   : > { %1005 = vmatprep.subr.bf16.mxu1 %v1069_v38  ;;  %647 = vmatprep.mubr.bf16.mxu0 %v1077_v44 }
  0x2b   : > { %696 = vmatprep.mubr.bf16.mxu1 %v1079_v45 }
  0x2c   : > { %979 = vmatpush3.bf16.msra.mxu0 %v1070_v39 }
  0x2d   : > { %1013 = vmatpush3.bf16.msra.mxu1 %v1070_v39  ;;  %980 = vmatprep.subr.bf16.mxu0 %v1071_v40 }
  0x2e   : > { %1006 = vmatprep.subr.bf16.mxu1 %v1071_v40 }
  0x2f   : > { %648 = vmatmul.mubr.bf16.gmra.mrb[4].mxu0 %v1082_v47 }
  0x30   : > { %981 = vmatpush3.bf16.msra.mxu0 %v1072_v41  ;;  %697 = vmatmul.mubr.bf16.gmra.mrb[4].mxu1 %v1083_v48 }
  0x31   : > { %1014 = vmatpush3.bf16.msra.mxu1 %v1072_v41  ;;  %982 = vmatprep.subr.bf16.mxu0 %v1073_v42 }
  0x32   : > { %1007 = vmatprep.subr.bf16.mxu1 %v1073_v42  ;;  %737 = vmatprep.mubr.bf16.mxu0 %v1091_v52 }
  0x33   : > { %745 = vmatprep.mubr.bf16.mxu1 %v1094_v54 }
  0x34   : > { %983 = vmatpush3.bf16.msra.mxu0 %v1074_v43 }
  0x35   : > { %1015 = vmatpush3.bf16.msra.mxu1 %v1074_v43  ;;  %984 = vmatprep.subr.bf16.mxu0 %v1075_v46 }
  0x36   : > { %1008 = vmatprep.subr.bf16.mxu1 %v1075_v46 }
  0x38   : > { %985 = vmatpush3.bf16.msra.mxu0 %v1076_v49 }
  0x39   : > { %1016 = vmatpush3.bf16.msra.mxu1 %v1076_v49  ;;  %986 = vmatprep.subr.bf16.mxu0 %v1081_v50 }
  0x3a   : > { %1009 = vmatprep.subr.bf16.mxu1 %v1081_v50 }
  0x3c   : > { %987 = vmatpush3.bf16.msra.mxu0 %v1084_v51 }
  0x3d   : > { %1017 = vmatpush3.bf16.msra.mxu1 %v1084_v51  ;;  %988 = vmatprep.subr.bf16.mxu0 %v1085_v53 }
  0x3e   : > { %1010 = vmatprep.subr.bf16.mxu1 %v1085_v53 }
  0x40   : > { %989 = vmatpush3.bf16.msra.mxu0 %v1086_v55 }
  0x41   : > { %1018 = vmatpush3.bf16.msra.mxu1 %v1086_v55  ;;  %990 = vmatprep.subr.bf16.mxu0 %v1087_v56 }
  0x42   : > { %1011 = vmatprep.subr.bf16.mxu1 %v1087_v56 }
  0x44   : > { %991 = vmatpush3.bf16.msra.mxu0 %v1088_v57 }
  0x45   : > { %1019 = vmatpush3.bf16.msra.mxu1 %v1088_v57 }
  0x47   : > { %738 = vmatmul.mubr.bf16.vlgmr.msra.gmra.mrb[8].mxu0 %v1089_v58 }
  0x48   : > { %746 = vmatmul.mubr.bf16.vlgmr.msra.gmra.mrb[8].mxu1 %v1092_v59 }
  0xfa   : > { %v936_v60 = vpop.f32.mrb[0].mxu0 }
  0xfb   : > { %v964_v61 = vpop.f32.mrb[0].mxu1  ;;  %v937_v62 = vpop.f32.mrb[1].mxu0 }
  0xfc   : > { %v938_v63 = vadd.f32 %v937_v62, %v936_v60  ;;  %v965_v0 = vpop.f32.mrb[1].mxu1  ;;  %v939_v1 = vpop.f32.mrb[2].mxu0 }
  0xfd   : > { %v966_v2 = vadd.f32 %v965_v0, %v964_v61  ;;  %v967_v3 = vpop.f32.mrb[2].mxu1  ;;  %v940_v4 = vpop.f32.mrb[3].mxu0 }
  0xfe   : > { %v941_v5 = vadd.f32 %v940_v4, %v939_v1  ;;  %v968_v6 = vpop.f32.mrb[3].mxu1 }
  0xff   : > { %v691_v7 = vadd.f32 %v966_v2, %v938_v63  ;;  %v969_v8 = vadd.f32 %v968_v6, %v967_v3 }
 0x101   : > { %v694_v9 = vadd.f32 %v969_v8, %v941_v5 }
 0x102   : > { %v942_v10 = vpop.f32.mrb[4].mxu0 }
 0x103   : > { %v970_v11 = vpop.f32.mrb[4].mxu1  ;;  %v943_v12 = vpop.f32.mrb[5].mxu0 }
 0x104   : > { %v944_v13 = vadd.f32 %v943_v12, %v942_v10  ;;  %v971_v14 = vpop.f32.mrb[5].mxu1  ;;  %v945_v15 = vpop.f32.mrb[6].mxu0 }
 0x105   : > { %v972_v16 = vadd.f32 %v971_v14, %v970_v11  ;;  %v973_v17 = vpop.f32.mrb[6].mxu1  ;;  %v946_v18 = vpop.f32.mrb[7].mxu0 }
 0x106   : > { %v947_v19 = vadd.f32 %v946_v18, %v945_v15  ;;  %v974_v20 = vpop.f32.mrb[7].mxu1 }
 0x107   : > { %v699_v21 = vadd.f32 %v972_v16, %v944_v13  ;;  %v975_v22 = vadd.f32 %v974_v20, %v973_v17 }
 0x109   : > { %v702_v23 = vadd.f32 %v975_v22, %v947_v19 }
 0x11a   : > { %v992_v24 = vpop.f32.mrb[8].mxu0 }
 0x11b   : > { %v998_v25 = vpop.f32.mrb[8].mxu1  ;;  %v993_v26 = vpop.f32.mrb[9].mxu0 }
 0x11c   : > { %v994_v27 = vadd.f32 %v993_v26, %v992_v24  ;;  %v999_v28 = vpop.f32.mrb[9].mxu1  ;;  %v995_v29 = vpop.f32.mrb[10].mxu0 }
 0x11d   : > { %v1000_v30 = vadd.f32 %v999_v28, %v998_v25  ;;  %v1001_v31 = vpop.f32.mrb[10].mxu1  ;;  %v996_v32 = vpop.f32.mrb[11].mxu0 }
 0x11e   : > { %v740_v33 = vadd.f32 %v994_v27, %v691_v7  ;;  %v997_v34 = vadd.f32 %v996_v32, %v995_v29  ;;  %v1002_v35 = vpop.f32.mrb[11].mxu1 }
 0x11f   : > { %v748_v36 = vadd.f32 %v1000_v30, %v699_v21  ;;  %v1003_v37 = vadd.f32 %v1002_v35, %v1001_v31 }
 0x120   : > { %v743_v38 = vadd.f32 %v997_v34, %v694_v9 }
 0x121   : > { %v751_v39 = vadd.f32 %v1003_v37, %v702_v23 }
 0x122   : > { %v912_v40 = vpack.c.bf16 %v743_v38, %v740_v33 }
 0x123   : > { %v917_v41 = vpack.c.bf16 %v751_v39, %v748_v36 }
 0x124   : > { %913 = vst [vmem:[%s148_s8] sm:$0xff] %v912_v40  }
 0x125   : > { %919 = vst [vmem:[%s148_s8 + $0x8] sm:$0xff] %v917_v41  }
 0x126 PF: > { %s12_s9 = sadd.s32 1, %s1101_s9  }
 0x127   : > { %p9_p4 = scmp.ge.s32.totalorder %s12_s9, 4  }
 0x129   :  { %11 = sbr.rel (!%p9_p4) target bundleno = 1 (0x1), region = 58 }

// kernel: forward.48
= control target key start
LH: loop header
LB: loop body
LE: loop exit
PB: predicated region body
PF: predicated region fallthrough
CT: control target
= control target key end

     0   :  { %s739_s9 = smov 0   ;;  %s832_s0 = inlined_call_operand.vmem [shape: bf16[64,384], index: 0, kind: input, shape index: {}]   ;;  %s833_s1 = inlined_call_operand.vmem [shape: bf16[384,128], index: 1, kind: input, shape index: {}]   ;;  %s834_s2 = inlined_call_operand.vmem [shape: bf16[64,128], index: 2, kind: output, shape index: {}]  }
   0x1 LB: > { %s557_s10 = sadd.s32 4294967295, %s722_s9   ;;  %p561_p0 = scmp.ge.s32.totalorder %s722_s9, 1  ;;  %s722_s9 = sphi %s739_s9, %s12_s9  }
   0x2   : > { %p114_p1 = scmp.lt.s32.totalorder %s722_s9, 3 }
   0x4   : > { %p115_p2 = pnand %p561_p0, %p114_p1 }
   0x5   : > { %v684_v0 = vld [vmem:[%s833_s1 + $0x40] sm:$0xff] (!%p115_p2)   ;;  %v687_v3 = vld [vmem:[%s833_s1 + $0x48] sm:$0xff] (!%p115_p2)   ;;  %v690_v6 = vld [vmem:[%s833_s1 + $0x50] sm:$0xff] (!%p115_p2)   ;;  %s562_s27 = sshll.u32 (!%p115_p2), %s557_s10, 2 }
   0x6   : > { %118 = sbr.rel (%p115_p2) target bundleno = 268 (0x10c), region = 28  ;;  %v685_v1 = vld [vmem:[%s833_s1] sm:$0xff] (!%p115_p2)   ;;  %617 = vmatprep.subr.bf16.mxu0 (!%p115_p2), %v684_v0  ;;  %v688_v4 = vld [vmem:[%s833_s1 + $0x8] sm:$0xff] (!%p115_p2)   ;;  %v691_v7 = vld [vmem:[%s833_s1 + $0x10] sm:$0xff] (!%p115_p2)   ;;  %p138_p3 = scmp.lt.s32.totalorder (!%p115_p2), %s562_s27, 7 }
   0x7   : > { %v686_v2 = vld [vmem:[%s833_s1 + $0x80] sm:$0xff] (!%p115_p2)   ;;  %618 = vmatpush3.bf16.msra.mxu0 (!%p115_p2), %v685_v1  ;;  %v689_v5 = vld [vmem:[%s833_s1 + $0x88] sm:$0xff] (!%p115_p2)   ;;  %v692_v8 = vld [vmem:[%s833_s1 + $0x90] sm:$0xff] (!%p115_p2)  }
   0x8   : > { %655 = vmatprep.subr.bf16.mxu1 (!%p115_p2), %v686_v2  ;;  %619 = vmatprep.subr.bf16.mxu0 (!%p115_p2), %v687_v3  ;;  %v693_v9 = vld [vmem:[%s833_s1 + $0x58] sm:$0xff] (!%p115_p2)   ;;  %v696_v12 = vld [vmem:[%s833_s1 + $0x60] sm:$0xff] (!%p115_p2)   ;;  %v699_v15 = vld [vmem:[%s833_s1 + $0x68] sm:$0xff] (!%p115_p2)  }
   0x9   : > { %656 = vmatpush3.bf16.msra.mxu1 (!%p115_p2), %v686_v2  ;;  %v694_v10 = vld [vmem:[%s833_s1 + $0x18] sm:$0xff] (!%p115_p2)   ;;  %v698_v13 = vld [vmem:[%s833_s1 + $0xa0] sm:$0xff] (!%p115_p2)   ;;  %v701_v16 = vld [vmem:[%s833_s1 + $0xa8] sm:$0xff] (!%p115_p2)  }
   0xa   : > { %657 = vmatprep.subr.bf16.mxu1 (!%p115_p2), %v689_v5  ;;  %v695_v11 = vld [vmem:[%s833_s1 + $0x98] sm:$0xff] (!%p115_p2)   ;;  %v697_v14 = vld [vmem:[%s833_s1 + $0x20] sm:$0xff] (!%p115_p2)   ;;  %v700_v17 = vld [vmem:[%s833_s1 + $0x28] sm:$0xff] (!%p115_p2)  }
   0xb   : > { %620 = vmatpush3.bf16.msra.mxu0 (!%p115_p2), %v688_v4  ;;  %v702_v18 = vld [vmem:[%s833_s1 + $0x70] sm:$0xff] (!%p115_p2)   ;;  %v705_v21 = vld [vmem:[%s833_s1 + $0x78] sm:$0xff] (!%p115_p2)  }
   0xc   : > { %621 = vmatprep.subr.bf16.mxu0 (!%p115_p2), %v690_v6  ;;  %v703_v19 = vld [vmem:[%s833_s1 + $0x30] sm:$0xff] (!%p115_p2)   ;;  %v707_v22 = vld [vmem:[%s833_s1 + $0xb8] sm:$0xff] (!%p115_p2)  }
   0xd   : > { %658 = vmatpush3.bf16.msra.mxu1 %v689_v5  ;;  %s836_s27 = smov (!%p138_p3, %s562_s27), 7  ;;  %v704_v20 = vld [vmem:[%s833_s1 + $0xb0] sm:$0xff]   ;;  %v706_v25 = vld [vmem:[%s833_s1 + $0x38] sm:$0xff]  }
   0xe   : > { %659 = vmatprep.subr.bf16.mxu1 %v692_v8  ;;  %s675_s19 = smul.u32 12, %s836_s27  ;;  %s565_s11 = sshll.u32 %s836_s27, 2 }
   0xf   : > { %622 = vmatpush3.bf16.msra.mxu0 %v691_v7  ;;  %s148_s14 = scalar_lea.vmem %s834_s2, %s565_s11 }
  0x10   : > { %623 = vmatprep.subr.bf16.mxu0 %v693_v9  ;;  %s142_s3 = scalar_lea.vmem %s832_s0, %s675_s19 }
  0x11   : > { %660 = vmatpush3.bf16.msra.mxu1 %v692_v8  ;;  %v710_v23 = vld [vmem:[%s142_s3 + $0x4] ss:$12 sps:$4 sm:$0xff]   ;;  %v711_v24 = vld [vmem:[%s142_s3 + $0x8] ss:$12 sps:$4 sm:$0xff]   ;;  %v708_v26 = vld [vmem:[%s142_s3] ss:$12 sps:$4 sm:$0xff]  }
  0x12   : > { %661 = vmatprep.subr.bf16.mxu1 %v695_v11  ;;  %415 = vmatprep.mubr.bf16.mxu0 %v710_v23  ;;  %v713_v27 = vld [vmem:[%s142_s3 + $0x1c] ss:$12 sps:$4 sm:$0xff]   ;;  %v712_v28 = vld [vmem:[%s142_s3 + $0x20] ss:$12 sps:$4 sm:$0xff]   ;;  %v715_v29 = vld [vmem:[%s142_s3 + $0x18] ss:$12 sps:$4 sm:$0xff]  }
  0x13   : > { %624 = vmatpush3.bf16.msra.mxu0 %v694_v10  ;;  %671 = vmatprep.mubr.bf16.mxu1 %v711_v24 }
  0x14   : > { %625 = vmatprep.subr.bf16.mxu0 %v696_v12 }
  0x15   : > { %662 = vmatpush3.bf16.msra.mxu1 %v695_v11 }
  0x16   : > { %663 = vmatprep.subr.bf16.mxu1 %v698_v13 }
  0x17   : > { %626 = vmatpush3.bf16.msra.mxu0 %v697_v14 }
  0x18   : > { %627 = vmatprep.subr.bf16.mxu0 %v699_v15 }
  0x19   : > { %664 = vmatpush3.bf16.msra.mxu1 %v698_v13 }
  0x1a   : > { %665 = vmatprep.subr.bf16.mxu1 %v701_v16 }
  0x1b   : > { %628 = vmatpush3.bf16.msra.mxu0 %v700_v17 }
  0x1c   : > { %629 = vmatprep.subr.bf16.mxu0 %v702_v18 }
  0x1d   : > { %666 = vmatpush3.bf16.msra.mxu1 %v701_v16 }
  0x1e   : > { %667 = vmatprep.subr.bf16.mxu1 %v704_v20 }
  0x1f   : > { %630 = vmatpush3.bf16.msra.mxu0 %v703_v19 }
  0x20   : > { %631 = vmatprep.subr.bf16.mxu0 %v705_v21 }
  0x21   : > { %668 = vmatpush3.bf16.msra.mxu1 %v704_v20 }
  0x22   : > { %669 = vmatprep.subr.bf16.mxu1 %v707_v22 }
  0x23   : > { %632 = vmatpush3.bf16.msra.mxu0 %v706_v25 }
  0x25   : > { %670 = vmatpush3.bf16.msra.mxu1 %v707_v22 }
  0x26   : > { %416 = vmatmul.mubr.bf16.vlgmr.msra.gmra.mrb[0].mxu0 %v708_v26 }
  0x27   : > { %423 = vmatprep.mubr.bf16.mxu0 %v713_v27 }
  0x28   : > { %672 = vmatmul.mubr.bf16.vlgmr.msra.gmra.mrb[0].mxu1 %v712_v28 }
  0x2e   : > { %424 = vmatmul.mubr.bf16.gmra.mrb[4].mxu0 %v715_v29 }
  0xf9   : > { %v633_v30 = vpop.f32.mrb[0].mxu0 }
  0xfa   : > { %v634_v31 = vpop.f32.mrb[1].mxu0 }
  0xfb   : > { %v635_v32 = vadd.f32 %v634_v31, %v633_v30  ;;  %v636_v33 = vpop.f32.mrb[2].mxu0  ;;  %v673_v34 = vpop.f32.mrb[0].mxu1 }
  0xfc   : > { %v637_v35 = vpop.f32.mrb[3].mxu0  ;;  %v466_v36 = vpop.f32.mrb[1].mxu1 }
  0xfd   : > { %v638_v37 = vadd.f32 %v637_v35, %v636_v33  ;;  %v467_v38 = vadd.f32 %v635_v32, %v466_v36  ;;  %v674_v39 = vpop.f32.mrb[2].mxu1 }
  0xfe   : > { %v469_v40 = vpop.f32.mrb[3].mxu1 }
  0xff   : > { %v470_v41 = vadd.f32 %v638_v37, %v469_v40 }
 0x101   : > { %v609_v42 = vpack.c.bf16 %v470_v41, %v467_v38  ;;  %v639_v43 = vpop.f32.mrb[4].mxu0 }
 0x102   : > { %v640_v44 = vpop.f32.mrb[5].mxu0 }
 0x103   : > { %610 = vst [vmem:[%s148_s14] sm:$0xff] %v609_v42   ;;  %v641_v45 = vadd.f32 %v640_v44, %v639_v43  ;;  %v642_v46 = vpop.f32.mrb[6].mxu0 }
 0x104   : > { %v643_v47 = vpop.f32.mrb[7].mxu0 }
 0x105   : > { %v475_v48 = vadd.f32 %v673_v34, %v641_v45  ;;  %v644_v49 = vadd.f32 %v643_v47, %v642_v46 }
 0x107   : > { %v478_v50 = vadd.f32 %v674_v39, %v644_v49 }
 0x109   : > { %v614_v51 = vpack.c.bf16 %v478_v50, %v475_v48 }
 0x10b   : > { %616 = vst [vmem:[%s148_s14 + $0x8] sm:$0xff] %v614_v51  }
 0x10c PF: > { %s12_s9 = sadd.s32 1, %s722_s9  }
 0x10d   : > { %p9_p4 = scmp.ge.s32.totalorder %s12_s9, 4  }
 0x10f   :  { %11 = sbr.rel (!%p9_p4) target bundleno = 1 (0x1), region = 58 }

// kernel: forward.51
= control target key start
LH: loop header
LB: loop body
LE: loop exit
PB: predicated region body
PF: predicated region fallthrough
CT: control target
= control target key end

     0   :  { %s1281_s9 = smov 0   ;;  %s1488_s0 = inlined_call_operand.vmem [shape: bf16[64,896], index: 0, kind: input, shape index: {}]   ;;  %s1489_s1 = inlined_call_operand.vmem [shape: bf16[896,128], index: 1, kind: input, shape index: {}]   ;;  %s1490_s2 = inlined_call_operand.vmem [shape: bf16[64,128], index: 2, kind: output, shape index: {}]  }
   0x1 LB: > { %s959_s10 = sadd.s32 4294967295, %s1264_s9   ;;  %p963_p0 = scmp.ge.s32.totalorder %s1264_s9, 1  ;;  %s1264_s9 = sphi %s1281_s9, %s12_s9  }
   0x2   : > { %p114_p1 = scmp.lt.s32.totalorder %s1264_s9, 3 }
   0x4   : > { %p115_p2 = pnand %p963_p0, %p114_p1 }
   0x5   : > { %v1182_v0 = vld [vmem:[%s1489_s1 + $0x40] sm:$0xff] (!%p115_p2)   ;;  %v1186_v4 = vld [vmem:[%s1489_s1 + $0x48] sm:$0xff] (!%p115_p2)   ;;  %v1190_v8 = vld [vmem:[%s1489_s1 + $0x50] sm:$0xff] (!%p115_p2)   ;;  %s964_s15 = sshll.u32 (!%p115_p2), %s959_s10, 2 }
   0x6   : > { %118 = sbr.rel (%p115_p2) target bundleno = 303 (0x12f), region = 28  ;;  %v1183_v1 = vld [vmem:[%s1489_s1 + $0xc0] sm:$0xff] (!%p115_p2)   ;;  %1059 = vmatprep.subr.bf16.mxu0 (!%p115_p2), %v1182_v0  ;;  %v1187_v5 = vld [vmem:[%s1489_s1 + $0xc8] sm:$0xff] (!%p115_p2)   ;;  %v1191_v9 = vld [vmem:[%s1489_s1 + $0xd0] sm:$0xff] (!%p115_p2)   ;;  %p138_p3 = scmp.lt.s32.totalorder (!%p115_p2), %s964_s15, 7 }
   0x7   : > { %v1184_v2 = vld [vmem:[%s1489_s1] sm:$0xff] (!%p115_p2)   ;;  %1087 = vmatprep.subr.bf16.mxu1 (!%p115_p2), %v1183_v1  ;;  %v1188_v6 = vld [vmem:[%s1489_s1 + $0x8] sm:$0xff] (!%p115_p2)   ;;  %v1192_v10 = vld [vmem:[%s1489_s1 + $0x10] sm:$0xff] (!%p115_p2)  }
   0x8   : > { %v1185_v3 = vld [vmem:[%s1489_s1 + $0x80] sm:$0xff] (!%p115_p2)   ;;  %1060 = vmatpush3.bf16.msra.mxu0 (!%p115_p2), %v1184_v2  ;;  %v1189_v7 = vld [vmem:[%s1489_s1 + $0x88] sm:$0xff] (!%p115_p2)   ;;  %v1193_v11 = vld [vmem:[%s1489_s1 + $0x90] sm:$0xff] (!%p115_p2)  }
   0x9   : > { %1088 = vmatpush3.bf16.msra.mxu1 (!%p115_p2), %v1185_v3  ;;  %1061 = vmatprep.subr.bf16.mxu0 (!%p115_p2), %v1186_v4  ;;  %v1194_v12 = vld [vmem:[%s1489_s1 + $0x58] sm:$0xff] (!%p115_p2)   ;;  %v1198_v16 = vld [vmem:[%s1489_s1 + $0x60] sm:$0xff] (!%p115_p2)   ;;  %v1202_v20 = vld [vmem:[%s1489_s1 + $0x68] sm:$0xff] (!%p115_p2)  }
   0xa   : > { %1089 = vmatprep.subr.bf16.mxu1 (!%p115_p2), %v1187_v5  ;;  %v1195_v13 = vld [vmem:[%s1489_s1 + $0xd8] sm:$0xff] (!%p115_p2)   ;;  %v1199_v17 = vld [vmem:[%s1489_s1 + $0xe0] sm:$0xff] (!%p115_p2)   ;;  %v1203_v21 = vld [vmem:[%s1489_s1 + $0xe8] sm:$0xff] (!%p115_p2)  }
   0xb   : > { %v1196_v14 = vld [vmem:[%s1489_s1 + $0x18] sm:$0xff] (!%p115_p2)   ;;  %v1200_v18 = vld [vmem:[%s1489_s1 + $0x20] sm:$0xff] (!%p115_p2)   ;;  %v1204_v22 = vld [vmem:[%s1489_s1 + $0x28] sm:$0xff] (!%p115_p2)  }
   0xc   : > { %1062 = vmatpush3.bf16.msra.mxu0 (!%p115_p2), %v1188_v6  ;;  %v1197_v15 = vld [vmem:[%s1489_s1 + $0x98] sm:$0xff] (!%p115_p2)   ;;  %v1201_v19 = vld [vmem:[%s1489_s1 + $0xa0] sm:$0xff] (!%p115_p2)   ;;  %v1205_v23 = vld [vmem:[%s1489_s1 + $0xa8] sm:$0xff] (!%p115_p2)  }
   0xd   : > { %1090 = vmatpush3.bf16.msra.mxu1 %v1189_v7  ;;  %1063 = vmatprep.subr.bf16.mxu0 %v1190_v8  ;;  %s1492_s15 = smov (!%p138_p3, %s964_s15), 7  ;;  %v1206_v24 = vld [vmem:[%s1489_s1 + $0x70] sm:$0xff]   ;;  %v1210_v28 = vld [vmem:[%s1489_s1 + $0x78] sm:$0xff]   ;;  %v1220_v36 = vld [vmem:[%s1489_s1 + $0x140] sm:$0xff]  }
   0xe   : > { %1091 = vmatprep.subr.bf16.mxu1 %v1191_v9  ;;  %v1207_v25 = vld [vmem:[%s1489_s1 + $0xf0] sm:$0xff]   ;;  %s1173_s11 = smul.u32 28, %s1492_s15  ;;  %v1211_v29 = vld [vmem:[%s1489_s1 + $0xf8] sm:$0xff]   ;;  %v1221_v37 = vld [vmem:[%s1489_s1 + $0x100] sm:$0xff]  }
   0xf   : > { %v1208_v26 = vld [vmem:[%s1489_s1 + $0x30] sm:$0xff]   ;;  %v1212_v30 = vld [vmem:[%s1489_s1 + $0x38] sm:$0xff]   ;;  %v1222_v38 = vld [vmem:[%s1489_s1 + $0x148] sm:$0xff]  }
  0x10   : > { %1064 = vmatpush3.bf16.msra.mxu0 %v1192_v10  ;;  %v1209_v27 = vld [vmem:[%s1489_s1 + $0xb0] sm:$0xff]   ;;  %s1387_s23 = scalar_lea.vmem %s1488_s0, %s1173_s11  ;;  %v1213_v31 = vld [vmem:[%s1489_s1 + $0xb8] sm:$0xff]   ;;  %v1223_v39 = vld [vmem:[%s1489_s1 + $0x180] sm:$0xff]  }
  0x11   : > { %1092 = vmatpush3.bf16.msra.mxu1 %v1193_v11  ;;  %1065 = vmatprep.subr.bf16.mxu0 %v1194_v12  ;;  %v1214_v32 = vld [vmem:[%s1387_s23] ss:$28 sps:$4 sm:$0xff]   ;;  %v1217_v34 = vld [vmem:[%s1387_s23 + $0x8] ss:$28 sps:$4 sm:$0xff]   ;;  %v1225_v41 = vld [vmem:[%s1489_s1 + $0x150] sm:$0xff]  }
  0x12   : > { %1093 = vmatprep.subr.bf16.mxu1 %v1195_v13  ;;  %v1216_v33 = vld [vmem:[%s1387_s23 + $0x4] ss:$28 sps:$4 sm:$0xff]   ;;  %v1219_v35 = vld [vmem:[%s1387_s23 + $0xc] ss:$28 sps:$4 sm:$0xff]   ;;  %v1227_v43 = vld [vmem:[%s1489_s1 + $0x110] sm:$0xff]  }
  0x13   : > { %719 = vmatprep.mubr.bf16.mxu0 %v1216_v33  ;;  %768 = vmatprep.mubr.bf16.mxu1 %v1219_v35  ;;  %v1224_v40 = vld [vmem:[%s1489_s1 + $0x108] sm:$0xff]   ;;  %v1228_v44 = vld [vmem:[%s1489_s1 + $0x158] sm:$0xff]   ;;  %v1229_v45 = vld [vmem:[%s1489_s1 + $0x190] sm:$0xff]  }
  0x14   : > { %1066 = vmatpush3.bf16.msra.mxu0 %v1196_v14  ;;  %v1226_v42 = vld [vmem:[%s1489_s1 + $0x188] sm:$0xff]   ;;  %v1230_v46 = vld [vmem:[%s1489_s1 + $0x118] sm:$0xff]   ;;  %v1231_v47 = vld [vmem:[%s1489_s1 + $0x160] sm:$0xff]  }
  0x15   : > { %1094 = vmatpush3.bf16.msra.mxu1 %v1197_v15  ;;  %1067 = vmatprep.subr.bf16.mxu0 %v1198_v16  ;;  %v1232_v48 = vld [vmem:[%s1489_s1 + $0x198] sm:$0xff]   ;;  %v1233_v49 = vld [vmem:[%s1489_s1 + $0x120] sm:$0xff]   ;;  %v1238_v52 = vld [vmem:[%s1489_s1 + $0x168] sm:$0xff]  }
  0x16   : > { %1095 = vmatprep.subr.bf16.mxu1 %v1199_v17  ;;  %v1234_v50 = vld [vmem:[%s1387_s23 + $0x3c] ss:$28 sps:$4 sm:$0xff]   ;;  %v1236_v51 = vld [vmem:[%s1387_s23 + $0x44] ss:$28 sps:$4 sm:$0xff]   ;;  %v1242_v56 = vld [vmem:[%s1489_s1 + $0x128] sm:$0xff]  }
  0x17   : > { %v1239_v53 = vld [vmem:[%s1489_s1 + $0x1a0] sm:$0xff]   ;;  %v1240_v54 = vld [vmem:[%s1387_s23 + $0x38] ss:$28 sps:$4 sm:$0xff]   ;;  %v1244_v58 = vld [vmem:[%s1489_s1 + $0x1a8] sm:$0xff]  }
  0x18   : > { %1068 = vmatpush3.bf16.msra.mxu0 %v1200_v18  ;;  %v1241_v55 = vld [vmem:[%s1387_s23 + $0x40] ss:$28 sps:$4 sm:$0xff]   ;;  %v1243_v57 = vld [vmem:[%s1489_s1 + $0x170] sm:$0xff]   ;;  %v1255_v3 = vld [vmem:[%s1387_s23 + $0x4c] ss:$28 sps:$4 sm:$0xff]  }
  0x19   : > { %1096 = vmatpush3.bf16.msra.mxu1 %v1201_v19  ;;  %1069 = vmatprep.subr.bf16.mxu0 %v1202_v20  ;;  %v1245_v59 = vld [vmem:[%s1489_s1 + $0x130] sm:$0xff]   ;;  %v1246_v60 = vld [vmem:[%s1489_s1 + $0x178] sm:$0xff]   ;;  %v1257_v5 = vld [vmem:[%s1387_s23 + $0x48] ss:$28 sps:$4 sm:$0xff]  }
  0x1a   : > { %1097 = vmatprep.subr.bf16.mxu1 %v1203_v21  ;;  %v1247_v61 = vld [vmem:[%s1489_s1 + $0x1b0] sm:$0xff]   ;;  %v1248_v62 = vld [vmem:[%s1489_s1 + $0x138] sm:$0xff]  }
  0x1b   : > { %v1251_v63 = vld [vmem:[%s1387_s23 + $0x14] ss:$28 sps:$4 sm:$0xff]   ;;  %v1252_v0 = vld [vmem:[%s1489_s1 + $0x1b8] sm:$0xff]  }
  0x1c   : > { %1070 = vmatpush3.bf16.msra.mxu0 %v1204_v22  ;;  %v1253_v1 = vld [vmem:[%s1387_s23 + $0x18] ss:$28 sps:$4 sm:$0xff]   ;;  %v1249_v2 = vld [vmem:[%s1387_s23 + $0x10] ss:$28 sps:$4 sm:$0xff]  }
  0x1d   : > { %1098 = vmatpush3.bf16.msra.mxu1 %v1205_v23  ;;  %1071 = vmatprep.subr.bf16.mxu0 %v1206_v24  ;;  %v1254_v4 = vld [vmem:[%s1387_s23 + $0x50] ss:$28 sps:$4 sm:$0xff]   ;;  %s967_s23 = sshll.u32 %s1492_s15, 2 }
  0x1e   : > { %1099 = vmatprep.subr.bf16.mxu1 %v1207_v25  ;;  %s148_s27 = scalar_lea.vmem %s1490_s2, %s967_s23 }
  0x20   : > { %1072 = vmatpush3.bf16.msra.mxu0 %v1208_v26 }
  0x21   : > { %1100 = vmatpush3.bf16.msra.mxu1 %v1209_v27  ;;  %1073 = vmatprep.subr.bf16.mxu0 %v1210_v28 }
  0x22   : > { %1101 = vmatprep.subr.bf16.mxu1 %v1211_v29 }
  0x24   : > { %1074 = vmatpush3.bf16.msra.mxu0 %v1212_v30 }
  0x25   : > { %1102 = vmatpush3.bf16.msra.mxu1 %v1213_v31  ;;  %1115 = vmatprep.subr.bf16.mxu0 %v1220_v36 }
  0x26   : > { %1153 = vmatprep.subr.bf16.mxu1 %v1223_v39 }
  0x27   : > { %720 = vmatmul.mubr.bf16.vlgmr.msra.gmra.mrb[0].mxu0 %v1214_v32 }
  0x28   : > { %769 = vmatmul.mubr.bf16.vlgmr.msra.gmra.mrb[0].mxu1 %v1217_v34  ;;  %1116 = vmatpush3.bf16.msra.mxu0 %v1221_v37 }
  0x29   : > { %1117 = vmatprep.subr.bf16.mxu0 %v1222_v38  ;;  %1154 = vmatpush3.bf16.msra.mxu1 %v1223_v39 }
  0x2a   : > { %1155 = vmatprep.subr.bf16.mxu1 %v1226_v42  ;;  %727 = vmatprep.mubr.bf16.mxu0 %v1234_v50 }
  0x2b   : > { %776 = vmatprep.mubr.bf16.mxu1 %v1236_v51 }
  0x2c   : > { %1118 = vmatpush3.bf16.msra.mxu0 %v1224_v40 }
  0x2d   : > { %1119 = vmatprep.subr.bf16.mxu0 %v1225_v41  ;;  %1156 = vmatpush3.bf16.msra.mxu1 %v1226_v42 }
  0x2e   : > { %1157 = vmatprep.subr.bf16.mxu1 %v1229_v45 }
  0x2f   : > { %728 = vmatmul.mubr.bf16.gmra.mrb[4].mxu0 %v1240_v54 }
  0x30   : > { %1120 = vmatpush3.bf16.msra.mxu0 %v1227_v43  ;;  %777 = vmatmul.mubr.bf16.gmra.mrb[4].mxu1 %v1241_v55 }
  0x31   : > { %1121 = vmatprep.subr.bf16.mxu0 %v1228_v44  ;;  %1158 = vmatpush3.bf16.msra.mxu1 %v1229_v45 }
  0x32   : > { %1159 = vmatprep.subr.bf16.mxu1 %v1232_v48  ;;  %817 = vmatprep.mubr.bf16.mxu0 %v1251_v63 }
  0x33   : > { %1169 = vmatprep.mubr.bf16.mxu1 %v1253_v1 }
  0x34   : > { %1122 = vmatpush3.bf16.msra.mxu0 %v1230_v46 }
  0x35   : > { %1123 = vmatprep.subr.bf16.mxu0 %v1231_v47  ;;  %1160 = vmatpush3.bf16.msra.mxu1 %v1232_v48 }
  0x36   : > { %1161 = vmatprep.subr.bf16.mxu1 %v1239_v53 }
  0x38   : > { %1124 = vmatpush3.bf16.msra.mxu0 %v1233_v49 }
  0x39   : > { %1125 = vmatprep.subr.bf16.mxu0 %v1238_v52  ;;  %1162 = vmatpush3.bf16.msra.mxu1 %v1239_v53 }
  0x3a   : > { %1163 = vmatprep.subr.bf16.mxu1 %v1244_v58 }
  0x3c   : > { %1126 = vmatpush3.bf16.msra.mxu0 %v1242_v56 }
  0x3d   : > { %1127 = vmatprep.subr.bf16.mxu0 %v1243_v57  ;;  %1164 = vmatpush3.bf16.msra.mxu1 %v1244_v58 }
  0x3e   : > { %1165 = vmatprep.subr.bf16.mxu1 %v1247_v61 }
  0x40   : > { %1128 = vmatpush3.bf16.msra.mxu0 %v1245_v59 }
  0x41   : > { %1129 = vmatprep.subr.bf16.mxu0 %v1246_v60  ;;  %1166 = vmatpush3.bf16.msra.mxu1 %v1247_v61 }
  0x42   : > { %1167 = vmatprep.subr.bf16.mxu1 %v1252_v0 }
  0x44   : > { %1130 = vmatpush3.bf16.msra.mxu0 %v1248_v62 }
  0x45   : > { %1168 = vmatpush3.bf16.msra.mxu1 %v1252_v0 }
  0x47   : > { %818 = vmatmul.mubr.bf16.vlgmr.msra.gmra.mrb[8].mxu0 %v1249_v2 }
  0x48   : > { %825 = vmatprep.mubr.bf16.mxu0 %v1255_v3  ;;  %1170 = vmatmul.mubr.bf16.vlgmr.msra.gmra.mrb[8].mxu1 %v1254_v4 }
  0x4f   : > { %826 = vmatmul.mubr.bf16.gmra.mrb[12].mxu0 %v1257_v5 }
  0xfa   : > { %v1075_v6 = vpop.f32.mrb[0].mxu0 }
  0xfb   : > { %v1103_v7 = vpop.f32.mrb[0].mxu1  ;;  %v1076_v8 = vpop.f32.mrb[1].mxu0 }
  0xfc   : > { %v1077_v9 = vadd.f32 %v1076_v8, %v1075_v6  ;;  %v1104_v10 = vpop.f32.mrb[1].mxu1  ;;  %v1078_v11 = vpop.f32.mrb[2].mxu0 }
  0xfd   : > { %v1105_v12 = vadd.f32 %v1104_v10, %v1103_v7  ;;  %v1106_v13 = vpop.f32.mrb[2].mxu1  ;;  %v1079_v14 = vpop.f32.mrb[3].mxu0 }
  0xfe   : > { %v1080_v15 = vadd.f32 %v1079_v14, %v1078_v11  ;;  %v1107_v16 = vpop.f32.mrb[3].mxu1 }
  0xff   : > { %v771_v17 = vadd.f32 %v1105_v12, %v1077_v9  ;;  %v1108_v18 = vadd.f32 %v1107_v16, %v1106_v13 }
 0x101   : > { %v774_v19 = vadd.f32 %v1108_v18, %v1080_v15 }
 0x102   : > { %v1081_v20 = vpop.f32.mrb[4].mxu0 }
 0x103   : > { %v1109_v21 = vpop.f32.mrb[4].mxu1  ;;  %v1082_v22 = vpop.f32.mrb[5].mxu0 }
 0x104   : > { %v1083_v23 = vadd.f32 %v1082_v22, %v1081_v20  ;;  %v1110_v24 = vpop.f32.mrb[5].mxu1  ;;  %v1084_v25 = vpop.f32.mrb[6].mxu0 }
 0x105   : > { %v1111_v26 = vadd.f32 %v1110_v24, %v1109_v21  ;;  %v1112_v27 = vpop.f32.mrb[6].mxu1  ;;  %v1085_v28 = vpop.f32.mrb[7].mxu0 }
 0x106   : > { %v1086_v29 = vadd.f32 %v1085_v28, %v1084_v25  ;;  %v1113_v30 = vpop.f32.mrb[7].mxu1 }
 0x107   : > { %v779_v31 = vadd.f32 %v1111_v26, %v1083_v23  ;;  %v1114_v32 = vadd.f32 %v1113_v30, %v1112_v27 }
 0x109   : > { %v782_v33 = vadd.f32 %v1114_v32, %v1086_v29 }
 0x11a   : > { %v1131_v34 = vpop.f32.mrb[8].mxu0 }
 0x11b   : > { %v1132_v35 = vpop.f32.mrb[9].mxu0  ;;  %v1171_v39 = vpop.f32.mrb[8].mxu1 }
 0x11c   : > { %v1133_v36 = vadd.f32 %v1132_v35, %v1131_v34  ;;  %v1134_v37 = vpop.f32.mrb[10].mxu0  ;;  %v868_v42 = vpop.f32.mrb[9].mxu1 }
 0x11d   : > { %v1135_v38 = vpop.f32.mrb[11].mxu0  ;;  %v1172_v43 = vpop.f32.mrb[10].mxu1 }
 0x11e   : > { %v1136_v40 = vadd.f32 %v1135_v38, %v1134_v37  ;;  %v820_v41 = vadd.f32 %v1133_v36, %v771_v17  ;;  %v871_v46 = vpop.f32.mrb[11].mxu1 }
 0x120   : > { %v869_v44 = vadd.f32 %v868_v42, %v820_v41  ;;  %v823_v45 = vadd.f32 %v1136_v40, %v774_v19 }
 0x122   : > { %v872_v47 = vadd.f32 %v871_v46, %v823_v45  ;;  %v1137_v48 = vpop.f32.mrb[12].mxu0 }
 0x123   : > { %v1138_v49 = vpop.f32.mrb[13].mxu0 }
 0x124   : > { %v1051_v50 = vpack.c.bf16 %v872_v47, %v869_v44  ;;  %v1139_v51 = vadd.f32 %v1138_v49, %v1137_v48  ;;  %v1140_v52 = vpop.f32.mrb[14].mxu0 }
 0x125   : > { %v1141_v53 = vpop.f32.mrb[15].mxu0 }
 0x126   : > { %1052 = vst [vmem:[%s148_s27] sm:$0xff] %v1051_v50   ;;  %v828_v54 = vadd.f32 %v1139_v51, %v779_v31  ;;  %v1142_v55 = vadd.f32 %v1141_v53, %v1140_v52 }
 0x128   : > { %v877_v56 = vadd.f32 %v1171_v39, %v828_v54  ;;  %v831_v57 = vadd.f32 %v1142_v55, %v782_v33 }
 0x12a   : > { %v880_v58 = vadd.f32 %v1172_v43, %v831_v57 }
 0x12c   : > { %v1056_v59 = vpack.c.bf16 %v880_v58, %v877_v56 }
 0x12e   : > { %1058 = vst [vmem:[%s148_s27 + $0x8] sm:$0xff] %v1056_v59  }
 0x12f PF: > { %s12_s9 = sadd.s32 1, %s1264_s9  }
 0x130   : > { %p9_p4 = scmp.ge.s32.totalorder %s12_s9, 4  }
 0x132   :  { %11 = sbr.rel (!%p9_p4) target bundleno = 1 (0x1), region = 58 }

// kernel: forward.57
= control target key start
LH: loop header
LB: loop body
LE: loop exit
PB: predicated region body
PF: predicated region fallthrough
CT: control target
= control target key end

     0   :  { %s888_s9 = smov 0   ;;  %s1012_s0 = inlined_call_operand.vmem [shape: bf16[80,512], index: 0, kind: input, shape index: {}]   ;;  %s1013_s1 = inlined_call_operand.vmem [shape: bf16[512,128], index: 1, kind: input, shape index: {}]   ;;  %s1014_s2 = inlined_call_operand.vmem [shape: bf16[80,128], index: 2, kind: output, shape index: {}]  }
   0x1 LB: > { %s665_s10 = sadd.s32 4294967295, %s871_s9   ;;  %p669_p0 = scmp.ge.s32.totalorder %s871_s9, 1  ;;  %s871_s9 = sphi %s888_s9, %s12_s9  }
   0x2   : > { %p114_p1 = scmp.lt.s32.totalorder %s871_s9, 3 }
   0x4   : > { %p115_p2 = pnand %p669_p0, %p114_p1 }
   0x5   : > { %v817_v0 = vld [vmem:[%s1013_s1 + $0x40] sm:$0xff] (!%p115_p2)   ;;  %v821_v4 = vld [vmem:[%s1013_s1 + $0x48] sm:$0xff] (!%p115_p2)   ;;  %v825_v8 = vld [vmem:[%s1013_s1 + $0x50] sm:$0xff] (!%p115_p2)   ;;  %s137_s15 = smul.u32 (!%p115_p2), 5, %s665_s10 }
   0x6   : > { %118 = sbr.rel (%p115_p2) target bundleno = 276 (0x114), region = 28  ;;  %v818_v1 = vld [vmem:[%s1013_s1 + $0xc0] sm:$0xff] (!%p115_p2)   ;;  %741 = vmatprep.subr.bf16.mxu0 (!%p115_p2), %v817_v0  ;;  %v822_v5 = vld [vmem:[%s1013_s1 + $0xc8] sm:$0xff] (!%p115_p2)   ;;  %v826_v9 = vld [vmem:[%s1013_s1 + $0xd0] sm:$0xff] (!%p115_p2)  }
   0x7   : > { %v819_v2 = vld [vmem:[%s1013_s1] sm:$0xff] (!%p115_p2)   ;;  %775 = vmatprep.subr.bf16.mxu1 (!%p115_p2), %v818_v1  ;;  %v823_v6 = vld [vmem:[%s1013_s1 + $0x8] sm:$0xff] (!%p115_p2)   ;;  %v827_v10 = vld [vmem:[%s1013_s1 + $0x10] sm:$0xff] (!%p115_p2)   ;;  %p138_p3 = scmp.lt.s32.totalorder (!%p115_p2), %s137_s15, 9 }
   0x8   : > { %v820_v3 = vld [vmem:[%s1013_s1 + $0x80] sm:$0xff] (!%p115_p2)   ;;  %742 = vmatpush3.bf16.msra.mxu0 (!%p115_p2), %v819_v2  ;;  %v824_v7 = vld [vmem:[%s1013_s1 + $0x88] sm:$0xff] (!%p115_p2)   ;;  %v828_v11 = vld [vmem:[%s1013_s1 + $0x90] sm:$0xff] (!%p115_p2)  }
   0x9   : > { %776 = vmatpush3.bf16.msra.mxu1 (!%p115_p2), %v820_v3  ;;  %743 = vmatprep.subr.bf16.mxu0 (!%p115_p2), %v821_v4  ;;  %v829_v12 = vld [vmem:[%s1013_s1 + $0x58] sm:$0xff] (!%p115_p2)   ;;  %v833_v16 = vld [vmem:[%s1013_s1 + $0x60] sm:$0xff] (!%p115_p2)   ;;  %v837_v20 = vld [vmem:[%s1013_s1 + $0x68] sm:$0xff] (!%p115_p2)  }
   0xa   : > { %777 = vmatprep.subr.bf16.mxu1 (!%p115_p2), %v822_v5  ;;  %v830_v13 = vld [vmem:[%s1013_s1 + $0xd8] sm:$0xff] (!%p115_p2)   ;;  %v834_v17 = vld [vmem:[%s1013_s1 + $0xe0] sm:$0xff] (!%p115_p2)   ;;  %v838_v21 = vld [vmem:[%s1013_s1 + $0xe8] sm:$0xff] (!%p115_p2)  }
   0xb   : > { %v831_v14 = vld [vmem:[%s1013_s1 + $0x18] sm:$0xff] (!%p115_p2)   ;;  %v835_v18 = vld [vmem:[%s1013_s1 + $0x20] sm:$0xff] (!%p115_p2)   ;;  %v839_v22 = vld [vmem:[%s1013_s1 + $0x28] sm:$0xff] (!%p115_p2)  }
   0xc   : > { %744 = vmatpush3.bf16.msra.mxu0 (!%p115_p2), %v823_v6  ;;  %v832_v15 = vld [vmem:[%s1013_s1 + $0x98] sm:$0xff] (!%p115_p2)   ;;  %v836_v19 = vld [vmem:[%s1013_s1 + $0xa0] sm:$0xff] (!%p115_p2)   ;;  %v840_v23 = vld [vmem:[%s1013_s1 + $0xa8] sm:$0xff] (!%p115_p2)  }
   0xd   : > { %778 = vmatpush3.bf16.msra.mxu1 %v824_v7  ;;  %745 = vmatprep.subr.bf16.mxu0 %v825_v8  ;;  %s1016_s15 = smov (!%p138_p3, %s137_s15), 9  ;;  %v841_v24 = vld [vmem:[%s1013_s1 + $0x70] sm:$0xff]   ;;  %v845_v28 = vld [vmem:[%s1013_s1 + $0x78] sm:$0xff]  }
   0xe   : > { %779 = vmatprep.subr.bf16.mxu1 %v826_v9  ;;  %v842_v25 = vld [vmem:[%s1013_s1 + $0xf0] sm:$0xff]   ;;  %s724_s13 = sshll.u32 %s1016_s15, 4  ;;  %v846_v29 = vld [vmem:[%s1013_s1 + $0xf8] sm:$0xff]   ;;  %s672_s27 = sshll.u32 %s1016_s15, 2 }
   0xf   : > { %v843_v26 = vld [vmem:[%s1013_s1 + $0x30] sm:$0xff]   ;;  %s142_s23 = scalar_lea.vmem %s1012_s0, %s724_s13  ;;  %v847_v30 = vld [vmem:[%s1013_s1 + $0x38] sm:$0xff]   ;;  %s1004_s30 = scalar_lea.vmem %s1014_s2, %s672_s27 }
  0x10   : > { %746 = vmatpush3.bf16.msra.mxu0 %v827_v10  ;;  %v844_v27 = vld [vmem:[%s1013_s1 + $0xb0] sm:$0xff]   ;;  %v848_v31 = vld [vmem:[%s1013_s1 + $0xb8] sm:$0xff]   ;;  %v159_v38 = vld [vmem:[%s142_s23 + $0x40] sm:$0xff] }
  0x11   : > { %780 = vmatpush3.bf16.msra.mxu1 %v828_v11  ;;  %747 = vmatprep.subr.bf16.mxu0 %v829_v12  ;;  %v849_v32 = vld [vmem:[%s142_s23] ss:$16 sps:$4 sm:$0xff]   ;;  %v851_v33 = vld [vmem:[%s142_s23 + $0x4] ss:$16 sps:$4 sm:$0xff]   ;;  %v852_v34 = vld [vmem:[%s142_s23 + $0x8] ss:$16 sps:$4 sm:$0xff]   ;;  %v682_v42 = vcombine.high %v159_v38, %v159_v38  ;;  %v681_v44 = vcombine.low %v159_v38, %v159_v38 }
  0x12   : > { %781 = vmatprep.subr.bf16.mxu1 %v830_v13  ;;  %v854_v35 = vld [vmem:[%s142_s23 + $0xc] ss:$16 sps:$4 sm:$0xff]   ;;  %503 = vmatprep.mubr.bf16.mxu0 %v851_v33  ;;  %v855_v36 = vld [vmem:[%s142_s23 + $0x24] ss:$16 sps:$4 sm:$0xff]   ;;  %v859_v40 = vld [vmem:[%s142_s23 + $0x20] ss:$16 sps:$4 sm:$0xff]  }
  0x13   : > { %559 = vmatprep.mubr.bf16.mxu1 %v854_v35  ;;  %v857_v37 = vld [vmem:[%s142_s23 + $0x2c] ss:$16 sps:$4 sm:$0xff]   ;;  %v860_v41 = vld [vmem:[%s142_s23 + $0x28] ss:$16 sps:$4 sm:$0xff]  }
  0x14   : > { %748 = vmatpush3.bf16.msra.mxu0 %v831_v14  ;;  %v160_v39 = vld [vmem:[%s142_s23 + $0x48] sm:$0xff] }
  0x15   : > { %782 = vmatpush3.bf16.msra.mxu1 %v832_v15  ;;  %749 = vmatprep.subr.bf16.mxu0 %v833_v16  ;;  %v684_v43 = vcombine.high %v160_v39, %v160_v39  ;;  %v683_v45 = vcombine.low %v160_v39, %v160_v39 }
  0x16   : > { %783 = vmatprep.subr.bf16.mxu1 %v834_v17 }
  0x18   : > { %750 = vmatpush3.bf16.msra.mxu0 %v835_v18 }
  0x19   : > { %784 = vmatpush3.bf16.msra.mxu1 %v836_v19  ;;  %751 = vmatprep.subr.bf16.mxu0 %v837_v20 }
  0x1a   : > { %785 = vmatprep.subr.bf16.mxu1 %v838_v21 }
  0x1c   : > { %752 = vmatpush3.bf16.msra.mxu0 %v839_v22 }
  0x1d   : > { %786 = vmatpush3.bf16.msra.mxu1 %v840_v23  ;;  %753 = vmatprep.subr.bf16.mxu0 %v841_v24 }
  0x1e   : > { %787 = vmatprep.subr.bf16.mxu1 %v842_v25 }
  0x20   : > { %754 = vmatpush3.bf16.msra.mxu0 %v843_v26 }
  0x21   : > { %788 = vmatpush3.bf16.msra.mxu1 %v844_v27  ;;  %755 = vmatprep.subr.bf16.mxu0 %v845_v28 }
  0x22   : > { %789 = vmatprep.subr.bf16.mxu1 %v846_v29 }
  0x24   : > { %756 = vmatpush3.bf16.msra.mxu0 %v847_v30 }
  0x25   : > { %790 = vmatpush3.bf16.msra.mxu1 %v848_v31 }
  0x27   : > { %504 = vmatmul.mubr.bf16.vlgmr.msra.gmra.mrb[0].mxu0 %v849_v32 }
  0x28   : > { %560 = vmatmul.mubr.bf16.vlgmr.msra.gmra.mrb[0].mxu1 %v852_v34  ;;  %511 = vmatprep.mubr.bf16.mxu0 %v855_v36 }
  0x29   : > { %567 = vmatprep.mubr.bf16.mxu1 %v857_v37 }
  0x2f   : > { %512 = vmatmul.mubr.bf16.gmra.mrb[4].mxu0 %v859_v40 }
  0x30   : > { %568 = vmatmul.mubr.bf16.gmra.mrb[4].mxu1 %v860_v41  ;;  %519 = vmatprep.mubr.bf16.mxu0 %v682_v42 }
  0x31   : > { %575 = vmatprep.mubr.bf16.mxu1 %v684_v43 }
  0x37   : > { %520 = vmatmul.mubr.bf16.gmra.mrb[8].mxu0 %v681_v44 }
  0x38   : > { %576 = vmatmul.mubr.bf16.gmra.mrb[8].mxu1 %v683_v45 }
  0xfa   : > { %v757_v46 = vpop.f32.mrb[0].mxu0 }
  0xfb   : > { %v791_v47 = vpop.f32.mrb[0].mxu1  ;;  %v758_v48 = vpop.f32.mrb[1].mxu0 }
  0xfc   : > { %v759_v49 = vadd.f32 %v758_v48, %v757_v46  ;;  %v792_v50 = vpop.f32.mrb[1].mxu1  ;;  %v760_v51 = vpop.f32.mrb[2].mxu0 }
  0xfd   : > { %v793_v52 = vadd.f32 %v792_v50, %v791_v47  ;;  %v794_v53 = vpop.f32.mrb[2].mxu1  ;;  %v761_v54 = vpop.f32.mrb[3].mxu0 }
  0xfe   : > { %v762_v55 = vadd.f32 %v761_v54, %v760_v51  ;;  %v795_v56 = vpop.f32.mrb[3].mxu1 }
  0xff   : > { %v562_v57 = vadd.f32 %v793_v52, %v759_v49  ;;  %v796_v58 = vadd.f32 %v795_v56, %v794_v53 }
 0x101   : > { %v565_v59 = vadd.f32 %v796_v58, %v762_v55 }
 0x102   : > { %v763_v60 = vpop.f32.mrb[4].mxu0 }
 0x103   : > { %v733_v61 = vpack.c.bf16 %v565_v59, %v562_v57  ;;  %v797_v62 = vpop.f32.mrb[4].mxu1  ;;  %v764_v63 = vpop.f32.mrb[5].mxu0 }
 0x104   : > { %v765_v0 = vadd.f32 %v764_v63, %v763_v60  ;;  %v798_v1 = vpop.f32.mrb[5].mxu1  ;;  %v766_v2 = vpop.f32.mrb[6].mxu0 }
 0x105   : > { %734 = vst [vmem:[%s1004_s30] sm:$0xff] %v733_v61   ;;  %v799_v3 = vadd.f32 %v798_v1, %v797_v62  ;;  %v800_v4 = vpop.f32.mrb[6].mxu1  ;;  %v767_v5 = vpop.f32.mrb[7].mxu0 }
 0x106   : > { %v768_v6 = vadd.f32 %v767_v5, %v766_v2  ;;  %v801_v7 = vpop.f32.mrb[7].mxu1 }
 0x107   : > { %v570_v8 = vadd.f32 %v799_v3, %v765_v0  ;;  %v802_v9 = vadd.f32 %v801_v7, %v800_v4 }
 0x109   : > { %v573_v10 = vadd.f32 %v802_v9, %v768_v6 }
 0x10a   : > { %v769_v11 = vpop.f32.mrb[8].mxu0 }
 0x10b   : > { %v738_v12 = vpack.c.bf16 %v573_v10, %v570_v8  ;;  %v803_v13 = vpop.f32.mrb[8].mxu1  ;;  %v770_v14 = vpop.f32.mrb[9].mxu0 }
 0x10c   : > { %v771_v15 = vadd.f32 %v770_v14, %v769_v11  ;;  %v804_v16 = vpop.f32.mrb[9].mxu1  ;;  %v772_v17 = vpop.f32.mrb[10].mxu0 }
 0x10d   : > { %740 = vst [vmem:[%s1004_s30 + $0x8] sm:$0xff] %v738_v12   ;;  %v805_v18 = vadd.f32 %v804_v16, %v803_v13  ;;  %v806_v19 = vpop.f32.mrb[10].mxu1  ;;  %v773_v20 = vpop.f32.mrb[11].mxu0 }
 0x10e   : > { %v807_v21 = vpop.f32.mrb[11].mxu1 }
 0x10f   : > { %v578_v22 = vadd.f32 %v805_v18, %v771_v15 }
 0x111   : > { %v729_v23 = vpack.c.bf16 %v578_v22, %v578_v22 }
 0x113   : > { %608 = vst [vmem:[%s1004_s30 + $0x10] sm:$0xf] %v729_v23 }
 0x114 PF: > { %s12_s9 = sadd.s32 1, %s871_s9  }
 0x115   : > { %p9_p4 = scmp.ge.s32.totalorder %s12_s9, 4  }
 0x117   :  { %11 = sbr.rel (!%p9_p4) target bundleno = 1 (0x1), region = 58 }

</bundles_post_ra>
